<compile_context>
chip_gen: v5e
topology: v5e:2x2
jax: 0.10.0
libtpu: 0.0.40
codegen_flags: <defaults>
</compile_context>

<pallas_src>
import jax
import jax.numpy as jnp
from jax.experimental import pallas as pl
from jax.experimental.pallas import tpu as pltpu

EPS = 1e-5
LANE = 128                               # pad channel dims to the lane width
_VMEM_LIMIT_BYTES = 48 * 1024 * 1024     # safe on v7x (64 MiB) and v5e/v6e
_TARGET_TILE_ROWS = 512                  # ~rows of the (M, C) tile per grid step


# ----------------------------------------------------------------------------
# small helpers
# ----------------------------------------------------------------------------
def _round_up(x, m):
    return (x + m - 1) // m * m


def _pick_tile_rows(ho, wo):
    """Largest divisor `th` of `ho` with th * wo <= _TARGET_TILE_ROWS (>= 1)."""
    th = max(1, min(ho, _TARGET_TILE_ROWS // max(wo, 1)))
    while ho % th:
        th -= 1
    return th


def _pad_channels(x, cp):
    c = x.shape[-1]
    if c == cp:
        return x
    return jnp.pad(x, ((0, 0), (0, 0), (0, 0), (0, cp - c)))


def _make_phases(xp):
    """Even/odd row x col phases of the padded image, flattened into batch.

    xp: (N, H+2, W+2, C) with H, W even -> (N*4, H/2+1, W/2+1, C); phase index
    p = (row_parity)*2 + col_parity, so tap (dh, dw) of a 3x3 stride-2 conv
    reads phase (dh%2)*2 + (dw%2) at contiguous offset (dh//2, dw//2).
    """
    n, hp, wp, c = xp.shape
    ph = jnp.stack([xp[:, 0::2, 0::2, :], xp[:, 0::2, 1::2, :],
                    xp[:, 1::2, 0::2, :], xp[:, 1::2, 1::2, :]], axis=1)
    return ph.reshape(n * 4, hp // 2, wp // 2, c)


# ----------------------------------------------------------------------------
# Pallas kernel 1: direct 3x3 conv (stride 1 or 2) + per-tile BN partial stats
# ----------------------------------------------------------------------------
def _make_conv_kernel(stride):
    def kernel(x_ref, w_ref, y_ref, st_ref, acc_ref):
        _, th, wo, cpo = y_ref.shape
        cpi = x_ref.shape[-1]
        mrows = th * wo
        r0 = pl.program_id(1) * th

        acc_ref[...] = jnp.zeros_like(acc_ref)
        for dh in range(3):
            for dw in range(3):
                if stride == 1:
                    xs = x_ref[0, pl.ds(r0 + dh, th), pl.ds(dw, wo), :]
                else:
                    p = (dh % 2) * 2 + (dw % 2)
                    xs = x_ref[p, pl.ds(r0 + dh // 2, th), pl.ds(dw // 2, wo), :]
                acc_ref[...] += jnp.dot(xs.reshape(mrows, cpi), w_ref[dh, dw],
                                        preferred_element_type=jnp.float32)

        acc = acc_ref[...]
        y_ref[0] = acc.reshape(th, wo, cpo)
        s = jnp.sum(acc, axis=0, keepdims=True)
        ss = jnp.sum(acc * acc, axis=0, keepdims=True)
        st_ref[0, 0] = jnp.concatenate(
            [s, ss, jnp.zeros((6, cpo), jnp.float32)], axis=0)

    return kernel


def _conv3x3(x_in, w, stride, ho, wo):
    """Pre-BN conv output (f32) + per-tile (sum, sumsq) partials.

    x_in: stride==1 -> padded image (N, ho+2, wo+2, Cpi) bf16
          stride==2 -> phase stack  (N*4, ho+1, wo+1, Cpi) bf16
    w:    (3, 3, Cpi, Cpo) bf16
    """
    cpi = x_in.shape[-1]
    cpo = w.shape[-1]
    if stride == 1:
        n = x_in.shape[0]
        in_block = (1,) + x_in.shape[1:]
    else:
        n = x_in.shape[0] // 4
        in_block = (4,) + x_in.shape[1:]
    th = _pick_tile_rows(ho, wo)
    nrb = ho // th

    return pl.pallas_call(
        _make_conv_kernel(stride),
        grid=(n, nrb),
        in_specs=[pl.BlockSpec(in_block, lambda i, j: (i, 0, 0, 0)),
                  pl.BlockSpec(w.shape, lambda i, j: (0, 0, 0, 0))],
        out_specs=(pl.BlockSpec((1, th, wo, cpo), lambda i, j: (i, j, 0, 0)),
                   pl.BlockSpec((1, 1, 8, cpo), lambda i, j: (i, j, 0, 0))),
        out_shape=(jax.ShapeDtypeStruct((n, ho, wo, cpo), jnp.float32),
                   jax.ShapeDtypeStruct((n, nrb, 8, cpo), jnp.float32)),
        scratch_shapes=[pltpu.VMEM((th * wo, cpo), jnp.float32)],
        compiler_params=pltpu.CompilerParams(
            dimension_semantics=("parallel", "parallel"),
            vmem_limit_bytes=_VMEM_LIMIT_BYTES),
    )(x_in, w)


# ----------------------------------------------------------------------------
# Pallas kernel 2: BN affine + (residual | fused 1x1 shortcut conv) + ReLU
# ----------------------------------------------------------------------------
def _make_norm_kernel(has_res, has_sc):
    def body(y_ref, s_ref, b_ref, r_ref, xs_ref, wsc_ref, o_ref):
        _, th, wo, cpo = y_ref.shape
        mrows = th * wo
        out = y_ref[0].reshape(mrows, cpo) * s_ref[...] + b_ref[...]
        if r_ref is not None:
            out = out + r_ref[0].reshape(mrows, cpo).astype(jnp.float32)
        if xs_ref is not None:                     # fused 1x1 stride-2 shortcut
            cpi = xs_ref.shape[-1]
            xs = xs_ref[0].reshape(mrows, cpi)
            out = out + jnp.dot(xs, wsc_ref[...],
                                preferred_element_type=jnp.float32)
        out = jnp.maximum(out, 0.0)
        o_ref[0] = out.reshape(th, wo, cpo).astype(o_ref.dtype)

    if has_res and has_sc:
        def kernel(y, s, b, r, xs, wsc, o):
            body(y, s, b, r, xs, wsc, o)
    elif has_res:
        def kernel(y, s, b, r, o):
            body(y, s, b, r, None, None, o)
    elif has_sc:
        def kernel(y, s, b, xs, wsc, o):
            body(y, s, b, None, xs, wsc, o)
    else:
        def kernel(y, s, b, o):
            body(y, s, b, None, None, None, o)
    return kernel


def _norm_act(y, scale, bias, residual=None, shortcut=None):
    n, ho, wo, cpo = y.shape
    th = _pick_tile_rows(ho, wo)
    nrb = ho // th

    def tile_spec(c):
        return pl.BlockSpec((1, th, wo, c), lambda i, j: (i, j, 0, 0))

    def vec_spec(c):
        return pl.BlockSpec((1, c), lambda i, j: (0, 0))

    args = [y, scale, bias]
    specs = [tile_spec(cpo), vec_spec(cpo), vec_spec(cpo)]
    if residual is not None:
        args.append(residual)
        specs.append(tile_spec(cpo))
    if shortcut is not None:
        xs, wsc = shortcut
        cpi = xs.shape[-1]
        args += [xs, wsc]
        specs += [tile_spec(cpi),
                  pl.BlockSpec((cpi, cpo), lambda i, j: (0, 0))]

    return pl.pallas_call(
        _make_norm_kernel(residual is not None, shortcut is not None),
        grid=(n, nrb),
        in_specs=specs,
        out_specs=tile_spec(cpo),
        out_shape=jax.ShapeDtypeStruct((n, ho, wo, cpo), jnp.bfloat16),
        compiler_params=pltpu.CompilerParams(
            dimension_semantics=("parallel", "parallel"),
            vmem_limit_bytes=_VMEM_LIMIT_BYTES),
    )(*args)


def _bn_affine(stats, gamma, beta, count):
    """Reduce per-tile partials -> per-channel (scale, bias) for train-mode BN."""
    tot = jnp.sum(stats, axis=(0, 1))            # (8, Cpo): row0=sum, row1=sumsq
    mean = tot[0] / count
    var = jnp.maximum(tot[1] / count - mean * mean, 0.0)
    scale = gamma * jax.lax.rsqrt(var + EPS)
    bias = beta - mean * scale
    return (scale.reshape(1, -1).astype(jnp.float32),
            bias.reshape(1, -1).astype(jnp.float32))


# ----------------------------------------------------------------------------
# Parameter preparation (done ONCE outside the per-forward path)
# ----------------------------------------------------------------------------
def prepare_params(params):
    ds = params['downsample']
    cout, cin = ds['w1'].shape[0], ds['w1'].shape[1]
    cpi = _round_up(cin, LANE)
    cpo = _round_up(cout, LANE)

    def conv_w(w_oihw, ci_p, co_p):
        w = jnp.transpose(w_oihw, (2, 3, 1, 0))            # (kh, kw, cin, cout)
        pad = ((0, 0), (0, 0), (0, ci_p - w.shape[2]), (0, co_p - w.shape[3]))
        return jnp.pad(w, pad).astype(jnp.bfloat16)

    def bn_pair(g, b):
        pad = (0, cpo - g.shape[0])
        return (jnp.pad(g, pad).astype(jnp.float32),
                jnp.pad(b, pad).astype(jnp.float32))

    pds = {'w1': conv_w(ds['w1'], cpi, cpo),
           'w2': conv_w(ds['w2'], cpo, cpo),
           'wsc': conv_w(ds['wsc'], cpi, cpo)[0, 0]}        # (Cpi, Cpo) 1x1
    pds['g1'], pds['b1'] = bn_pair(ds['g1'], ds['b1'])
    pds['g2'], pds['b2'] = bn_pair(ds['g2'], ds['b2'])

    blocks = []
    for bp in params['blocks']:
        pb = {'w1': conv_w(bp['w1'], cpo, cpo),
              'w2': conv_w(bp['w2'], cpo, cpo)}
        pb['g1'], pb['b1'] = bn_pair(bp['g1'], bp['b1'])
        pb['g2'], pb['b2'] = bn_pair(bp['g2'], bp['b2'])
        blocks.append(pb)
    return {'downsample': pds, 'blocks': blocks}


# ----------------------------------------------------------------------------
# Full forward pass
# ----------------------------------------------------------------------------
def res_down_sample_forward(x_nchw, prep, out_channels):
    x = jnp.transpose(x_nchw, (0, 2, 3, 1)).astype(jnp.float32)   # NHWC
    n, h, w, _ = x.shape
    assert h % 2 == 0 and w % 2 == 0, "even spatial dims expected"

    ds = prep['downsample']
    cpi = ds['w1'].shape[2]
    x = _pad_channels(x, cpi).astype(jnp.bfloat16)                # (n,h,w,Cpi)
    ho, wo = h // 2, w // 2
    m = n * ho * wo

    # ---- downsample ResBlock -------------------------------------------------
    xp = jnp.pad(x, ((0, 0), (1, 1), (1, 1), (0, 0)))
    y1, st1 = _conv3x3(_make_phases(xp), ds['w1'], stride=2, ho=ho, wo=wo)
    sc1, bi1 = _bn_affine(st1, ds['g1'], ds['b1'], m)
    x1 = _norm_act(y1, sc1, bi1)

    x1p = jnp.pad(x1, ((0, 0), (1, 1), (1, 1), (0, 0)))
    y2, st2 = _conv3x3(x1p, ds['w2'], stride=1, ho=ho, wo=wo)
    sc2, bi2 = _bn_affine(st2, ds['g2'], ds['b2'], m)
    xs = x[:, ::2, ::2, :]                       # 1x1 stride-2 shortcut input
    out = _norm_act(y2, sc2, bi2, shortcut=(xs, ds['wsc']))

    # ---- basic ResBlocks -----------------------------------------------------
    for bp in prep['blocks']:
        rp = jnp.pad(out, ((0, 0), (1, 1), (1, 1), (0, 0)))
        ya, sta = _conv3x3(rp, bp['w1'], stride=1, ho=ho, wo=wo)
        sca, bia = _bn_affine(sta, bp['g1'], bp['b1'], m)
        xa = _norm_act(ya, sca, bia)

        xap = jnp.pad(xa, ((0, 0), (1, 1), (1, 1), (0, 0)))
        yb, stb = _conv3x3(xap, bp['w2'], stride=1, ho=ho, wo=wo)
        scb, bib = _bn_affine(stb, bp['g2'], bp['b2'], m)
        out = _norm_act(yb, scb, bib, residual=out)

    out = out[..., :out_channels].astype(jnp.float32)
    return jnp.transpose(out, (0, 3, 1, 2))                       # back to NCHW


# ----------------------------------------------------------------------------
# Deterministic parameter init (shapes follow the nn.Module __init__)
# ----------------------------------------------------------------------------
def init_params(key, in_channels, out_channels, num_blocks):
    def conv_w(k, cout, cin, ks):
        return 0.1 * jax.random.normal(k, (cout, cin, ks, ks), jnp.float32)

    def bn(k, c):
        k1, k2 = jax.random.split(k)
        return (0.5 + jax.random.uniform(k1, (c,), jnp.float32),
                0.1 * jax.random.normal(k2, (c,), jnp.float32))

    keys = jax.random.split(key, 5 + 4 * num_blocks)
    ds = {
        'w1': conv_w(keys[0], out_channels, in_channels, 3),
        'w2': conv_w(keys[1], out_channels, out_channels, 3),
        'wsc': conv_w(keys[2], out_channels, in_channels, 1),
    }
    ds['g1'], ds['b1'] = bn(keys[3], out_channels)
    ds['g2'], ds['b2'] = bn(keys[4], out_channels)
    blocks = []
    for i in range(num_blocks):
        k0, k1, k2, k3 = keys[5 + 4 * i:5 + 4 * (i + 1)]
        bp = {'w1': conv_w(k0, out_channels, out_channels, 3),
              'w2': conv_w(k1, out_channels, out_channels, 3)}
        bp['g1'], bp['b1'] = bn(k2, out_channels)
        bp['g2'], bp['b2'] = bn(k3, out_channels)
        blocks.append(bp)
    return {'downsample': ds, 'blocks': blocks}


# ----------------------------------------------------------------------------
# Pure-JAX f32 reference (for self-check)
# ----------------------------------------------------------------------------
def _conv_ref(x, w_oihw, stride, pad):
    w_hwio = jnp.transpose(w_oihw, (2, 3, 1, 0))
    return jax.lax.conv_general_dilated(
        x, w_hwio, (stride, stride), [(pad, pad), (pad, pad)],
        dimension_numbers=('NHWC', 'HWIO', 'NHWC'))


def _bn_ref(y, g, b):
    m = jnp.mean(y, axis=(0, 1, 2), keepdims=True)
    v = jnp.mean((y - m) ** 2, axis=(0, 1, 2), keepdims=True)
    return (y - m) * jax.lax.rsqrt(v + EPS) * g + b


def reference(x_nchw, params):
    x = jnp.transpose(x_nchw, (0, 2, 3, 1))
    ds = params['downsample']
    x1 = jax.nn.relu(_bn_ref(_conv_ref(x, ds['w1'], 2, 1), ds['g1'], ds['b1']))
    x2 = _bn_ref(_conv_ref(x1, ds['w2'], 1, 1), ds['g2'], ds['b2'])
    sc = _conv_ref(x, ds['wsc'], 2, 0)
    x = jax.nn.relu(x2 + sc)
    for bp in params['blocks']:
        x1 = jax.nn.relu(_bn_ref(_conv_ref(x, bp['w1'], 1, 1), bp['g1'], bp['b1']))
        x2 = _bn_ref(_conv_ref(x1, bp['w2'], 1, 1), bp['g2'], bp['b2'])
        x = jax.nn.relu(x2 + x)
    return jnp.transpose(x, (0, 3, 1, 2))


# ----------------------------------------------------------------------------
if __name__ == "__main__":
    key = jax.random.PRNGKey(0)
    kx, kp = jax.random.split(key)

    in_channels, out_channels, num_blocks = 4, 8, 1
    x = jax.random.normal(kx, (2, in_channels, 16, 16), jnp.float32)  # NCHW
    params = init_params(kp, in_channels, out_channels, num_blocks)
    prep = prepare_params(params)          # weight layout/padding/bf16, once

    fwd = jax.jit(lambda xx, pp: res_down_sample_forward(xx, pp, out_channels))
    out = jax.block_until_ready(fwd(x, prep))

    ref = reference(x, params)
    assert out.shape == (2, out_channels, 8, 8), out.shape
    max_err = float(jnp.max(jnp.abs(out - ref)))
    # bf16 MXU inputs -> loosened tolerance vs the f32 reference.
    assert jnp.allclose(out, ref, rtol=5e-2, atol=5e-2), max_err

    print("KERNEL_OK")
</pallas_src>

<mosaic_0001>
module attributes {stable_mosaic.version = 11 : i64} {
  func.func @kernel(%arg0: i32, %arg1: i32, %arg2: memref<4x9x9x128xbf16, #tpu.memory_space<vmem>>, %arg3: memref<3x3x128x128xbf16, #tpu.memory_space<vmem>>, %arg4: memref<1x8x8x128xf32, #tpu.memory_space<vmem>>, %arg5: memref<1x1x8x128xf32, #tpu.memory_space<vmem>>, %arg6: memref<64x128xf32, #tpu.memory_space<vmem>>) attributes {dimension_semantics = [#tpu.dimension_semantics<parallel>, #tpu.dimension_semantics<parallel>], iteration_bounds = array<i64: 2, 1>, scalar_prefetch = 0 : i64, scratch_operands = 1 : i64, tpu.core_type = #tpu.core_type<tc>, window_params = [{transform_indices = @transform_0, window_bounds = array<i64: 4, 9, 9, 128>}, {pipeline_mode = #tpu.pipeline_mode<synchronous>, transform_indices = @transform_1, window_bounds = array<i64: 3, 3, 128, 128>}, {transform_indices = @transform_2, window_bounds = array<i64: 1, 8, 8, 128>}, {transform_indices = @transform_3, window_bounds = array<i64: 1, 1, 8, 128>}]} {
    %c8_i32 = arith.constant 8 : i32
    %0 = arith.muli %arg1, %c8_i32 : i32
    %cst = arith.constant 0.000000e+00 : f32
    %1 = vector.broadcast %cst : f32 to vector<64x128xf32>
    %c0 = arith.constant 0 : index
    %c0_0 = arith.constant 0 : index
    %2 = vector.load %arg6[%c0, %c0_0] : memref<64x128xf32, #tpu.memory_space<vmem>>, vector<64x128xf32>
    tpu.vector_store %arg6[%c0, %c0_0], %1 {strides = array<i32>} : memref<64x128xf32, #tpu.memory_space<vmem>>, vector<64x128xf32>,
    %c0_i32 = arith.constant 0 : i32
    %3 = arith.addi %0, %c0_i32 : i32
    %c0_1 = arith.constant 0 : index
    %4 = arith.index_cast %3 : i32 to index
    %c0_2 = arith.constant 0 : index
    %c0_3 = arith.constant 0 : index
    %5 = vector.load %arg2[%c0_1, %4, %c0_2, %c0_3] : memref<4x9x9x128xbf16, #tpu.memory_space<vmem>>, vector<1x8x8x128xbf16>
    %6 = vector.shape_cast %5 : vector<1x8x8x128xbf16> to vector<8x8x128xbf16>
    %c0_4 = arith.constant 0 : index
    %c0_5 = arith.constant 0 : index
    %7 = vector.load %arg6[%c0_4, %c0_5] : memref<64x128xf32, #tpu.memory_space<vmem>>, vector<64x128xf32>
    %8 = vector.shape_cast %6 : vector<8x8x128xbf16> to vector<64x128xbf16>
    %c0_6 = arith.constant 0 : index
    %c0_7 = arith.constant 0 : index
    %c0_8 = arith.constant 0 : index
    %c0_9 = arith.constant 0 : index
    %9 = vector.load %arg3[%c0_6, %c0_7, %c0_8, %c0_9] : memref<3x3x128x128xbf16, #tpu.memory_space<vmem>>, vector<1x1x128x128xbf16>
    %10 = vector.shape_cast %9 : vector<1x1x128x128xbf16> to vector<128x128xbf16>
    %cst_10 = arith.constant dense<0.000000e+00> : vector<64x128xf32>
    %11 = tpu.matmul %8, %10, %cst_10 {dimension_numbers = #tpu.dot_dimension_numbers<[1], [0], [0], [1], [0, 0, 1, 1], [], []>} : vector<64x128xbf16>, vector<128x128xbf16>, vector<64x128xf32> -> vector<64x128xf32>
    %12 = arith.addf %7, %11 : vector<64x128xf32>
    %c0_11 = arith.constant 0 : index
    %c0_12 = arith.constant 0 : index
    %13 = vector.load %arg6[%c0_11, %c0_12] : memref<64x128xf32, #tpu.memory_space<vmem>>, vector<64x128xf32>
    tpu.vector_store %arg6[%c0_11, %c0_12], %12 {strides = array<i32>} : memref<64x128xf32, #tpu.memory_space<vmem>>, vector<64x128xf32>,
    %c0_i32_13 = arith.constant 0 : i32
    %14 = arith.addi %0, %c0_i32_13 : i32
    %c1 = arith.constant 1 : index
    %15 = arith.index_cast %14 : i32 to index
    %c0_14 = arith.constant 0 : index
    %c0_15 = arith.constant 0 : index
    %16 = vector.load %arg2[%c1, %15, %c0_14, %c0_15] : memref<4x9x9x128xbf16, #tpu.memory_space<vmem>>, vector<1x8x8x128xbf16>
    %17 = vector.shape_cast %16 : vector<1x8x8x128xbf16> to vector<8x8x128xbf16>
    %c0_16 = arith.constant 0 : index
    %c0_17 = arith.constant 0 : index
    %18 = vector.load %arg6[%c0_16, %c0_17] : memref<64x128xf32, #tpu.memory_space<vmem>>, vector<64x128xf32>
    %19 = vector.shape_cast %17 : vector<8x8x128xbf16> to vector<64x128xbf16>
    %c0_18 = arith.constant 0 : index
    %c1_19 = arith.constant 1 : index
    %c0_20 = arith.constant 0 : index
    %c0_21 = arith.constant 0 : index
    %20 = vector.load %arg3[%c0_18, %c1_19, %c0_20, %c0_21] : memref<3x3x128x128xbf16, #tpu.memory_space<vmem>>, vector<1x1x128x128xbf16>
    %21 = vector.shape_cast %20 : vector<1x1x128x128xbf16> to vector<128x128xbf16>
    %cst_22 = arith.constant dense<0.000000e+00> : vector<64x128xf32>
    %22 = tpu.matmul %19, %21, %cst_22 {dimension_numbers = #tpu.dot_dimension_numbers<[1], [0], [0], [1], [0, 0, 1, 1], [], []>} : vector<64x128xbf16>, vector<128x128xbf16>, vector<64x128xf32> -> vector<64x128xf32>
    %23 = arith.addf %18, %22 : vector<64x128xf32>
    %c0_23 = arith.constant 0 : index
    %c0_24 = arith.constant 0 : index
    %24 = vector.load %arg6[%c0_23, %c0_24] : memref<64x128xf32, #tpu.memory_space<vmem>>, vector<64x128xf32>
    tpu.vector_store %arg6[%c0_23, %c0_24], %23 {strides = array<i32>} : memref<64x128xf32, #tpu.memory_space<vmem>>, vector<64x128xf32>,
    %c0_i32_25 = arith.constant 0 : i32
    %25 = arith.addi %0, %c0_i32_25 : i32
    %c0_26 = arith.constant 0 : index
    %26 = arith.index_cast %25 : i32 to index
    %c1_27 = arith.constant 1 : index
    %c0_28 = arith.constant 0 : index
    %27 = vector.load %arg2[%c0_26, %26, %c1_27, %c0_28] : memref<4x9x9x128xbf16, #tpu.memory_space<vmem>>, vector<1x8x8x128xbf16>
    %28 = vector.shape_cast %27 : vector<1x8x8x128xbf16> to vector<8x8x128xbf16>
    %c0_29 = arith.constant 0 : index
    %c0_30 = arith.constant 0 : index
    %29 = vector.load %arg6[%c0_29, %c0_30] : memref<64x128xf32, #tpu.memory_space<vmem>>, vector<64x128xf32>
    %30 = vector.shape_cast %28 : vector<8x8x128xbf16> to vector<64x128xbf16>
    %c0_31 = arith.constant 0 : index
    %c2 = arith.constant 2 : index
    %c0_32 = arith.constant 0 : index
    %c0_33 = arith.constant 0 : index
    %31 = vector.load %arg3[%c0_31, %c2, %c0_32, %c0_33] : memref<3x3x128x128xbf16, #tpu.memory_space<vmem>>, vector<1x1x128x128xbf16>
    %32 = vector.shape_cast %31 : vector<1x1x128x128xbf16> to vector<128x128xbf16>
    %cst_34 = arith.constant dense<0.000000e+00> : vector<64x128xf32>
    %33 = tpu.matmul %30, %32, %cst_34 {dimension_numbers = #tpu.dot_dimension_numbers<[1], [0], [0], [1], [0, 0, 1, 1], [], []>} : vector<64x128xbf16>, vector<128x128xbf16>, vector<64x128xf32> -> vector<64x128xf32>
    %34 = arith.addf %29, %33 : vector<64x128xf32>
    %c0_35 = arith.constant 0 : index
    %c0_36 = arith.constant 0 : index
    %35 = vector.load %arg6[%c0_35, %c0_36] : memref<64x128xf32, #tpu.memory_space<vmem>>, vector<64x128xf32>
    tpu.vector_store %arg6[%c0_35, %c0_36], %34 {strides = array<i32>} : memref<64x128xf32, #tpu.memory_space<vmem>>, vector<64x128xf32>,
    %c0_i32_37 = arith.constant 0 : i32
    %36 = arith.addi %0, %c0_i32_37 : i32
    %c2_38 = arith.constant 2 : index
    %37 = arith.index_cast %36 : i32 to index
    %c0_39 = arith.constant 0 : index
    %c0_40 = arith.constant 0 : index
    %38 = vector.load %arg2[%c2_38, %37, %c0_39, %c0_40] : memref<4x9x9x128xbf16, #tpu.memory_space<vmem>>, vector<1x8x8x128xbf16>
    %39 = vector.shape_cast %38 : vector<1x8x8x128xbf16> to vector<8x8x128xbf16>
    %c0_41 = arith.constant 0 : index
    %c0_42 = arith.constant 0 : index
    %40 = vector.load %arg6[%c0_41, %c0_42] : memref<64x128xf32, #tpu.memory_space<vmem>>, vector<64x128xf32>
    %41 = vector.shape_cast %39 : vector<8x8x128xbf16> to vector<64x128xbf16>
    %c1_43 = arith.constant 1 : index
    %c0_44 = arith.constant 0 : index
    %c0_45 = arith.constant 0 : index
    %c0_46 = arith.constant 0 : index
    %42 = vector.load %arg3[%c1_43, %c0_44, %c0_45, %c0_46] : memref<3x3x128x128xbf16, #tpu.memory_space<vmem>>, vector<1x1x128x128xbf16>
    %43 = vector.shape_cast %42 : vector<1x1x128x128xbf16> to vector<128x128xbf16>
    %cst_47 = arith.constant dense<0.000000e+00> : vector<64x128xf32>
    %44 = tpu.matmul %41, %43, %cst_47 {dimension_numbers = #tpu.dot_dimension_numbers<[1], [0], [0], [1], [0, 0, 1, 1], [], []>} : vector<64x128xbf16>, vector<128x128xbf16>, vector<64x128xf32> -> vector<64x128xf32>
    %45 = arith.addf %40, %44 : vector<64x128xf32>
    %c0_48 = arith.constant 0 : index
    %c0_49 = arith.constant 0 : index
    %46 = vector.load %arg6[%c0_48, %c0_49] : memref<64x128xf32, #tpu.memory_space<vmem>>, vector<64x128xf32>
    tpu.vector_store %arg6[%c0_48, %c0_49], %45 {strides = array<i32>} : memref<64x128xf32, #tpu.memory_space<vmem>>, vector<64x128xf32>,
    %c0_i32_50 = arith.constant 0 : i32
    %47 = arith.addi %0, %c0_i32_50 : i32
    %c3 = arith.constant 3 : index
    %48 = arith.index_cast %47 : i32 to index
    %c0_51 = arith.constant 0 : index
    %c0_52 = arith.constant 0 : index
    %49 = vector.load %arg2[%c3, %48, %c0_51, %c0_52] : memref<4x9x9x128xbf16, #tpu.memory_space<vmem>>, vector<1x8x8x128xbf16>
    %50 = vector.shape_cast %49 : vector<1x8x8x128xbf16> to vector<8x8x128xbf16>
    %c0_53 = arith.constant 0 : index
    %c0_54 = arith.constant 0 : index
    %51 = vector.load %arg6[%c0_53, %c0_54] : memref<64x128xf32, #tpu.memory_space<vmem>>, vector<64x128xf32>
    %52 = vector.shape_cast %50 : vector<8x8x128xbf16> to vector<64x128xbf16>
    %c1_55 = arith.constant 1 : index
    %c1_56 = arith.constant 1 : index
    %c0_57 = arith.constant 0 : index
    %c0_58 = arith.constant 0 : index
    %53 = vector.load %arg3[%c1_55, %c1_56, %c0_57, %c0_58] : memref<3x3x128x128xbf16, #tpu.memory_space<vmem>>, vector<1x1x128x128xbf16>
    %54 = vector.shape_cast %53 : vector<1x1x128x128xbf16> to vector<128x128xbf16>
    %cst_59 = arith.constant dense<0.000000e+00> : vector<64x128xf32>
    %55 = tpu.matmul %52, %54, %cst_59 {dimension_numbers = #tpu.dot_dimension_numbers<[1], [0], [0], [1], [0, 0, 1, 1], [], []>} : vector<64x128xbf16>, vector<128x128xbf16>, vector<64x128xf32> -> vector<64x128xf32>
    %56 = arith.addf %51, %55 : vector<64x128xf32>
    %c0_60 = arith.constant 0 : index
    %c0_61 = arith.constant 0 : index
    %57 = vector.load %arg6[%c0_60, %c0_61] : memref<64x128xf32, #tpu.memory_space<vmem>>, vector<64x128xf32>
    tpu.vector_store %arg6[%c0_60, %c0_61], %56 {strides = array<i32>} : memref<64x128xf32, #tpu.memory_space<vmem>>, vector<64x128xf32>,
    %c0_i32_62 = arith.constant 0 : i32
    %58 = arith.addi %0, %c0_i32_62 : i32
    %c2_63 = arith.constant 2 : index
    %59 = arith.index_cast %58 : i32 to index
    %c1_64 = arith.constant 1 : index
    %c0_65 = arith.constant 0 : index
    %60 = vector.load %arg2[%c2_63, %59, %c1_64, %c0_65] : memref<4x9x9x128xbf16, #tpu.memory_space<vmem>>, vector<1x8x8x128xbf16>
    %61 = vector.shape_cast %60 : vector<1x8x8x128xbf16> to vector<8x8x128xbf16>
    %c0_66 = arith.constant 0 : index
    %c0_67 = arith.constant 0 : index
    %62 = vector.load %arg6[%c0_66, %c0_67] : memref<64x128xf32, #tpu.memory_space<vmem>>, vector<64x128xf32>
    %63 = vector.shape_cast %61 : vector<8x8x128xbf16> to vector<64x128xbf16>
    %c1_68 = arith.constant 1 : index
    %c2_69 = arith.constant 2 : index
    %c0_70 = arith.constant 0 : index
    %c0_71 = arith.constant 0 : index
    %64 = vector.load %arg3[%c1_68, %c2_69, %c0_70, %c0_71] : memref<3x3x128x128xbf16, #tpu.memory_space<vmem>>, vector<1x1x128x128xbf16>
    %65 = vector.shape_cast %64 : vector<1x1x128x128xbf16> to vector<128x128xbf16>
    %cst_72 = arith.constant dense<0.000000e+00> : vector<64x128xf32>
    %66 = tpu.matmul %63, %65, %cst_72 {dimension_numbers = #tpu.dot_dimension_numbers<[1], [0], [0], [1], [0, 0, 1, 1], [], []>} : vector<64x128xbf16>, vector<128x128xbf16>, vector<64x128xf32> -> vector<64x128xf32>
    %67 = arith.addf %62, %66 : vector<64x128xf32>
    %c0_73 = arith.constant 0 : index
    %c0_74 = arith.constant 0 : index
    %68 = vector.load %arg6[%c0_73, %c0_74] : memref<64x128xf32, #tpu.memory_space<vmem>>, vector<64x128xf32>
    tpu.vector_store %arg6[%c0_73, %c0_74], %67 {strides = array<i32>} : memref<64x128xf32, #tpu.memory_space<vmem>>, vector<64x128xf32>,
    %c1_i32 = arith.constant 1 : i32
    %69 = arith.addi %0, %c1_i32 : i32
    %c0_75 = arith.constant 0 : index
    %70 = arith.index_cast %69 : i32 to index
    %c0_76 = arith.constant 0 : index
    %c0_77 = arith.constant 0 : index
    %71 = vector.load %arg2[%c0_75, %70, %c0_76, %c0_77] : memref<4x9x9x128xbf16, #tpu.memory_space<vmem>>, vector<1x8x8x128xbf16>
    %72 = vector.shape_cast %71 : vector<1x8x8x128xbf16> to vector<8x8x128xbf16>
    %c0_78 = arith.constant 0 : index
    %c0_79 = arith.constant 0 : index
    %73 = vector.load %arg6[%c0_78, %c0_79] : memref<64x128xf32, #tpu.memory_space<vmem>>, vector<64x128xf32>
    %74 = vector.shape_cast %72 : vector<8x8x128xbf16> to vector<64x128xbf16>
    %c2_80 = arith.constant 2 : index
    %c0_81 = arith.constant 0 : index
    %c0_82 = arith.constant 0 : index
    %c0_83 = arith.constant 0 : index
    %75 = vector.load %arg3[%c2_80, %c0_81, %c0_82, %c0_83] : memref<3x3x128x128xbf16, #tpu.memory_space<vmem>>, vector<1x1x128x128xbf16>
    %76 = vector.shape_cast %75 : vector<1x1x128x128xbf16> to vector<128x128xbf16>
    %cst_84 = arith.constant dense<0.000000e+00> : vector<64x128xf32>
    %77 = tpu.matmul %74, %76, %cst_84 {dimension_numbers = #tpu.dot_dimension_numbers<[1], [0], [0], [1], [0, 0, 1, 1], [], []>} : vector<64x128xbf16>, vector<128x128xbf16>, vector<64x128xf32> -> vector<64x128xf32>
    %78 = arith.addf %73, %77 : vector<64x128xf32>
    %c0_85 = arith.constant 0 : index
    %c0_86 = arith.constant 0 : index
    %79 = vector.load %arg6[%c0_85, %c0_86] : memref<64x128xf32, #tpu.memory_space<vmem>>, vector<64x128xf32>
    tpu.vector_store %arg6[%c0_85, %c0_86], %78 {strides = array<i32>} : memref<64x128xf32, #tpu.memory_space<vmem>>, vector<64x128xf32>,
    %c1_i32_87 = arith.constant 1 : i32
    %80 = arith.addi %0, %c1_i32_87 : i32
    %c1_88 = arith.constant 1 : index
    %81 = arith.index_cast %80 : i32 to index
    %c0_89 = arith.constant 0 : index
    %c0_90 = arith.constant 0 : index
    %82 = vector.load %arg2[%c1_88, %81, %c0_89, %c0_90] : memref<4x9x9x128xbf16, #tpu.memory_space<vmem>>, vector<1x8x8x128xbf16>
    %83 = vector.shape_cast %82 : vector<1x8x8x128xbf16> to vector<8x8x128xbf16>
    %c0_91 = arith.constant 0 : index
    %c0_92 = arith.constant 0 : index
    %84 = vector.load %arg6[%c0_91, %c0_92] : memref<64x128xf32, #tpu.memory_space<vmem>>, vector<64x128xf32>
    %85 = vector.shape_cast %83 : vector<8x8x128xbf16> to vector<64x128xbf16>
    %c2_93 = arith.constant 2 : index
    %c1_94 = arith.constant 1 : index
    %c0_95 = arith.constant 0 : index
    %c0_96 = arith.constant 0 : index
    %86 = vector.load %arg3[%c2_93, %c1_94, %c0_95, %c0_96] : memref<3x3x128x128xbf16, #tpu.memory_space<vmem>>, vector<1x1x128x128xbf16>
    %87 = vector.shape_cast %86 : vector<1x1x128x128xbf16> to vector<128x128xbf16>
    %cst_97 = arith.constant dense<0.000000e+00> : vector<64x128xf32>
    %88 = tpu.matmul %85, %87, %cst_97 {dimension_numbers = #tpu.dot_dimension_numbers<[1], [0], [0], [1], [0, 0, 1, 1], [], []>} : vector<64x128xbf16>, vector<128x128xbf16>, vector<64x128xf32> -> vector<64x128xf32>
    %89 = arith.addf %84, %88 : vector<64x128xf32>
    %c0_98 = arith.constant 0 : index
    %c0_99 = arith.constant 0 : index
    %90 = vector.load %arg6[%c0_98, %c0_99] : memref<64x128xf32, #tpu.memory_space<vmem>>, vector<64x128xf32>
    tpu.vector_store %arg6[%c0_98, %c0_99], %89 {strides = array<i32>} : memref<64x128xf32, #tpu.memory_space<vmem>>, vector<64x128xf32>,
    %c1_i32_100 = arith.constant 1 : i32
    %91 = arith.addi %0, %c1_i32_100 : i32
    %c0_101 = arith.constant 0 : index
    %92 = arith.index_cast %91 : i32 to index
    %c1_102 = arith.constant 1 : index
    %c0_103 = arith.constant 0 : index
    %93 = vector.load %arg2[%c0_101, %92, %c1_102, %c0_103] : memref<4x9x9x128xbf16, #tpu.memory_space<vmem>>, vector<1x8x8x128xbf16>
    %94 = vector.shape_cast %93 : vector<1x8x8x128xbf16> to vector<8x8x128xbf16>
    %c0_104 = arith.constant 0 : index
    %c0_105 = arith.constant 0 : index
    %95 = vector.load %arg6[%c0_104, %c0_105] : memref<64x128xf32, #tpu.memory_space<vmem>>, vector<64x128xf32>
    %96 = vector.shape_cast %94 : vector<8x8x128xbf16> to vector<64x128xbf16>
    %c2_106 = arith.constant 2 : index
    %c2_107 = arith.constant 2 : index
    %c0_108 = arith.constant 0 : index
    %c0_109 = arith.constant 0 : index
    %97 = vector.load %arg3[%c2_106, %c2_107, %c0_108, %c0_109] : memref<3x3x128x128xbf16, #tpu.memory_space<vmem>>, vector<1x1x128x128xbf16>
    %98 = vector.shape_cast %97 : vector<1x1x128x128xbf16> to vector<128x128xbf16>
    %cst_110 = arith.constant dense<0.000000e+00> : vector<64x128xf32>
    %99 = tpu.matmul %96, %98, %cst_110 {dimension_numbers = #tpu.dot_dimension_numbers<[1], [0], [0], [1], [0, 0, 1, 1], [], []>} : vector<64x128xbf16>, vector<128x128xbf16>, vector<64x128xf32> -> vector<64x128xf32>
    %100 = arith.addf %95, %99 : vector<64x128xf32>
    %c0_111 = arith.constant 0 : index
    %c0_112 = arith.constant 0 : index
    %101 = vector.load %arg6[%c0_111, %c0_112] : memref<64x128xf32, #tpu.memory_space<vmem>>, vector<64x128xf32>
    tpu.vector_store %arg6[%c0_111, %c0_112], %100 {strides = array<i32>} : memref<64x128xf32, #tpu.memory_space<vmem>>, vector<64x128xf32>,
    %c0_113 = arith.constant 0 : index
    %c0_114 = arith.constant 0 : index
    %102 = vector.load %arg6[%c0_113, %c0_114] : memref<64x128xf32, #tpu.memory_space<vmem>>, vector<64x128xf32>
    %103 = vector.shape_cast %102 : vector<64x128xf32> to vector<8x8x128xf32>
    %c0_115 = arith.constant 0 : index
    %c0_116 = arith.constant 0 : index
    %c0_117 = arith.constant 0 : index
    %c0_118 = arith.constant 0 : index
    %104 = vector.load %arg4[%c0_115, %c0_116, %c0_117, %c0_118] : memref<1x8x8x128xf32, #tpu.memory_space<vmem>>, vector<1x8x8x128xf32>
    %105 = vector.shape_cast %104 : vector<1x8x8x128xf32> to vector<8x8x128xf32>
    %106 = vector.shape_cast %103 : vector<8x8x128xf32> to vector<1x8x8x128xf32>
    tpu.vector_store %arg4[%c0_115, %c0_116, %c0_117, %c0_118], %106 {strides = array<i32>} : memref<1x8x8x128xf32, #tpu.memory_space<vmem>>, vector<1x8x8x128xf32>,
    %cst_119 = arith.constant dense<0.000000e+00> : vector<128xf32>
    %107 = vector.multi_reduction <add>, %102, %cst_119 [0] : vector<64x128xf32> to vector<128xf32>
    %108 = vector.shape_cast %107 : vector<128xf32> to vector<1x128xf32>
    %109 = arith.mulf %102, %102 : vector<64x128xf32>
    %cst_120 = arith.constant dense<0.000000e+00> : vector<128xf32>
    %110 = vector.multi_reduction <add>, %109, %cst_120 [0] : vector<64x128xf32> to vector<128xf32>
    %111 = vector.shape_cast %110 : vector<128xf32> to vector<1x128xf32>
    %cst_121 = arith.constant 0.000000e+00 : f32
    %112 = vector.broadcast %cst_121 : f32 to vector<6x128xf32>
    %113 = tpu.concatenate %108, %111, %112 in 0 : vector<1x128xf32>, vector<1x128xf32>, vector<6x128xf32> -> vector<8x128xf32>
    %c0_122 = arith.constant 0 : index
    %c0_123 = arith.constant 0 : index
    %c0_124 = arith.constant 0 : index
    %c0_125 = arith.constant 0 : index
    %114 = vector.load %arg5[%c0_122, %c0_123, %c0_124, %c0_125] : memref<1x1x8x128xf32, #tpu.memory_space<vmem>>, vector<1x1x8x128xf32>
    %115 = vector.shape_cast %114 : vector<1x1x8x128xf32> to vector<8x128xf32>
    %116 = vector.shape_cast %113 : vector<8x128xf32> to vector<1x1x8x128xf32>
    tpu.vector_store %arg5[%c0_122, %c0_123, %c0_124, %c0_125], %116 {strides = array<i32>} : memref<1x1x8x128xf32, #tpu.memory_space<vmem>>, vector<1x1x8x128xf32>,
    return
  }
  func.func @transform_0(%arg0: i32, %arg1: i32) -> (i32, i32, i32, i32) {
    %c0_i32 = arith.constant 0 : i32
    %c0_i32_0 = arith.constant 0 : i32
    %c0_i32_1 = arith.constant 0 : i32
    %c0_i32_2 = arith.constant 0 : i32
    return %arg0, %c0_i32, %c0_i32_0, %c0_i32_1 : i32, i32, i32, i32
  }
  func.func @transform_1(%arg0: i32, %arg1: i32) -> (i32, i32, i32, i32) {
    %c0_i32 = arith.constant 0 : i32
    %c0_i32_0 = arith.constant 0 : i32
    %c0_i32_1 = arith.constant 0 : i32
    %c0_i32_2 = arith.constant 0 : i32
    %c0_i32_3 = arith.constant 0 : i32
    return %c0_i32, %c0_i32_0, %c0_i32_1, %c0_i32_2 : i32, i32, i32, i32
  }
  func.func @transform_2(%arg0: i32, %arg1: i32) -> (i32, i32, i32, i32) {
    %c0_i32 = arith.constant 0 : i32
    %c0_i32_0 = arith.constant 0 : i32
    %c0_i32_1 = arith.constant 0 : i32
    return %arg0, %arg1, %c0_i32, %c0_i32_0 : i32, i32, i32, i32
  }
  func.func @transform_3(%arg0: i32, %arg1: i32) -> (i32, i32, i32, i32) {
    %c0_i32 = arith.constant 0 : i32
    %c0_i32_0 = arith.constant 0 : i32
    %c0_i32_1 = arith.constant 0 : i32
    return %arg0, %arg1, %c0_i32, %c0_i32_0 : i32, i32, i32, i32
  }
}

module attributes {stable_mosaic.version = 11 : i64} {
  func.func @kernel(%arg0: i32, %arg1: i32, %arg2: memref<1x8x8x128xf32, #tpu.memory_space<vmem>>, %arg3: memref<1x128xf32, #tpu.memory_space<vmem>>, %arg4: memref<1x128xf32, #tpu.memory_space<vmem>>, %arg5: memref<1x8x8x128xbf16, #tpu.memory_space<vmem>>) attributes {dimension_semantics = [#tpu.dimension_semantics<parallel>, #tpu.dimension_semantics<parallel>], iteration_bounds = array<i64: 2, 1>, scalar_prefetch = 0 : i64, scratch_operands = 0 : i64, tpu.core_type = #tpu.core_type<tc>, window_params = [{transform_indices = @transform_0, window_bounds = array<i64: 1, 8, 8, 128>}, {pipeline_mode = #tpu.pipeline_mode<synchronous>, transform_indices = @transform_1, window_bounds = array<i64: 1, 128>}, {pipeline_mode = #tpu.pipeline_mode<synchronous>, transform_indices = @transform_2, window_bounds = array<i64: 1, 128>}, {transform_indices = @transform_3, window_bounds = array<i64: 1, 8, 8, 128>}]} {
    %c0 = arith.constant 0 : index
    %c0_0 = arith.constant 0 : index
    %c0_1 = arith.constant 0 : index
    %c0_2 = arith.constant 0 : index
    %0 = vector.load %arg2[%c0, %c0_0, %c0_1, %c0_2] : memref<1x8x8x128xf32, #tpu.memory_space<vmem>>, vector<1x8x8x128xf32>
    %1 = vector.shape_cast %0 : vector<1x8x8x128xf32> to vector<8x8x128xf32>
    %2 = vector.shape_cast %1 : vector<8x8x128xf32> to vector<64x128xf32>
    %c0_3 = arith.constant 0 : index
    %c0_4 = arith.constant 0 : index
    %3 = vector.load %arg3[%c0_3, %c0_4] : memref<1x128xf32, #tpu.memory_space<vmem>>, vector<1x128xf32>
    %4 = vector.broadcast %3 : vector<1x128xf32> to vector<64x128xf32>
    %5 = arith.mulf %2, %4 : vector<64x128xf32>
    %c0_5 = arith.constant 0 : index
    %c0_6 = arith.constant 0 : index
    %6 = vector.load %arg4[%c0_5, %c0_6] : memref<1x128xf32, #tpu.memory_space<vmem>>, vector<1x128xf32>
    %7 = vector.broadcast %6 : vector<1x128xf32> to vector<64x128xf32>
    %8 = arith.addf %5, %7 : vector<64x128xf32>
    %cst = arith.constant 0.000000e+00 : f32
    %9 = vector.broadcast %cst : f32 to vector<64x128xf32>
    %10 = arith.maximumf %8, %9 : vector<64x128xf32>
    %11 = vector.shape_cast %10 : vector<64x128xf32> to vector<8x8x128xf32>
    %12 = arith.truncf %11 : vector<8x8x128xf32> to vector<8x8x128xbf16>
    %c0_7 = arith.constant 0 : index
    %c0_8 = arith.constant 0 : index
    %c0_9 = arith.constant 0 : index
    %c0_10 = arith.constant 0 : index
    %13 = vector.load %arg5[%c0_7, %c0_8, %c0_9, %c0_10] : memref<1x8x8x128xbf16, #tpu.memory_space<vmem>>, vector<1x8x8x128xbf16>
    %14 = vector.shape_cast %13 : vector<1x8x8x128xbf16> to vector<8x8x128xbf16>
    %15 = vector.shape_cast %12 : vector<8x8x128xbf16> to vector<1x8x8x128xbf16>
    tpu.vector_store %arg5[%c0_7, %c0_8, %c0_9, %c0_10], %15 {strides = array<i32>} : memref<1x8x8x128xbf16, #tpu.memory_space<vmem>>, vector<1x8x8x128xbf16>,
    return
  }
  func.func @transform_0(%arg0: i32, %arg1: i32) -> (i32, i32, i32, i32) {
    %c0_i32 = arith.constant 0 : i32
    %c0_i32_0 = arith.constant 0 : i32
    %c0_i32_1 = arith.constant 0 : i32
    return %arg0, %arg1, %c0_i32, %c0_i32_0 : i32, i32, i32, i32
  }
  func.func @transform_1(%arg0: i32, %arg1: i32) -> (i32, i32) {
    %c0_i32 = arith.constant 0 : i32
    %c0_i32_0 = arith.constant 0 : i32
    %c0_i32_1 = arith.constant 0 : i32
    return %c0_i32, %c0_i32_0 : i32, i32
  }
  func.func @transform_2(%arg0: i32, %arg1: i32) -> (i32, i32) {
    %c0_i32 = arith.constant 0 : i32
    %c0_i32_0 = arith.constant 0 : i32
    %c0_i32_1 = arith.constant 0 : i32
    return %c0_i32, %c0_i32_0 : i32, i32
  }
  func.func @transform_3(%arg0: i32, %arg1: i32) -> (i32, i32, i32, i32) {
    %c0_i32 = arith.constant 0 : i32
    %c0_i32_0 = arith.constant 0 : i32
    %c0_i32_1 = arith.constant 0 : i32
    return %arg0, %arg1, %c0_i32, %c0_i32_0 : i32, i32, i32, i32
  }
}

module attributes {stable_mosaic.version = 11 : i64} {
  func.func @kernel(%arg0: i32, %arg1: i32, %arg2: memref<1x8x8x128xf32, #tpu.memory_space<vmem>>, %arg3: memref<1x128xf32, #tpu.memory_space<vmem>>, %arg4: memref<1x128xf32, #tpu.memory_space<vmem>>, %arg5: memref<1x8x8x128xbf16, #tpu.memory_space<vmem>>, %arg6: memref<128x128xbf16, #tpu.memory_space<vmem>>, %arg7: memref<1x8x8x128xbf16, #tpu.memory_space<vmem>>) attributes {dimension_semantics = [#tpu.dimension_semantics<parallel>, #tpu.dimension_semantics<parallel>], iteration_bounds = array<i64: 2, 1>, scalar_prefetch = 0 : i64, scratch_operands = 0 : i64, tpu.core_type = #tpu.core_type<tc>, window_params = [{transform_indices = @transform_0, window_bounds = array<i64: 1, 8, 8, 128>}, {pipeline_mode = #tpu.pipeline_mode<synchronous>, transform_indices = @transform_1, window_bounds = array<i64: 1, 128>}, {pipeline_mode = #tpu.pipeline_mode<synchronous>, transform_indices = @transform_2, window_bounds = array<i64: 1, 128>}, {transform_indices = @transform_3, window_bounds = array<i64: 1, 8, 8, 128>}, {pipeline_mode = #tpu.pipeline_mode<synchronous>, transform_indices = @transform_4, window_bounds = array<i64: 128, 128>}, {transform_indices = @transform_5, window_bounds = array<i64: 1, 8, 8, 128>}]} {
    %c0 = arith.constant 0 : index
    %c0_0 = arith.constant 0 : index
    %c0_1 = arith.constant 0 : index
    %c0_2 = arith.constant 0 : index
    %0 = vector.load %arg2[%c0, %c0_0, %c0_1, %c0_2] : memref<1x8x8x128xf32, #tpu.memory_space<vmem>>, vector<1x8x8x128xf32>
    %1 = vector.shape_cast %0 : vector<1x8x8x128xf32> to vector<8x8x128xf32>
    %2 = vector.shape_cast %1 : vector<8x8x128xf32> to vector<64x128xf32>
    %c0_3 = arith.constant 0 : index
    %c0_4 = arith.constant 0 : index
    %3 = vector.load %arg3[%c0_3, %c0_4] : memref<1x128xf32, #tpu.memory_space<vmem>>, vector<1x128xf32>
    %4 = vector.broadcast %3 : vector<1x128xf32> to vector<64x128xf32>
    %5 = arith.mulf %2, %4 : vector<64x128xf32>
    %c0_5 = arith.constant 0 : index
    %c0_6 = arith.constant 0 : index
    %6 = vector.load %arg4[%c0_5, %c0_6] : memref<1x128xf32, #tpu.memory_space<vmem>>, vector<1x128xf32>
    %7 = vector.broadcast %6 : vector<1x128xf32> to vector<64x128xf32>
    %8 = arith.addf %5, %7 : vector<64x128xf32>
    %c0_7 = arith.constant 0 : index
    %c0_8 = arith.constant 0 : index
    %c0_9 = arith.constant 0 : index
    %c0_10 = arith.constant 0 : index
    %9 = vector.load %arg5[%c0_7, %c0_8, %c0_9, %c0_10] : memref<1x8x8x128xbf16, #tpu.memory_space<vmem>>, vector<1x8x8x128xbf16>
    %10 = vector.shape_cast %9 : vector<1x8x8x128xbf16> to vector<8x8x128xbf16>
    %11 = vector.shape_cast %10 : vector<8x8x128xbf16> to vector<64x128xbf16>
    %c0_11 = arith.constant 0 : index
    %c0_12 = arith.constant 0 : index
    %12 = vector.load %arg6[%c0_11, %c0_12] : memref<128x128xbf16, #tpu.memory_space<vmem>>, vector<128x128xbf16>
    %cst = arith.constant dense<0.000000e+00> : vector<64x128xf32>
    %13 = tpu.matmul %11, %12, %cst {dimension_numbers = #tpu.dot_dimension_numbers<[1], [0], [0], [1], [0, 0, 1, 1], [], []>} : vector<64x128xbf16>, vector<128x128xbf16>, vector<64x128xf32> -> vector<64x128xf32>
    %14 = arith.addf %8, %13 : vector<64x128xf32>
    %cst_13 = arith.constant 0.000000e+00 : f32
    %15 = vector.broadcast %cst_13 : f32 to vector<64x128xf32>
    %16 = arith.maximumf %14, %15 : vector<64x128xf32>
    %17 = vector.shape_cast %16 : vector<64x128xf32> to vector<8x8x128xf32>
    %18 = arith.truncf %17 : vector<8x8x128xf32> to vector<8x8x128xbf16>
    %c0_14 = arith.constant 0 : index
    %c0_15 = arith.constant 0 : index
    %c0_16 = arith.constant 0 : index
    %c0_17 = arith.constant 0 : index
    %19 = vector.load %arg7[%c0_14, %c0_15, %c0_16, %c0_17] : memref<1x8x8x128xbf16, #tpu.memory_space<vmem>>, vector<1x8x8x128xbf16>
    %20 = vector.shape_cast %19 : vector<1x8x8x128xbf16> to vector<8x8x128xbf16>
    %21 = vector.shape_cast %18 : vector<8x8x128xbf16> to vector<1x8x8x128xbf16>
    tpu.vector_store %arg7[%c0_14, %c0_15, %c0_16, %c0_17], %21 {strides = array<i32>} : memref<1x8x8x128xbf16, #tpu.memory_space<vmem>>, vector<1x8x8x128xbf16>,
    return
  }
  func.func @transform_0(%arg0: i32, %arg1: i32) -> (i32, i32, i32, i32) {
    %c0_i32 = arith.constant 0 : i32
    %c0_i32_0 = arith.constant 0 : i32
    %c0_i32_1 = arith.constant 0 : i32
    return %arg0, %arg1, %c0_i32, %c0_i32_0 : i32, i32, i32, i32
  }
  func.func @transform_1(%arg0: i32, %arg1: i32) -> (i32, i32) {
    %c0_i32 = arith.constant 0 : i32
    %c0_i32_0 = arith.constant 0 : i32
    %c0_i32_1 = arith.constant 0 : i32
    return %c0_i32, %c0_i32_0 : i32, i32
  }
  func.func @transform_2(%arg0: i32, %arg1: i32) -> (i32, i32) {
    %c0_i32 = arith.constant 0 : i32
    %c0_i32_0 = arith.constant 0 : i32
    %c0_i32_1 = arith.constant 0 : i32
    return %c0_i32, %c0_i32_0 : i32, i32
  }
  func.func @transform_3(%arg0: i32, %arg1: i32) -> (i32, i32, i32, i32) {
    %c0_i32 = arith.constant 0 : i32
    %c0_i32_0 = arith.constant 0 : i32
    %c0_i32_1 = arith.constant 0 : i32
    return %arg0, %arg1, %c0_i32, %c0_i32_0 : i32, i32, i32, i32
  }
  func.func @transform_4(%arg0: i32, %arg1: i32) -> (i32, i32) {
    %c0_i32 = arith.constant 0 : i32
    %c0_i32_0 = arith.constant 0 : i32
    %c0_i32_1 = arith.constant 0 : i32
    return %c0_i32, %c0_i32_0 : i32, i32
  }
  func.func @transform_5(%arg0: i32, %arg1: i32) -> (i32, i32, i32, i32) {
    %c0_i32 = arith.constant 0 : i32
    %c0_i32_0 = arith.constant 0 : i32
    %c0_i32_1 = arith.constant 0 : i32
    return %arg0, %arg1, %c0_i32, %c0_i32_0 : i32, i32, i32, i32
  }
}

module attributes {stable_mosaic.version = 11 : i64} {
  func.func @kernel(%arg0: i32, %arg1: i32, %arg2: memref<1x10x10x128xbf16, #tpu.memory_space<vmem>>, %arg3: memref<3x3x128x128xbf16, #tpu.memory_space<vmem>>, %arg4: memref<1x8x8x128xf32, #tpu.memory_space<vmem>>, %arg5: memref<1x1x8x128xf32, #tpu.memory_space<vmem>>, %arg6: memref<64x128xf32, #tpu.memory_space<vmem>>) attributes {dimension_semantics = [#tpu.dimension_semantics<parallel>, #tpu.dimension_semantics<parallel>], iteration_bounds = array<i64: 2, 1>, scalar_prefetch = 0 : i64, scratch_operands = 1 : i64, tpu.core_type = #tpu.core_type<tc>, window_params = [{transform_indices = @transform_0, window_bounds = array<i64: 1, 10, 10, 128>}, {pipeline_mode = #tpu.pipeline_mode<synchronous>, transform_indices = @transform_1, window_bounds = array<i64: 3, 3, 128, 128>}, {transform_indices = @transform_2, window_bounds = array<i64: 1, 8, 8, 128>}, {transform_indices = @transform_3, window_bounds = array<i64: 1, 1, 8, 128>}]} {
    %c8_i32 = arith.constant 8 : i32
    %0 = arith.muli %arg1, %c8_i32 : i32
    %cst = arith.constant 0.000000e+00 : f32
    %1 = vector.broadcast %cst : f32 to vector<64x128xf32>
    %c0 = arith.constant 0 : index
    %c0_0 = arith.constant 0 : index
    %2 = vector.load %arg6[%c0, %c0_0] : memref<64x128xf32, #tpu.memory_space<vmem>>, vector<64x128xf32>
    tpu.vector_store %arg6[%c0, %c0_0], %1 {strides = array<i32>} : memref<64x128xf32, #tpu.memory_space<vmem>>, vector<64x128xf32>,
    %c0_i32 = arith.constant 0 : i32
    %3 = arith.addi %0, %c0_i32 : i32
    %c0_1 = arith.constant 0 : index
    %4 = arith.index_cast %3 : i32 to index
    %c0_2 = arith.constant 0 : index
    %c0_3 = arith.constant 0 : index
    %5 = vector.load %arg2[%c0_1, %4, %c0_2, %c0_3] : memref<1x10x10x128xbf16, #tpu.memory_space<vmem>>, vector<1x8x8x128xbf16>
    %6 = vector.shape_cast %5 : vector<1x8x8x128xbf16> to vector<8x8x128xbf16>
    %c0_4 = arith.constant 0 : index
    %c0_5 = arith.constant 0 : index
    %7 = vector.load %arg6[%c0_4, %c0_5] : memref<64x128xf32, #tpu.memory_space<vmem>>, vector<64x128xf32>
    %8 = vector.shape_cast %6 : vector<8x8x128xbf16> to vector<64x128xbf16>
    %c0_6 = arith.constant 0 : index
    %c0_7 = arith.constant 0 : index
    %c0_8 = arith.constant 0 : index
    %c0_9 = arith.constant 0 : index
    %9 = vector.load %arg3[%c0_6, %c0_7, %c0_8, %c0_9] : memref<3x3x128x128xbf16, #tpu.memory_space<vmem>>, vector<1x1x128x128xbf16>
    %10 = vector.shape_cast %9 : vector<1x1x128x128xbf16> to vector<128x128xbf16>
    %cst_10 = arith.constant dense<0.000000e+00> : vector<64x128xf32>
    %11 = tpu.matmul %8, %10, %cst_10 {dimension_numbers = #tpu.dot_dimension_numbers<[1], [0], [0], [1], [0, 0, 1, 1], [], []>} : vector<64x128xbf16>, vector<128x128xbf16>, vector<64x128xf32> -> vector<64x128xf32>
    %12 = arith.addf %7, %11 : vector<64x128xf32>
    %c0_11 = arith.constant 0 : index
    %c0_12 = arith.constant 0 : index
    %13 = vector.load %arg6[%c0_11, %c0_12] : memref<64x128xf32, #tpu.memory_space<vmem>>, vector<64x128xf32>
    tpu.vector_store %arg6[%c0_11, %c0_12], %12 {strides = array<i32>} : memref<64x128xf32, #tpu.memory_space<vmem>>, vector<64x128xf32>,
    %c0_i32_13 = arith.constant 0 : i32
    %14 = arith.addi %0, %c0_i32_13 : i32
    %c0_14 = arith.constant 0 : index
    %15 = arith.index_cast %14 : i32 to index
    %c1 = arith.constant 1 : index
    %c0_15 = arith.constant 0 : index
    %16 = vector.load %arg2[%c0_14, %15, %c1, %c0_15] : memref<1x10x10x128xbf16, #tpu.memory_space<vmem>>, vector<1x8x8x128xbf16>
    %17 = vector.shape_cast %16 : vector<1x8x8x128xbf16> to vector<8x8x128xbf16>
    %c0_16 = arith.constant 0 : index
    %c0_17 = arith.constant 0 : index
    %18 = vector.load %arg6[%c0_16, %c0_17] : memref<64x128xf32, #tpu.memory_space<vmem>>, vector<64x128xf32>
    %19 = vector.shape_cast %17 : vector<8x8x128xbf16> to vector<64x128xbf16>
    %c0_18 = arith.constant 0 : index
    %c1_19 = arith.constant 1 : index
    %c0_20 = arith.constant 0 : index
    %c0_21 = arith.constant 0 : index
    %20 = vector.load %arg3[%c0_18, %c1_19, %c0_20, %c0_21] : memref<3x3x128x128xbf16, #tpu.memory_space<vmem>>, vector<1x1x128x128xbf16>
    %21 = vector.shape_cast %20 : vector<1x1x128x128xbf16> to vector<128x128xbf16>
    %cst_22 = arith.constant dense<0.000000e+00> : vector<64x128xf32>
    %22 = tpu.matmul %19, %21, %cst_22 {dimension_numbers = #tpu.dot_dimension_numbers<[1], [0], [0], [1], [0, 0, 1, 1], [], []>} : vector<64x128xbf16>, vector<128x128xbf16>, vector<64x128xf32> -> vector<64x128xf32>
    %23 = arith.addf %18, %22 : vector<64x128xf32>
    %c0_23 = arith.constant 0 : index
    %c0_24 = arith.constant 0 : index
    %24 = vector.load %arg6[%c0_23, %c0_24] : memref<64x128xf32, #tpu.memory_space<vmem>>, vector<64x128xf32>
    tpu.vector_store %arg6[%c0_23, %c0_24], %23 {strides = array<i32>} : memref<64x128xf32, #tpu.memory_space<vmem>>, vector<64x128xf32>,
    %c0_i32_25 = arith.constant 0 : i32
    %25 = arith.addi %0, %c0_i32_25 : i32
    %c0_26 = arith.constant 0 : index
    %26 = arith.index_cast %25 : i32 to index
    %c2 = arith.constant 2 : index
    %c0_27 = arith.constant 0 : index
    %27 = vector.load %arg2[%c0_26, %26, %c2, %c0_27] : memref<1x10x10x128xbf16, #tpu.memory_space<vmem>>, vector<1x8x8x128xbf16>
    %28 = vector.shape_cast %27 : vector<1x8x8x128xbf16> to vector<8x8x128xbf16>
    %c0_28 = arith.constant 0 : index
    %c0_29 = arith.constant 0 : index
    %29 = vector.load %arg6[%c0_28, %c0_29] : memref<64x128xf32, #tpu.memory_space<vmem>>, vector<64x128xf32>
    %30 = vector.shape_cast %28 : vector<8x8x128xbf16> to vector<64x128xbf16>
    %c0_30 = arith.constant 0 : index
    %c2_31 = arith.constant 2 : index
    %c0_32 = arith.constant 0 : index
    %c0_33 = arith.constant 0 : index
    %31 = vector.load %arg3[%c0_30, %c2_31, %c0_32, %c0_33] : memref<3x3x128x128xbf16, #tpu.memory_space<vmem>>, vector<1x1x128x128xbf16>
    %32 = vector.shape_cast %31 : vector<1x1x128x128xbf16> to vector<128x128xbf16>
    %cst_34 = arith.constant dense<0.000000e+00> : vector<64x128xf32>
    %33 = tpu.matmul %30, %32, %cst_34 {dimension_numbers = #tpu.dot_dimension_numbers<[1], [0], [0], [1], [0, 0, 1, 1], [], []>} : vector<64x128xbf16>, vector<128x128xbf16>, vector<64x128xf32> -> vector<64x128xf32>
    %34 = arith.addf %29, %33 : vector<64x128xf32>
    %c0_35 = arith.constant 0 : index
    %c0_36 = arith.constant 0 : index
    %35 = vector.load %arg6[%c0_35, %c0_36] : memref<64x128xf32, #tpu.memory_space<vmem>>, vector<64x128xf32>
    tpu.vector_store %arg6[%c0_35, %c0_36], %34 {strides = array<i32>} : memref<64x128xf32, #tpu.memory_space<vmem>>, vector<64x128xf32>,
    %c1_i32 = arith.constant 1 : i32
    %36 = arith.addi %0, %c1_i32 : i32
    %c0_37 = arith.constant 0 : index
    %37 = arith.index_cast %36 : i32 to index
    %c0_38 = arith.constant 0 : index
    %c0_39 = arith.constant 0 : index
    %38 = vector.load %arg2[%c0_37, %37, %c0_38, %c0_39] : memref<1x10x10x128xbf16, #tpu.memory_space<vmem>>, vector<1x8x8x128xbf16>
    %39 = vector.shape_cast %38 : vector<1x8x8x128xbf16> to vector<8x8x128xbf16>
    %c0_40 = arith.constant 0 : index
    %c0_41 = arith.constant 0 : index
    %40 = vector.load %arg6[%c0_40, %c0_41] : memref<64x128xf32, #tpu.memory_space<vmem>>, vector<64x128xf32>
    %41 = vector.shape_cast %39 : vector<8x8x128xbf16> to vector<64x128xbf16>
    %c1_42 = arith.constant 1 : index
    %c0_43 = arith.constant 0 : index
    %c0_44 = arith.constant 0 : index
    %c0_45 = arith.constant 0 : index
    %42 = vector.load %arg3[%c1_42, %c0_43, %c0_44, %c0_45] : memref<3x3x128x128xbf16, #tpu.memory_space<vmem>>, vector<1x1x128x128xbf16>
    %43 = vector.shape_cast %42 : vector<1x1x128x128xbf16> to vector<128x128xbf16>
    %cst_46 = arith.constant dense<0.000000e+00> : vector<64x128xf32>
    %44 = tpu.matmul %41, %43, %cst_46 {dimension_numbers = #tpu.dot_dimension_numbers<[1], [0], [0], [1], [0, 0, 1, 1], [], []>} : vector<64x128xbf16>, vector<128x128xbf16>, vector<64x128xf32> -> vector<64x128xf32>
    %45 = arith.addf %40, %44 : vector<64x128xf32>
    %c0_47 = arith.constant 0 : index
    %c0_48 = arith.constant 0 : index
    %46 = vector.load %arg6[%c0_47, %c0_48] : memref<64x128xf32, #tpu.memory_space<vmem>>, vector<64x128xf32>
    tpu.vector_store %arg6[%c0_47, %c0_48], %45 {strides = array<i32>} : memref<64x128xf32, #tpu.memory_space<vmem>>, vector<64x128xf32>,
    %c1_i32_49 = arith.constant 1 : i32
    %47 = arith.addi %0, %c1_i32_49 : i32
    %c0_50 = arith.constant 0 : index
    %48 = arith.index_cast %47 : i32 to index
    %c1_51 = arith.constant 1 : index
    %c0_52 = arith.constant 0 : index
    %49 = vector.load %arg2[%c0_50, %48, %c1_51, %c0_52] : memref<1x10x10x128xbf16, #tpu.memory_space<vmem>>, vector<1x8x8x128xbf16>
    %50 = vector.shape_cast %49 : vector<1x8x8x128xbf16> to vector<8x8x128xbf16>
    %c0_53 = arith.constant 0 : index
    %c0_54 = arith.constant 0 : index
    %51 = vector.load %arg6[%c0_53, %c0_54] : memref<64x128xf32, #tpu.memory_space<vmem>>, vector<64x128xf32>
    %52 = vector.shape_cast %50 : vector<8x8x128xbf16> to vector<64x128xbf16>
    %c1_55 = arith.constant 1 : index
    %c1_56 = arith.constant 1 : index
    %c0_57 = arith.constant 0 : index
    %c0_58 = arith.constant 0 : index
    %53 = vector.load %arg3[%c1_55, %c1_56, %c0_57, %c0_58] : memref<3x3x128x128xbf16, #tpu.memory_space<vmem>>, vector<1x1x128x128xbf16>
    %54 = vector.shape_cast %53 : vector<1x1x128x128xbf16> to vector<128x128xbf16>
    %cst_59 = arith.constant dense<0.000000e+00> : vector<64x128xf32>
    %55 = tpu.matmul %52, %54, %cst_59 {dimension_numbers = #tpu.dot_dimension_numbers<[1], [0], [0], [1], [0, 0, 1, 1], [], []>} : vector<64x128xbf16>, vector<128x128xbf16>, vector<64x128xf32> -> vector<64x128xf32>
    %56 = arith.addf %51, %55 : vector<64x128xf32>
    %c0_60 = arith.constant 0 : index
    %c0_61 = arith.constant 0 : index
    %57 = vector.load %arg6[%c0_60, %c0_61] : memref<64x128xf32, #tpu.memory_space<vmem>>, vector<64x128xf32>
    tpu.vector_store %arg6[%c0_60, %c0_61], %56 {strides = array<i32>} : memref<64x128xf32, #tpu.memory_space<vmem>>, vector<64x128xf32>,
    %c1_i32_62 = arith.constant 1 : i32
    %58 = arith.addi %0, %c1_i32_62 : i32
    %c0_63 = arith.constant 0 : index
    %59 = arith.index_cast %58 : i32 to index
    %c2_64 = arith.constant 2 : index
    %c0_65 = arith.constant 0 : index
    %60 = vector.load %arg2[%c0_63, %59, %c2_64, %c0_65] : memref<1x10x10x128xbf16, #tpu.memory_space<vmem>>, vector<1x8x8x128xbf16>
    %61 = vector.shape_cast %60 : vector<1x8x8x128xbf16> to vector<8x8x128xbf16>
    %c0_66 = arith.constant 0 : index
    %c0_67 = arith.constant 0 : index
    %62 = vector.load %arg6[%c0_66, %c0_67] : memref<64x128xf32, #tpu.memory_space<vmem>>, vector<64x128xf32>
    %63 = vector.shape_cast %61 : vector<8x8x128xbf16> to vector<64x128xbf16>
    %c1_68 = arith.constant 1 : index
    %c2_69 = arith.constant 2 : index
    %c0_70 = arith.constant 0 : index
    %c0_71 = arith.constant 0 : index
    %64 = vector.load %arg3[%c1_68, %c2_69, %c0_70, %c0_71] : memref<3x3x128x128xbf16, #tpu.memory_space<vmem>>, vector<1x1x128x128xbf16>
    %65 = vector.shape_cast %64 : vector<1x1x128x128xbf16> to vector<128x128xbf16>
    %cst_72 = arith.constant dense<0.000000e+00> : vector<64x128xf32>
    %66 = tpu.matmul %63, %65, %cst_72 {dimension_numbers = #tpu.dot_dimension_numbers<[1], [0], [0], [1], [0, 0, 1, 1], [], []>} : vector<64x128xbf16>, vector<128x128xbf16>, vector<64x128xf32> -> vector<64x128xf32>
    %67 = arith.addf %62, %66 : vector<64x128xf32>
    %c0_73 = arith.constant 0 : index
    %c0_74 = arith.constant 0 : index
    %68 = vector.load %arg6[%c0_73, %c0_74] : memref<64x128xf32, #tpu.memory_space<vmem>>, vector<64x128xf32>
    tpu.vector_store %arg6[%c0_73, %c0_74], %67 {strides = array<i32>} : memref<64x128xf32, #tpu.memory_space<vmem>>, vector<64x128xf32>,
    %c2_i32 = arith.constant 2 : i32
    %69 = arith.addi %0, %c2_i32 : i32
    %c0_75 = arith.constant 0 : index
    %70 = arith.index_cast %69 : i32 to index
    %c0_76 = arith.constant 0 : index
    %c0_77 = arith.constant 0 : index
    %71 = vector.load %arg2[%c0_75, %70, %c0_76, %c0_77] : memref<1x10x10x128xbf16, #tpu.memory_space<vmem>>, vector<1x8x8x128xbf16>
    %72 = vector.shape_cast %71 : vector<1x8x8x128xbf16> to vector<8x8x128xbf16>
    %c0_78 = arith.constant 0 : index
    %c0_79 = arith.constant 0 : index
    %73 = vector.load %arg6[%c0_78, %c0_79] : memref<64x128xf32, #tpu.memory_space<vmem>>, vector<64x128xf32>
    %74 = vector.shape_cast %72 : vector<8x8x128xbf16> to vector<64x128xbf16>
    %c2_80 = arith.constant 2 : index
    %c0_81 = arith.constant 0 : index
    %c0_82 = arith.constant 0 : index
    %c0_83 = arith.constant 0 : index
    %75 = vector.load %arg3[%c2_80, %c0_81, %c0_82, %c0_83] : memref<3x3x128x128xbf16, #tpu.memory_space<vmem>>, vector<1x1x128x128xbf16>
    %76 = vector.shape_cast %75 : vector<1x1x128x128xbf16> to vector<128x128xbf16>
    %cst_84 = arith.constant dense<0.000000e+00> : vector<64x128xf32>
    %77 = tpu.matmul %74, %76, %cst_84 {dimension_numbers = #tpu.dot_dimension_numbers<[1], [0], [0], [1], [0, 0, 1, 1], [], []>} : vector<64x128xbf16>, vector<128x128xbf16>, vector<64x128xf32> -> vector<64x128xf32>
    %78 = arith.addf %73, %77 : vector<64x128xf32>
    %c0_85 = arith.constant 0 : index
    %c0_86 = arith.constant 0 : index
    %79 = vector.load %arg6[%c0_85, %c0_86] : memref<64x128xf32, #tpu.memory_space<vmem>>, vector<64x128xf32>
    tpu.vector_store %arg6[%c0_85, %c0_86], %78 {strides = array<i32>} : memref<64x128xf32, #tpu.memory_space<vmem>>, vector<64x128xf32>,
    %c2_i32_87 = arith.constant 2 : i32
    %80 = arith.addi %0, %c2_i32_87 : i32
    %c0_88 = arith.constant 0 : index
    %81 = arith.index_cast %80 : i32 to index
    %c1_89 = arith.constant 1 : index
    %c0_90 = arith.constant 0 : index
    %82 = vector.load %arg2[%c0_88, %81, %c1_89, %c0_90] : memref<1x10x10x128xbf16, #tpu.memory_space<vmem>>, vector<1x8x8x128xbf16>
    %83 = vector.shape_cast %82 : vector<1x8x8x128xbf16> to vector<8x8x128xbf16>
    %c0_91 = arith.constant 0 : index
    %c0_92 = arith.constant 0 : index
    %84 = vector.load %arg6[%c0_91, %c0_92] : memref<64x128xf32, #tpu.memory_space<vmem>>, vector<64x128xf32>
    %85 = vector.shape_cast %83 : vector<8x8x128xbf16> to vector<64x128xbf16>
    %c2_93 = arith.constant 2 : index
    %c1_94 = arith.constant 1 : index
    %c0_95 = arith.constant 0 : index
    %c0_96 = arith.constant 0 : index
    %86 = vector.load %arg3[%c2_93, %c1_94, %c0_95, %c0_96] : memref<3x3x128x128xbf16, #tpu.memory_space<vmem>>, vector<1x1x128x128xbf16>
    %87 = vector.shape_cast %86 : vector<1x1x128x128xbf16> to vector<128x128xbf16>
    %cst_97 = arith.constant dense<0.000000e+00> : vector<64x128xf32>
    %88 = tpu.matmul %85, %87, %cst_97 {dimension_numbers = #tpu.dot_dimension_numbers<[1], [0], [0], [1], [0, 0, 1, 1], [], []>} : vector<64x128xbf16>, vector<128x128xbf16>, vector<64x128xf32> -> vector<64x128xf32>
    %89 = arith.addf %84, %88 : vector<64x128xf32>
    %c0_98 = arith.constant 0 : index
    %c0_99 = arith.constant 0 : index
    %90 = vector.load %arg6[%c0_98, %c0_99] : memref<64x128xf32, #tpu.memory_space<vmem>>, vector<64x128xf32>
    tpu.vector_store %arg6[%c0_98, %c0_99], %89 {strides = array<i32>} : memref<64x128xf32, #tpu.memory_space<vmem>>, vector<64x128xf32>,
    %c2_i32_100 = arith.constant 2 : i32
    %91 = arith.addi %0, %c2_i32_100 : i32
    %c0_101 = arith.constant 0 : index
    %92 = arith.index_cast %91 : i32 to index
    %c2_102 = arith.constant 2 : index
    %c0_103 = arith.constant 0 : index
    %93 = vector.load %arg2[%c0_101, %92, %c2_102, %c0_103] : memref<1x10x10x128xbf16, #tpu.memory_space<vmem>>, vector<1x8x8x128xbf16>
    %94 = vector.shape_cast %93 : vector<1x8x8x128xbf16> to vector<8x8x128xbf16>
    %c0_104 = arith.constant 0 : index
    %c0_105 = arith.constant 0 : index
    %95 = vector.load %arg6[%c0_104, %c0_105] : memref<64x128xf32, #tpu.memory_space<vmem>>, vector<64x128xf32>
    %96 = vector.shape_cast %94 : vector<8x8x128xbf16> to vector<64x128xbf16>
    %c2_106 = arith.constant 2 : index
    %c2_107 = arith.constant 2 : index
    %c0_108 = arith.constant 0 : index
    %c0_109 = arith.constant 0 : index
    %97 = vector.load %arg3[%c2_106, %c2_107, %c0_108, %c0_109] : memref<3x3x128x128xbf16, #tpu.memory_space<vmem>>, vector<1x1x128x128xbf16>
    %98 = vector.shape_cast %97 : vector<1x1x128x128xbf16> to vector<128x128xbf16>
    %cst_110 = arith.constant dense<0.000000e+00> : vector<64x128xf32>
    %99 = tpu.matmul %96, %98, %cst_110 {dimension_numbers = #tpu.dot_dimension_numbers<[1], [0], [0], [1], [0, 0, 1, 1], [], []>} : vector<64x128xbf16>, vector<128x128xbf16>, vector<64x128xf32> -> vector<64x128xf32>
    %100 = arith.addf %95, %99 : vector<64x128xf32>
    %c0_111 = arith.constant 0 : index
    %c0_112 = arith.constant 0 : index
    %101 = vector.load %arg6[%c0_111, %c0_112] : memref<64x128xf32, #tpu.memory_space<vmem>>, vector<64x128xf32>
    tpu.vector_store %arg6[%c0_111, %c0_112], %100 {strides = array<i32>} : memref<64x128xf32, #tpu.memory_space<vmem>>, vector<64x128xf32>,
    %c0_113 = arith.constant 0 : index
    %c0_114 = arith.constant 0 : index
    %102 = vector.load %arg6[%c0_113, %c0_114] : memref<64x128xf32, #tpu.memory_space<vmem>>, vector<64x128xf32>
    %103 = vector.shape_cast %102 : vector<64x128xf32> to vector<8x8x128xf32>
    %c0_115 = arith.constant 0 : index
    %c0_116 = arith.constant 0 : index
    %c0_117 = arith.constant 0 : index
    %c0_118 = arith.constant 0 : index
    %104 = vector.load %arg4[%c0_115, %c0_116, %c0_117, %c0_118] : memref<1x8x8x128xf32, #tpu.memory_space<vmem>>, vector<1x8x8x128xf32>
    %105 = vector.shape_cast %104 : vector<1x8x8x128xf32> to vector<8x8x128xf32>
    %106 = vector.shape_cast %103 : vector<8x8x128xf32> to vector<1x8x8x128xf32>
    tpu.vector_store %arg4[%c0_115, %c0_116, %c0_117, %c0_118], %106 {strides = array<i32>} : memref<1x8x8x128xf32, #tpu.memory_space<vmem>>, vector<1x8x8x128xf32>,
    %cst_119 = arith.constant dense<0.000000e+00> : vector<128xf32>
    %107 = vector.multi_reduction <add>, %102, %cst_119 [0] : vector<64x128xf32> to vector<128xf32>
    %108 = vector.shape_cast %107 : vector<128xf32> to vector<1x128xf32>
    %109 = arith.mulf %102, %102 : vector<64x128xf32>
    %cst_120 = arith.constant dense<0.000000e+00> : vector<128xf32>
    %110 = vector.multi_reduction <add>, %109, %cst_120 [0] : vector<64x128xf32> to vector<128xf32>
    %111 = vector.shape_cast %110 : vector<128xf32> to vector<1x128xf32>
    %cst_121 = arith.constant 0.000000e+00 : f32
    %112 = vector.broadcast %cst_121 : f32 to vector<6x128xf32>
    %113 = tpu.concatenate %108, %111, %112 in 0 : vector<1x128xf32>, vector<1x128xf32>, vector<6x128xf32> -> vector<8x128xf32>
    %c0_122 = arith.constant 0 : index
    %c0_123 = arith.constant 0 : index
    %c0_124 = arith.constant 0 : index
    %c0_125 = arith.constant 0 : index
    %114 = vector.load %arg5[%c0_122, %c0_123, %c0_124, %c0_125] : memref<1x1x8x128xf32, #tpu.memory_space<vmem>>, vector<1x1x8x128xf32>
    %115 = vector.shape_cast %114 : vector<1x1x8x128xf32> to vector<8x128xf32>
    %116 = vector.shape_cast %113 : vector<8x128xf32> to vector<1x1x8x128xf32>
    tpu.vector_store %arg5[%c0_122, %c0_123, %c0_124, %c0_125], %116 {strides = array<i32>} : memref<1x1x8x128xf32, #tpu.memory_space<vmem>>, vector<1x1x8x128xf32>,
    return
  }
  func.func @transform_0(%arg0: i32, %arg1: i32) -> (i32, i32, i32, i32) {
    %c0_i32 = arith.constant 0 : i32
    %c0_i32_0 = arith.constant 0 : i32
    %c0_i32_1 = arith.constant 0 : i32
    %c0_i32_2 = arith.constant 0 : i32
    return %arg0, %c0_i32, %c0_i32_0, %c0_i32_1 : i32, i32, i32, i32
  }
  func.func @transform_1(%arg0: i32, %arg1: i32) -> (i32, i32, i32, i32) {
    %c0_i32 = arith.constant 0 : i32
    %c0_i32_0 = arith.constant 0 : i32
    %c0_i32_1 = arith.constant 0 : i32
    %c0_i32_2 = arith.constant 0 : i32
    %c0_i32_3 = arith.constant 0 : i32
    return %c0_i32, %c0_i32_0, %c0_i32_1, %c0_i32_2 : i32, i32, i32, i32
  }
  func.func @transform_2(%arg0: i32, %arg1: i32) -> (i32, i32, i32, i32) {
    %c0_i32 = arith.constant 0 : i32
    %c0_i32_0 = arith.constant 0 : i32
    %c0_i32_1 = arith.constant 0 : i32
    return %arg0, %arg1, %c0_i32, %c0_i32_0 : i32, i32, i32, i32
  }
  func.func @transform_3(%arg0: i32, %arg1: i32) -> (i32, i32, i32, i32) {
    %c0_i32 = arith.constant 0 : i32
    %c0_i32_0 = arith.constant 0 : i32
    %c0_i32_1 = arith.constant 0 : i32
    return %arg0, %arg1, %c0_i32, %c0_i32_0 : i32, i32, i32, i32
  }
}

module attributes {stable_mosaic.version = 11 : i64} {
  func.func @kernel(%arg0: i32, %arg1: i32, %arg2: memref<1x8x8x128xf32, #tpu.memory_space<vmem>>, %arg3: memref<1x128xf32, #tpu.memory_space<vmem>>, %arg4: memref<1x128xf32, #tpu.memory_space<vmem>>, %arg5: memref<1x8x8x128xbf16, #tpu.memory_space<vmem>>, %arg6: memref<1x8x8x128xbf16, #tpu.memory_space<vmem>>) attributes {dimension_semantics = [#tpu.dimension_semantics<parallel>, #tpu.dimension_semantics<parallel>], iteration_bounds = array<i64: 2, 1>, scalar_prefetch = 0 : i64, scratch_operands = 0 : i64, tpu.core_type = #tpu.core_type<tc>, window_params = [{transform_indices = @transform_0, window_bounds = array<i64: 1, 8, 8, 128>}, {pipeline_mode = #tpu.pipeline_mode<synchronous>, transform_indices = @transform_1, window_bounds = array<i64: 1, 128>}, {pipeline_mode = #tpu.pipeline_mode<synchronous>, transform_indices = @transform_2, window_bounds = array<i64: 1, 128>}, {transform_indices = @transform_3, window_bounds = array<i64: 1, 8, 8, 128>}, {transform_indices = @transform_4, window_bounds = array<i64: 1, 8, 8, 128>}]} {
    %c0 = arith.constant 0 : index
    %c0_0 = arith.constant 0 : index
    %c0_1 = arith.constant 0 : index
    %c0_2 = arith.constant 0 : index
    %0 = vector.load %arg2[%c0, %c0_0, %c0_1, %c0_2] : memref<1x8x8x128xf32, #tpu.memory_space<vmem>>, vector<1x8x8x128xf32>
    %1 = vector.shape_cast %0 : vector<1x8x8x128xf32> to vector<8x8x128xf32>
    %2 = vector.shape_cast %1 : vector<8x8x128xf32> to vector<64x128xf32>
    %c0_3 = arith.constant 0 : index
    %c0_4 = arith.constant 0 : index
    %3 = vector.load %arg3[%c0_3, %c0_4] : memref<1x128xf32, #tpu.memory_space<vmem>>, vector<1x128xf32>
    %4 = vector.broadcast %3 : vector<1x128xf32> to vector<64x128xf32>
    %5 = arith.mulf %2, %4 : vector<64x128xf32>
    %c0_5 = arith.constant 0 : index
    %c0_6 = arith.constant 0 : index
    %6 = vector.load %arg4[%c0_5, %c0_6] : memref<1x128xf32, #tpu.memory_space<vmem>>, vector<1x128xf32>
    %7 = vector.broadcast %6 : vector<1x128xf32> to vector<64x128xf32>
    %8 = arith.addf %5, %7 : vector<64x128xf32>
    %c0_7 = arith.constant 0 : index
    %c0_8 = arith.constant 0 : index
    %c0_9 = arith.constant 0 : index
    %c0_10 = arith.constant 0 : index
    %9 = vector.load %arg5[%c0_7, %c0_8, %c0_9, %c0_10] : memref<1x8x8x128xbf16, #tpu.memory_space<vmem>>, vector<1x8x8x128xbf16>
    %10 = vector.shape_cast %9 : vector<1x8x8x128xbf16> to vector<8x8x128xbf16>
    %11 = vector.shape_cast %10 : vector<8x8x128xbf16> to vector<64x128xbf16>
    %12 = arith.extf %11 : vector<64x128xbf16> to vector<64x128xf32>
    %13 = arith.addf %8, %12 : vector<64x128xf32>
    %cst = arith.constant 0.000000e+00 : f32
    %14 = vector.broadcast %cst : f32 to vector<64x128xf32>
    %15 = arith.maximumf %13, %14 : vector<64x128xf32>
    %16 = vector.shape_cast %15 : vector<64x128xf32> to vector<8x8x128xf32>
    %17 = arith.truncf %16 : vector<8x8x128xf32> to vector<8x8x128xbf16>
    %c0_11 = arith.constant 0 : index
    %c0_12 = arith.constant 0 : index
    %c0_13 = arith.constant 0 : index
    %c0_14 = arith.constant 0 : index
    %18 = vector.load %arg6[%c0_11, %c0_12, %c0_13, %c0_14] : memref<1x8x8x128xbf16, #tpu.memory_space<vmem>>, vector<1x8x8x128xbf16>
    %19 = vector.shape_cast %18 : vector<1x8x8x128xbf16> to vector<8x8x128xbf16>
    %20 = vector.shape_cast %17 : vector<8x8x128xbf16> to vector<1x8x8x128xbf16>
    tpu.vector_store %arg6[%c0_11, %c0_12, %c0_13, %c0_14], %20 {strides = array<i32>} : memref<1x8x8x128xbf16, #tpu.memory_space<vmem>>, vector<1x8x8x128xbf16>,
    return
  }
  func.func @transform_0(%arg0: i32, %arg1: i32) -> (i32, i32, i32, i32) {
    %c0_i32 = arith.constant 0 : i32
    %c0_i32_0 = arith.constant 0 : i32
    %c0_i32_1 = arith.constant 0 : i32
    return %arg0, %arg1, %c0_i32, %c0_i32_0 : i32, i32, i32, i32
  }
  func.func @transform_1(%arg0: i32, %arg1: i32) -> (i32, i32) {
    %c0_i32 = arith.constant 0 : i32
    %c0_i32_0 = arith.constant 0 : i32
    %c0_i32_1 = arith.constant 0 : i32
    return %c0_i32, %c0_i32_0 : i32, i32
  }
  func.func @transform_2(%arg0: i32, %arg1: i32) -> (i32, i32) {
    %c0_i32 = arith.constant 0 : i32
    %c0_i32_0 = arith.constant 0 : i32
    %c0_i32_1 = arith.constant 0 : i32
    return %c0_i32, %c0_i32_0 : i32, i32
  }
  func.func @transform_3(%arg0: i32, %arg1: i32) -> (i32, i32, i32, i32) {
    %c0_i32 = arith.constant 0 : i32
    %c0_i32_0 = arith.constant 0 : i32
    %c0_i32_1 = arith.constant 0 : i32
    return %arg0, %arg1, %c0_i32, %c0_i32_0 : i32, i32, i32, i32
  }
  func.func @transform_4(%arg0: i32, %arg1: i32) -> (i32, i32, i32, i32) {
    %c0_i32 = arith.constant 0 : i32
    %c0_i32_0 = arith.constant 0 : i32
    %c0_i32_1 = arith.constant 0 : i32
    return %arg0, %arg1, %c0_i32, %c0_i32_0 : i32, i32, i32, i32
  }
}

</mosaic_0001>

<bundles_post_ra>
// kernel: _lambda_.9
= control target key start
LH: loop header
LB: loop body
LE: loop exit
PB: predicated region body
PF: predicated region fallthrough
CT: control target
= control target key end

     0   :  { %s459_s12 = smov 0   ;;  %s461_s13 = smov 0   ;;  %s502_s0 = inlined_call_operand.vmem [shape: f32[2,8,8,128], index: 0, kind: input, shape index: {}]   ;;  %s503_s1 = inlined_call_operand.vmem [shape: f32[1,128], index: 1, kind: input, shape index: {}]   ;;  %s504_s2 = inlined_call_operand.vmem [shape: f32[1,128], index: 2, kind: input, shape index: {}]   ;;  %s505_s3 = inlined_call_operand.vmem [shape: bf16[2,8,8,128], index: 3, kind: output, shape index: {}]  }
   0x1   :  { %s463_s14 = smov 0  }
   0x2 LB: > { %s25_s15 = sadd.s32 1, %s433_s13  ;;  %p357_p0 = scmp.ge.s32.totalorder %s437_s14, 1  ;;  %s437_s14 = sphi %s463_s14, %s13_s14   ;;  %s433_s13 = sphi %s461_s13, %s507_s13   ;;  %s429_s12 = sphi %s459_s12, %s506_s12  }
   0x3   : > { %p27_p1 = scmp.ge.s32.totalorder %s25_s15, 2  ;;  %p158_p2 = scmp.lt.s32.totalorder %s437_s14, 3 }
   0x5   : > { %s509_s15 = smov (%p27_p1, %s25_s15), 0  ;;  %p159_p3 = pnand %p357_p0, %p158_p2 }
   0x6   : > { %p191_p4 = scmp.lt.s32.totalorder (!%p159_p3), %s429_s12, 1 }
   0x7   : > { %162 = sbr.rel (%p159_p3) target bundleno = 28 (0x1c), region = 32 }
   0xc   : > { %s511_s12 = smov (!%p191_p4, %s429_s12), 1  ;;  %v413_v0 = vld [vmem:[%s503_s1] ss:$0 sm:$0xff] }
   0xd   : > { %s364_s18 = sshll.u32 %s511_s12, 6  ;;  %v414_v1 = vld [vmem:[%s504_s2] ss:$0 sm:$0xff]  ;;  %s365_s24 = sshll.u32 %s511_s12, 5 }
   0xe   : > { %s198_s21 = scalar_lea.vmem %s502_s0, %s364_s18  ;;  %s208_s27 = scalar_lea.vmem %s505_s3, %s365_s24 }
   0xf   : > { %v210_v2 = vld [vmem:[%s198_s21] sm:$0xff]  ;;  %v211_v3 = vld [vmem:[%s198_s21 + $0x8] sm:$0xff]  ;;  %v212_v4 = vld [vmem:[%s198_s21 + $0x10] sm:$0xff] }
  0x10   : > { %v222_v5 = vmul.f32 %v413_v0, %v210_v2  ;;  %v223_v6 = vmul.f32 %v413_v0, %v211_v3  ;;  %v213_v7 = vld [vmem:[%s198_s21 + $0x18] sm:$0xff]  ;;  %v224_v8 = vmul.f32 %v413_v0, %v212_v4  ;;  %v214_v9 = vld [vmem:[%s198_s21 + $0x20] sm:$0xff]  ;;  %v215_v10 = vld [vmem:[%s198_s21 + $0x28] sm:$0xff] }
  0x11   : > { %v225_v11 = vmul.f32 %v413_v0, %v213_v7  ;;  %v226_v12 = vmul.f32 %v413_v0, %v214_v9  ;;  %v227_v13 = vmul.f32 %v413_v0, %v215_v10  ;;  %v216_v14 = vld [vmem:[%s198_s21 + $0x30] sm:$0xff]  ;;  %v217_v15 = vld [vmem:[%s198_s21 + $0x38] sm:$0xff] }
  0x12   : > { %v234_v16 = vadd.f32 %v414_v1, %v222_v5  ;;  %v235_v17 = vadd.f32 %v414_v1, %v223_v6  ;;  %v236_v18 = vadd.f32 %v414_v1, %v224_v8  ;;  %v228_v19 = vmul.f32 %v413_v0, %v216_v14 }
  0x13   : > { %v237_v20 = vadd.f32 %v414_v1, %v225_v11  ;;  %v238_v21 = vadd.f32 %v414_v1, %v226_v12  ;;  %v239_v22 = vadd.f32 %v414_v1, %v227_v13  ;;  %v229_v23 = vmul.f32 %v413_v0, %v217_v15 }
  0x14   : > { %v242_v24 = vmax.f32 %v234_v16, 0.0  ;;  %v243_v25 = vmax.f32 %v235_v17, 0.0  ;;  %v244_v26 = vmax.f32 %v236_v18, 0.0  ;;  %v240_v27 = vadd.f32 %v414_v1, %v228_v19 }
  0x15   : > { %v245_v28 = vmax.f32 %v237_v20, 0.0  ;;  %v246_v29 = vmax.f32 %v238_v21, 0.0  ;;  %v247_v30 = vmax.f32 %v239_v22, 0.0  ;;  %v241_v31 = vadd.f32 %v414_v1, %v229_v23 }
  0x16   : > { %v369_v32 = vpack.c.bf16 %v243_v25, %v242_v24  ;;  %v248_v33 = vmax.f32 %v240_v27, 0.0 }
  0x17   : > { %v374_v34 = vpack.c.bf16 %v245_v28, %v244_v26  ;;  %v379_v35 = vpack.c.bf16 %v247_v30, %v246_v29  ;;  %v249_v36 = vmax.f32 %v241_v31, 0.0 }
  0x18   : > { %370 = vst [vmem:[%s208_s27] sm:$0xff] %v369_v32  }
  0x19   : > { %386 = vst [vmem:[%s208_s27 + $0x8] sm:$0xff] %v374_v34   ;;  %v384_v37 = vpack.c.bf16 %v249_v36, %v248_v33 }
  0x1a   : > { %387 = vst [vmem:[%s208_s27 + $0x10] sm:$0xff] %v379_v35  }
  0x1b   : > { %388 = vst [vmem:[%s208_s27 + $0x18] sm:$0xff] %v384_v37  }
  0x1c PF: > { %s13_s14 = sadd.s32 1, %s437_s14   ;;  %s506_s12 = smov %s433_s13 }
  0x1d   : > { %p10_p5 = scmp.ge.s32.totalorder %s13_s14, 4   ;;  %s507_s13 = smov %s509_s15 }
  0x1f   :  { %12 = sbr.rel (!%p10_p5) target bundleno = 2 (0x2), region = 62 }

// kernel: _lambda_.11
= control target key start
LH: loop header
LB: loop body
LE: loop exit
PB: predicated region body
PF: predicated region fallthrough
CT: control target
= control target key end

     0   :  { %s797_s18 = smov 0   ;;  %s799_s19 = smov 0   ;;  %s875_s0 = inlined_call_operand.vmem [shape: f32[2,8,8,128], index: 0, kind: input, shape index: {}]   ;;  %s876_s1 = inlined_call_operand.vmem [shape: f32[1,128], index: 1, kind: input, shape index: {}]   ;;  %s877_s2 = inlined_call_operand.vmem [shape: f32[1,128], index: 2, kind: input, shape index: {}]   ;;  %s878_s3 = inlined_call_operand.vmem [shape: bf16[2,8,8,128], index: 3, kind: input, shape index: {}]   ;;  %s879_s4 = inlined_call_operand.vmem [shape: bf16[128,128], index: 4, kind: input, shape index: {}]   ;;  %s880_s5 = inlined_call_operand.vmem [shape: bf16[2,8,8,128], index: 5, kind: output, shape index: {}]  }
   0x1   :  { %s801_s20 = smov 0  }
   0x2 LB: > { %s27_s21 = sadd.s32 1, %s761_s19  ;;  %p598_p0 = scmp.ge.s32.totalorder %s765_s20, 1  ;;  %s765_s20 = sphi %s801_s20, %s15_s20   ;;  %s761_s19 = sphi %s799_s19, %s882_s19   ;;  %s757_s18 = sphi %s797_s18, %s881_s18  }
   0x3   : > { %p29_p1 = scmp.ge.s32.totalorder %s27_s21, 2  ;;  %p225_p2 = scmp.lt.s32.totalorder %s765_s20, 3 }
   0x5   : > { %s884_s21 = smov (%p29_p1, %s27_s21), 0  ;;  %p226_p3 = pnand %p598_p0, %p225_p2 }
   0x6   : > { %p271_p4 = scmp.lt.s32.totalorder (!%p226_p3), %s757_s18, 1 }
   0x7   : > { %229 = sbr.rel (%p226_p3) target bundleno = 193 (0xc1), region = 40 }
   0xc   : > { %v669_v0 = vld [vmem:[%s879_s4 + $0x38] sm:$0xff]  ;;  %v668_v1 = vld [vmem:[%s879_s4 + $0x30] sm:$0xff]  ;;  %v667_v2 = vld [vmem:[%s879_s4 + $0x28] sm:$0xff]  ;;  %s886_s18 = smov (!%p271_p4, %s757_s18), 1 }
   0xd   : > { %428 = vmatpush.bf16.msra.mxu0 %v669_v0  ;;  %693 = vmatpush.bf16.msra.mxu1 %v669_v0  ;;  %v666_v3 = vld [vmem:[%s879_s4 + $0x20] sm:$0xff]  ;;  %v665_v4 = vld [vmem:[%s879_s4 + $0x18] sm:$0xff]  ;;  %v664_v5 = vld [vmem:[%s879_s4 + $0x10] sm:$0xff]  ;;  %s656_s11 = sshll.u32 %s886_s18, 5  ;;  %s655_s17 = sshll.u32 %s886_s18, 6 }
   0xe   : > { %694 = vmatpush.bf16.msra.mxu2 %v669_v0  ;;  %695 = vmatpush.bf16.msra.mxu3 %v669_v0  ;;  %v663_v6 = vld [vmem:[%s879_s4 + $0x8] sm:$0xff]  ;;  %v662_v7 = vld [vmem:[%s879_s4] sm:$0xff]  ;;  %s288_s16 = scalar_lea.vmem %s878_s3, %s656_s11  ;;  %s278_s24 = scalar_lea.vmem %s875_s0, %s655_s17 }
   0xf   : > { %v658_v8 = vld [vmem:[%s288_s16] sm:$0xff]  ;;  %v659_v9 = vld [vmem:[%s288_s16 + $0x8] sm:$0xff]  ;;  %v660_v10 = vld [vmem:[%s288_s16 + $0x10] sm:$0xff]  ;;  %s298_s6 = scalar_lea.vmem %s880_s5, %s656_s11 }
  0x10   : > { %v661_v11 = vld [vmem:[%s288_s16 + $0x18] sm:$0xff]  ;;  %v741_v12 = vld [vmem:[%s876_s1] ss:$0 sm:$0xff]  ;;  %v302_v14 = vld [vmem:[%s278_s24 + $0x10] sm:$0xff] }
  0x11   : > { %429 = vmatpush.bf16.msra.mxu0 %v668_v1  ;;  %696 = vmatpush.bf16.msra.mxu1 %v668_v1  ;;  %v300_v13 = vld [vmem:[%s278_s24] sm:$0xff]  ;;  %v301_v15 = vld [vmem:[%s278_s24 + $0x8] sm:$0xff]  ;;  %v303_v16 = vld [vmem:[%s278_s24 + $0x18] sm:$0xff]  ;;  %v314_v19 = vmul.f32 %v741_v12, %v302_v14 }
  0x12   : > { %697 = vmatpush.bf16.msra.mxu2 %v668_v1  ;;  %698 = vmatpush.bf16.msra.mxu3 %v668_v1  ;;  %v312_v17 = vmul.f32 %v741_v12, %v300_v13  ;;  %v742_v18 = vld [vmem:[%s877_s2] ss:$0 sm:$0xff]  ;;  %v313_v22 = vmul.f32 %v741_v12, %v301_v15  ;;  %v315_v23 = vmul.f32 %v741_v12, %v303_v16  ;;  %v306_v27 = vld [vmem:[%s278_s24 + $0x30] sm:$0xff]  ;;  %v305_v30 = vld [vmem:[%s278_s24 + $0x28] sm:$0xff] }
  0x13   : > { %v326_v25 = vadd.f32 %v742_v18, %v314_v19  ;;  %v304_v26 = vld [vmem:[%s278_s24 + $0x20] sm:$0xff]  ;;  %v307_v31 = vld [vmem:[%s278_s24 + $0x38] sm:$0xff]  ;;  %v318_v33 = vmul.f32 %v741_v12, %v306_v27  ;;  %v317_v40 = vmul.f32 %v741_v12, %v305_v30 }
  0x14   : > { %v324_v24 = vadd.f32 %v742_v18, %v312_v17  ;;  %v325_v28 = vadd.f32 %v742_v18, %v313_v22  ;;  %v327_v29 = vadd.f32 %v742_v18, %v315_v23  ;;  %v316_v32 = vmul.f32 %v741_v12, %v304_v26 }
  0x15   : > { %430 = vmatpush.bf16.msra.mxu0 %v667_v2  ;;  %699 = vmatpush.bf16.msra.mxu1 %v667_v2  ;;  %v319_v41 = vmul.f32 %v741_v12, %v307_v31  ;;  %v330_v45 = vadd.f32 %v742_v18, %v318_v33  ;;  %v329_v50 = vadd.f32 %v742_v18, %v317_v40 }
  0x16   : > { %700 = vmatpush.bf16.msra.mxu2 %v667_v2  ;;  %701 = vmatpush.bf16.msra.mxu3 %v667_v2  ;;  %v328_v44 = vadd.f32 %v742_v18, %v316_v32 }
  0x17   : > { %v331_v51 = vadd.f32 %v742_v18, %v319_v41 }
  0x19   : > { %431 = vmatpush.bf16.msra.mxu0 %v666_v3  ;;  %702 = vmatpush.bf16.msra.mxu1 %v666_v3 }
  0x1a   : > { %703 = vmatpush.bf16.msra.mxu2 %v666_v3  ;;  %704 = vmatpush.bf16.msra.mxu3 %v666_v3 }
  0x1d   : > { %432 = vmatpush.bf16.msra.mxu0 %v665_v4  ;;  %705 = vmatpush.bf16.msra.mxu1 %v665_v4 }
  0x1e   : > { %706 = vmatpush.bf16.msra.mxu2 %v665_v4  ;;  %707 = vmatpush.bf16.msra.mxu3 %v665_v4 }
  0x21   : > { %433 = vmatpush.bf16.msra.mxu0 %v664_v5  ;;  %708 = vmatpush.bf16.msra.mxu1 %v664_v5 }
  0x22   : > { %709 = vmatpush.bf16.msra.mxu2 %v664_v5  ;;  %710 = vmatpush.bf16.msra.mxu3 %v664_v5 }
  0x25   : > { %434 = vmatpush.bf16.msra.mxu0 %v663_v6  ;;  %711 = vmatpush.bf16.msra.mxu1 %v663_v6 }
  0x26   : > { %712 = vmatpush.bf16.msra.mxu2 %v663_v6  ;;  %713 = vmatpush.bf16.msra.mxu3 %v663_v6 }
  0x29   : > { %435 = vmatpush.bf16.msra.mxu0 %v662_v7  ;;  %714 = vmatpush.bf16.msra.mxu1 %v662_v7 }
  0x2a   : > { %715 = vmatpush.bf16.msra.mxu2 %v662_v7  ;;  %716 = vmatpush.bf16.msra.mxu3 %v662_v7 }
  0x2c   : > { %436 = vmatmul.bf16.vlgmr.msra.gmra.mxu0 %v658_v8  ;;  %441 = vmatmul.bf16.vlgmr.msra.gmra.mxu1 %v659_v9 }
  0x2d   : > { %446 = vmatmul.bf16.vlgmr.msra.gmra.mxu2 %v660_v10  ;;  %451 = vmatmul.bf16.vlgmr.msra.gmra.mxu3 %v661_v11 }
  0xa9   : > { %v437_v20 = vpop.f32.mrf.mxu0  ;;  %v442_v21 = vpop.f32.mrf.mxu1 }
  0xaa   : > { %v457_v34 = vadd.f32 %v437_v20, %v324_v24  ;;  %v459_v35 = vadd.f32 %v442_v21, %v326_v25 }
  0xac   : > { %v465_v46 = vmax.f32 %v457_v34, 0.0  ;;  %v467_v47 = vmax.f32 %v459_v35, 0.0 }
  0xb0   : > { %v447_v36 = vpop.f32.mrf.mxu2  ;;  %v452_v37 = vpop.f32.mrf.mxu3 }
  0xb1   : > { %v439_v38 = vpop.f32.mrf.mxu0  ;;  %v444_v39 = vpop.f32.mrf.mxu1  ;;  %v461_v54 = vadd.f32 %v447_v36, %v328_v44  ;;  %v463_v55 = vadd.f32 %v452_v37, %v330_v45 }
  0xb2   : > { %v458_v42 = vadd.f32 %v439_v38, %v325_v28  ;;  %v460_v43 = vadd.f32 %v444_v39, %v327_v29 }
  0xb3   : > { %v469_v60 = vmax.f32 %v461_v54, 0.0  ;;  %v471_v61 = vmax.f32 %v463_v55, 0.0 }
  0xb4   : > { %v466_v48 = vmax.f32 %v458_v42, 0.0  ;;  %v468_v49 = vmax.f32 %v460_v43, 0.0 }
  0xb6   : > { %v673_v52 = vpack.c.bf16 %v466_v48, %v465_v46  ;;  %v678_v53 = vpack.c.bf16 %v468_v49, %v467_v47 }
  0xb8   : > { %674 = vst [vmem:[%s298_s6] sm:$0xff] %v673_v52   ;;  %v449_v56 = vpop.f32.mrf.mxu2  ;;  %v454_v57 = vpop.f32.mrf.mxu3 }
  0xb9   : > { %690 = vst [vmem:[%s298_s6 + $0x8] sm:$0xff] %v678_v53   ;;  %v462_v58 = vadd.f32 %v449_v56, %v329_v50  ;;  %v464_v59 = vadd.f32 %v454_v57, %v331_v51 }
  0xbb   : > { %v470_v62 = vmax.f32 %v462_v58, 0.0  ;;  %v472_v63 = vmax.f32 %v464_v59, 0.0 }
  0xbd   : > { %v683_v0 = vpack.c.bf16 %v470_v62, %v469_v60  ;;  %v688_v1 = vpack.c.bf16 %v472_v63, %v471_v61 }
  0xbf   : > { %691 = vst [vmem:[%s298_s6 + $0x10] sm:$0xff] %v683_v0  }
  0xc0   : > { %692 = vst [vmem:[%s298_s6 + $0x18] sm:$0xff] %v688_v1  }
  0xc1 PF: > { %s15_s20 = sadd.s32 1, %s765_s20   ;;  %s881_s18 = smov %s761_s19 }
  0xc2   : > { %p12_p5 = scmp.ge.s32.totalorder %s15_s20, 4   ;;  %s882_s19 = smov %s884_s21 }
  0xc4   :  { %14 = sbr.rel (!%p12_p5) target bundleno = 2 (0x2), region = 73 }

// kernel: _lambda_.15
= control target key start
LH: loop header
LB: loop body
LE: loop exit
PB: predicated region body
PF: predicated region fallthrough
CT: control target
= control target key end

     0   :  { %s591_s15 = smov 0   ;;  %s593_s16 = smov 0   ;;  %s647_s0 = inlined_call_operand.vmem [shape: f32[2,8,8,128], index: 0, kind: input, shape index: {}]   ;;  %s648_s1 = inlined_call_operand.vmem [shape: f32[1,128], index: 1, kind: input, shape index: {}]   ;;  %s649_s2 = inlined_call_operand.vmem [shape: f32[1,128], index: 2, kind: input, shape index: {}]   ;;  %s650_s3 = inlined_call_operand.vmem [shape: bf16[2,8,8,128], index: 3, kind: input, shape index: {}]   ;;  %s651_s4 = inlined_call_operand.vmem [shape: bf16[2,8,8,128], index: 4, kind: output, shape index: {}]  }
   0x1   :  { %s595_s17 = smov 0  }
   0x2 LB: > { %s26_s18 = sadd.s32 1, %s560_s16  ;;  %p462_p0 = scmp.ge.s32.totalorder %s564_s17, 1  ;;  %s564_s17 = sphi %s595_s17, %s14_s17   ;;  %s560_s16 = sphi %s593_s16, %s653_s16   ;;  %s556_s15 = sphi %s591_s15, %s652_s15  }
   0x3   : > { %p28_p1 = scmp.ge.s32.totalorder %s26_s18, 2  ;;  %p200_p2 = scmp.lt.s32.totalorder %s564_s17, 3 }
   0x5   : > { %s655_s18 = smov (%p28_p1, %s26_s18), 0  ;;  %p201_p3 = pnand %p462_p0, %p200_p2 }
   0x6   : > { %p244_p4 = scmp.lt.s32.totalorder (!%p201_p3), %s556_s15, 1 }
   0x7   : > { %204 = sbr.rel (%p201_p3) target bundleno = 34 (0x22), region = 36 }
   0xc   : > { %s657_s15 = smov (!%p244_p4, %s556_s15), 1  ;;  %v540_v0 = vld [vmem:[%s648_s1] ss:$0 sm:$0xff] }
   0xd   : > { %s471_s21 = sshll.u32 %s657_s15, 6  ;;  %s472_s22 = sshll.u32 %s657_s15, 5  ;;  %v541_v1 = vld [vmem:[%s649_s2] ss:$0 sm:$0xff] }
   0xe   : > { %s251_s25 = scalar_lea.vmem %s647_s0, %s471_s21  ;;  %s624_s28 = scalar_lea.vmem %s650_s3, %s472_s22 }
   0xf   : > { %v273_v2 = vld [vmem:[%s251_s25] sm:$0xff]  ;;  %v274_v3 = vld [vmem:[%s251_s25 + $0x8] sm:$0xff]  ;;  %v275_v9 = vld [vmem:[%s251_s25 + $0x10] sm:$0xff]  ;;  %s271_s7 = scalar_lea.vmem %s651_s4, %s472_s22 }
  0x10   : > { %v475_v4 = vld [vmem:[%s624_s28] sm:$0xff]   ;;  %v285_v5 = vmul.f32 %v540_v0, %v273_v2  ;;  %v286_v6 = vmul.f32 %v540_v0, %v274_v3  ;;  %v276_v10 = vld [vmem:[%s251_s25 + $0x18] sm:$0xff]  ;;  %v510_v11 = vld [vmem:[%s624_s28 + $0x8] sm:$0xff]   ;;  %v287_v12 = vmul.f32 %v540_v0, %v275_v9 }
  0x11   : > { %v476_v7 = vunpack.c.l.bf16 %v475_v4  ;;  %v477_v8 = vunpack.c.h.bf16 %v475_v4  ;;  %v288_v13 = vmul.f32 %v540_v0, %v276_v10  ;;  %v480_v14 = vunpack.c.l.bf16 %v510_v11  ;;  %v277_v16 = vld [vmem:[%s251_s25 + $0x20] sm:$0xff]  ;;  %v278_v17 = vld [vmem:[%s251_s25 + $0x28] sm:$0xff]  ;;  %v511_v18 = vld [vmem:[%s624_s28 + $0x10] sm:$0xff]  }
  0x12   : > { %v481_v15 = vunpack.c.h.bf16 %v510_v11  ;;  %v297_v19 = vadd.f32 %v541_v1, %v285_v5  ;;  %v298_v20 = vadd.f32 %v541_v1, %v286_v6  ;;  %v289_v21 = vmul.f32 %v540_v0, %v277_v16  ;;  %v279_v23 = vld [vmem:[%s251_s25 + $0x30] sm:$0xff]  ;;  %v280_v24 = vld [vmem:[%s251_s25 + $0x38] sm:$0xff] }
  0x13   : > { %v290_v22 = vmul.f32 %v540_v0, %v278_v17  ;;  %v299_v25 = vadd.f32 %v541_v1, %v287_v12  ;;  %v300_v26 = vadd.f32 %v541_v1, %v288_v13  ;;  %v484_v27 = vunpack.c.l.bf16 %v511_v18  ;;  %v512_v37 = vld [vmem:[%s624_s28 + $0x18] sm:$0xff]  }
  0x14   : > { %v485_v28 = vunpack.c.h.bf16 %v511_v18  ;;  %v321_v29 = vadd.f32 %v476_v7, %v297_v19  ;;  %v322_v30 = vadd.f32 %v477_v8, %v298_v20  ;;  %v301_v31 = vadd.f32 %v541_v1, %v289_v21 }
  0x15   : > { %v302_v32 = vadd.f32 %v541_v1, %v290_v22  ;;  %v323_v33 = vadd.f32 %v480_v14, %v299_v25  ;;  %v324_v34 = vadd.f32 %v481_v15, %v300_v26  ;;  %v291_v35 = vmul.f32 %v540_v0, %v279_v23 }
  0x16   : > { %v292_v36 = vmul.f32 %v540_v0, %v280_v24  ;;  %v329_v38 = vmax.f32 %v321_v29, 0.0  ;;  %v330_v39 = vmax.f32 %v322_v30, 0.0  ;;  %v325_v40 = vadd.f32 %v484_v27, %v301_v31 }
  0x17   : > { %v326_v41 = vadd.f32 %v485_v28, %v302_v32  ;;  %v331_v42 = vmax.f32 %v323_v33, 0.0  ;;  %v332_v43 = vmax.f32 %v324_v34, 0.0  ;;  %v303_v44 = vadd.f32 %v541_v1, %v291_v35 }
  0x18   : > { %v304_v45 = vadd.f32 %v541_v1, %v292_v36  ;;  %v493_v46 = vpack.c.bf16 %v330_v39, %v329_v38  ;;  %v333_v47 = vmax.f32 %v325_v40, 0.0  ;;  %v488_v49 = vunpack.c.l.bf16 %v512_v37 }
  0x19   : > { %v334_v48 = vmax.f32 %v326_v41, 0.0  ;;  %v498_v50 = vpack.c.bf16 %v332_v43, %v331_v42  ;;  %v489_v51 = vunpack.c.h.bf16 %v512_v37 }
  0x1a   : > { %494 = vst [vmem:[%s271_s7] sm:$0xff] %v493_v46   ;;  %v327_v53 = vadd.f32 %v488_v49, %v303_v44 }
  0x1b   : > { %v503_v52 = vpack.c.bf16 %v334_v48, %v333_v47  ;;  %513 = vst [vmem:[%s271_s7 + $0x8] sm:$0xff] %v498_v50   ;;  %v328_v54 = vadd.f32 %v489_v51, %v304_v45 }
  0x1c   : > { %v335_v55 = vmax.f32 %v327_v53, 0.0 }
  0x1d   : > { %514 = vst [vmem:[%s271_s7 + $0x10] sm:$0xff] %v503_v52   ;;  %v336_v56 = vmax.f32 %v328_v54, 0.0 }
  0x1f   : > { %v508_v57 = vpack.c.bf16 %v336_v56, %v335_v55 }
  0x21   : > { %515 = vst [vmem:[%s271_s7 + $0x18] sm:$0xff] %v508_v57  }
  0x22 PF: > { %s14_s17 = sadd.s32 1, %s564_s17   ;;  %s652_s15 = smov %s560_s16 }
  0x23   : > { %p11_p5 = scmp.ge.s32.totalorder %s14_s17, 4   ;;  %s653_s16 = smov %s655_s18 }
  0x25   :  { %13 = sbr.rel (!%p11_p5) target bundleno = 2 (0x2), region = 69 }

// kernel: _lambda_.8
= control target key start
LH: loop header
LB: loop body
LE: loop exit
PB: predicated region body
PF: predicated region fallthrough
CT: control target
= control target key end

     0   :  { %s2912_s12 = smov 0   ;;  %s2914_s13 = smov 0   ;;  %s3378_s0 = inlined_call_operand.vmem [shape: bf16[8,9,9,128], index: 0, kind: input, shape index: {}]   ;;  %s3379_s1 = inlined_call_operand.vmem [shape: bf16[3,3,128,128], index: 1, kind: input, shape index: {}]   ;;  %s3380_s2 = inlined_call_operand.vmem [shape: f32[2,8,8,128], index: 2, kind: output, shape index: {0}]   ;;  %s3381_s3 = inlined_call_operand.vmem [shape: f32[2,1,8,128], index: 3, kind: output, shape index: {1}]  }
   0x1   :  { %s2916_s14 = smov 0  }
   0x2 LB: > { %s26_s15 = sadd.s32 1, %s2886_s13  ;;  %p2138_p0 = scmp.ge.s32.totalorder %s2890_s14, 1  ;;  %s2890_s14 = sphi %s2916_s14, %s14_s14   ;;  %s2886_s13 = sphi %s2914_s13, %s3385_s13   ;;  %s2882_s12 = sphi %s2912_s12, %s3384_s12  }
   0x3   : > { %p28_p1 = scmp.ge.s32.totalorder %s26_s15, 2  ;;  %p158_p2 = scmp.lt.s32.totalorder %s2890_s14, 3 }
   0x5   : > { %s3387_s15 = smov (%p28_p1, %s26_s15), 0  ;;  %p159_p3 = pnand %p2138_p0, %p158_p2 }
   0x6   : > { %s2139_s18 = sshll.u32 (!%p159_p3), %s2882_s12, 2  ;;  %p202_p5 = scmp.lt.s32.totalorder (!%p159_p3), %s2882_s12, 1 }
   0x7   : > { %162 = sbr.rel (%p159_p3) target bundleno = 349 (0x15d), region = 28  ;;  %p195_p4 = scmp.lt.s32.totalorder (!%p159_p3), %s2139_s18, 7 }
   0xc   : > { %v2742_v0 = vld [vmem:[%s3379_s1 + $0x38] sm:$0xff]  ;;  %v2741_v2 = vld [vmem:[%s3379_s1 + $0x30] sm:$0xff]  ;;  %s3389_s18 = smov (!%p195_p4, %s2139_s18), 7  ;;  %v2740_v6 = vld [vmem:[%s3379_s1 + $0x28] sm:$0xff]  ;;  %vm556_vm0 = vsmask.f32 3328 }
   0xd   : > { %v2762_v1 = vld [vmem:[%s3379_s1 + $0xb8] sm:$0xff]  ;;  %2827 = vmatpush.bf16.msra.mxu1 %v2742_v0  ;;  %334 = vmatpush.bf16.msra.mxu0 %v2742_v0  ;;  %v2761_v3 = vld [vmem:[%s3379_s1 + $0xb0] sm:$0xff]  ;;  %s2843_s29 = smul.u32 72, %s3389_s18  ;;  %v2760_v7 = vld [vmem:[%s3379_s1 + $0xa8] sm:$0xff]  ;;  %vm557_vm1 = vsmask.f32 7440 }
   0xe   : > { %752 = vmatpush.bf16.msra.mxu2 %v2762_v1  ;;  %v2774_v4 = vld [vmem:[%s3379_s1 + $0xf8] sm:$0xff]  ;;  %v2773_v5 = vld [vmem:[%s3379_s1 + $0xf0] sm:$0xff]  ;;  %v2772_v8 = vld [vmem:[%s3379_s1 + $0xe8] sm:$0xff]  ;;  %s3391_s12 = smov (!%p202_p5, %s2882_s12), 1  ;;  %vm1984_vm3 = vcmask 1040384   ;;  %vm1986_vm4 = vcmask 1041408  }
   0xf   : > { %905 = vmatpush.bf16.msra.mxu3 %v2774_v4  ;;  %s2960_s9 = scalar_lea.vmem %s3378_s0, %s2843_s29  ;;  %v2739_v10 = vld [vmem:[%s3379_s1 + $0x20] sm:$0xff]  ;;  %v2738_v23 = vld [vmem:[%s3379_s1 + $0x18] sm:$0xff]  ;;  %v2737_v31 = vld [vmem:[%s3379_s1 + $0x10] sm:$0xff]  ;;  %s2143_s8 = sshll.u32 %s3391_s12, 3 }
  0x10   : > { %v532_v9 = vld [vmem:[%s2960_s9] sm:$0xf]  ;;  %v534_v11 = vld [vmem:[%s2960_s9 + $0x8] sm:$0xf]  ;;  %v533_v16 = vld [vmem:[%s2960_s9 + $0x4] sm:$0x1]  ;;  %s217_s16 = scalar_lea.vmem %s3381_s3, %s2143_s8 }
  0x11   : > { %2828 = vmatpush.bf16.msra.mxu1 %v2741_v2  ;;  %335 = vmatpush.bf16.msra.mxu0 %v2741_v2  ;;  %v2759_v12 = vld [vmem:[%s3379_s1 + $0xa0] sm:$0xff]  ;;  %v560_v13 = vshrl.u32 %v532_v9, 16  ;;  %v563_v14 = vshll.u32 %v532_v9, 16  ;;  %v574_v15 = vshrl.u32 %v534_v11, 16  ;;  %v535_v17 = vld [vmem:[%s2960_s9 + $0xc] sm:$0x1]  ;;  %vm2995_vm2 = vmor %vm556_vm0, %vm557_vm1 }
  0x12   : > { %753 = vmatpush.bf16.msra.mxu2 %v2761_v3  ;;  %v577_v18 = vshll.u32 %v534_v11, 16  ;;  %v2771_v19 = vld [vmem:[%s3379_s1 + $0xe0] sm:$0xff]  ;;  %v2758_v25 = vld [vmem:[%s3379_s1 + $0x98] sm:$0xff]  ;;  %v569_v27 = vshll.u32 %v533_v16, 16  ;;  %v583_v28 = vshll.u32 %v535_v17, 16  ;;  %v2757_v34 = vld [vmem:[%s3379_s1 + $0x90] sm:$0xff] }
  0x13   : > { %906 = vmatpush.bf16.msra.mxu3 %v2773_v5  ;;  %v562_v20 = vrot.slane %v560_v13, 4  ;;  %v565_v21 = vrot.slane %v563_v14, 5  ;;  %v576_v22 = vrot.slane %v574_v15, 4  ;;  %v2770_v30 = vld [vmem:[%s3379_s1 + $0xd8] sm:$0xff]  ;;  %v536_v32 = vld [vmem:[%s2960_s9 + $0x10] sm:$0xf] }
  0x14   : > { %v579_v24 = vrot.slane %v577_v18, 5  ;;  %v538_v33 = vld [vmem:[%s2960_s9 + $0x18] sm:$0xf]  ;;  %v571_v36 = vrot.slane %v569_v27, 5  ;;  %v585_v38 = vrot.slane %v583_v28, 5  ;;  %v2769_v40 = vld [vmem:[%s3379_s1 + $0xd0] sm:$0xff] }
  0x15   : > { %2829 = vmatpush.bf16.msra.mxu1 %v2740_v6  ;;  %336 = vmatpush.bf16.msra.mxu0 %v2740_v6  ;;  %v566_v26 = vor.u32 %v565_v21, %v562_v20  ;;  %v588_v41 = vshrl.u32 %v536_v32, 16  ;;  %v591_v42 = vshll.u32 %v536_v32, 16  ;;  %v602_v43 = vshrl.u32 %v538_v33, 16  ;;  %v2736_v45 = vld [vmem:[%s3379_s1 + $0x8] sm:$0xff]  ;;  %v2735_v49 = vld [vmem:[%s3379_s1] sm:$0xff]  ;;  %v2754_v63 = vld [vmem:[%s3379_s1 + $0x78] sm:$0xff] }
  0x16   : > { %754 = vmatpush.bf16.msra.mxu2 %v2760_v7  ;;  %v580_v29 = vor.u32 %v579_v24, %v576_v22  ;;  %v605_v44 = vshll.u32 %v538_v33, 16  ;;  %v2756_v46 = vld [vmem:[%s3379_s1 + $0x88] sm:$0xff]  ;;  %v2154_v50 = vld [vmem:[%s2960_s9 + $0x20] sm:$0xf]  ;;  %v537_v53 = vld [vmem:[%s2960_s9 + $0x14] sm:$0x1] }
  0x17   : > { %907 = vmatpush.bf16.msra.mxu3 %v2772_v8  ;;  %v567_v35 = vrot.slane %v566_v26, 4  ;;  %v2733_v51 = vld [vmem:[%s2960_s9 + $0x24] sm:$0xf0]  ;;  %v590_v54 = vrot.slane %v588_v41, 4  ;;  %v593_v55 = vrot.slane %v591_v42, 5  ;;  %v604_v56 = vrot.slane %v602_v43, 4 }
  0x18   : > { %v581_v37 = vrot.slane %v580_v29, 4  ;;  %v2768_v52 = vld [vmem:[%s3379_s1 + $0xc8] sm:$0xff]  ;;  %v607_v57 = vrot.slane %v605_v44, 5  ;;  %v2146_v58 = vld [vmem:[%s2960_s9] sm:$0xf]  ;;  %v2155_v1 = vor.u32 %v2733_v51, %v2154_v50  ;;  %v2786_v2 = vld [vmem:[%s3379_s1 + $0x138] sm:$0xff] }
  0x19   : > { %2830 = vmatpush.bf16.msra.mxu1 %v2739_v10  ;;  %337 = vmatpush.bf16.msra.mxu0 %v2739_v10  ;;  %v572_v47 = vsel %vm2995_vm2, %v567_v35, %v571_v36  ;;  %v2731_v59 = vld [vmem:[%s2960_s9 + $0x4] sm:$0xf0]  ;;  %v539_v62 = vld [vmem:[%s2960_s9 + $0x1c] sm:$0x1]  ;;  %v2755_v0 = vld [vmem:[%s3379_s1 + $0x80] sm:$0xff]  ;;  %v597_v4 = vshll.u32 %v537_v53, 16  ;;  %v594_v6 = vor.u32 %v593_v55, %v590_v54 }
  0x1a   : > { %755 = vmatpush.bf16.msra.mxu2 %v2759_v12  ;;  %v586_v48 = vsel %vm2995_vm2, %v581_v37, %v585_v38  ;;  %v688_v60 = vunpack.c.l.b16 %v572_v47  ;;  %v2806_v3 = vld [vmem:[%s3379_s1 + $0x1b8] sm:$0xff]  ;;  %v2147_v5 = vor.u32 %v2731_v59, %v2146_v58  ;;  %v608_v7 = vor.u32 %v607_v57, %v604_v56  ;;  %v2767_v10 = vld [vmem:[%s3379_s1 + $0xc0] sm:$0xff]  ;;  %v2338_v11 = vld [vmem:[%s2960_s9 + $0x90] sm:$0xf] }
  0x1b   : > { %908 = vmatpush.bf16.msra.mxu3 %v2771_v19  ;;  %v689_v61 = vunpack.c.l.b16 %v586_v48  ;;  %v611_v8 = vshll.u32 %v539_v62, 16  ;;  %v2763_v12 = vld [vmem:[%s2960_s9 + $0x94] sm:$0xf0]  ;;  %v2753_v13 = vld [vmem:[%s3379_s1 + $0x70] sm:$0xff]  ;;  %v599_v16 = vrot.slane %v597_v4, 5  ;;  %v595_v19 = vrot.slane %v594_v6, 4 }
  0x1c   : > { %v2818_v14 = vld [vmem:[%s3379_s1 + $0x1f8] sm:$0xff]  ;;  %v2785_v15 = vld [vmem:[%s3379_s1 + $0x130] sm:$0xff]  ;;  %v2339_v18 = vor.u32 %v2763_v12, %v2338_v11  ;;  %v609_v20 = vrot.slane %v608_v7, 4  ;;  %v2752_v22 = vld [vmem:[%s3379_s1 + $0x68] sm:$0xff] }
  0x1d   : > { %2831 = vmatpush.bf16.msra.mxu1 %v2738_v23  ;;  %338 = vmatpush.bf16.msra.mxu0 %v2738_v23  ;;  %v696_v9 = vpack.c.b16 %v689_v61, %v688_v60  ;;  %v2805_v17 = vld [vmem:[%s3379_s1 + $0x1b0] sm:$0xff]  ;;  %v613_v21 = vrot.slane %v611_v8, 5  ;;  %v540_v24 = vld [vmem:[%s2960_s9 + $0x20] sm:$0xf]  ;;  %v2784_v26 = vld [vmem:[%s3379_s1 + $0x128] sm:$0xff]  ;;  %v600_v28 = vsel %vm2995_vm2, %v595_v19, %v599_v16 }
  0x1e   : > { %756 = vmatpush.bf16.msra.mxu2 %v2758_v25  ;;  %v2817_v23 = vld [vmem:[%s3379_s1 + $0x1f0] sm:$0xff]  ;;  %v542_v25 = vld [vmem:[%s2960_s9 + $0x28] sm:$0xf]  ;;  %v2783_v36 = vld [vmem:[%s3379_s1 + $0x120] sm:$0xff]  ;;  %v690_v42 = vunpack.c.l.b16 %v600_v28 }
  0x1f   : > { %909 = vmatpush.bf16.msra.mxu3 %v2770_v30  ;;  %v2804_v27 = vld [vmem:[%s3379_s1 + $0x1a8] sm:$0xff]  ;;  %v614_v29 = vsel %vm2995_vm2, %v609_v20, %v613_v21  ;;  %v616_v30 = vshrl.u32 %v540_v24, 16  ;;  %v630_v32 = vshrl.u32 %v542_v25, 16  ;;  %v633_v33 = vshll.u32 %v542_v25, 16  ;;  %v2803_v37 = vld [vmem:[%s3379_s1 + $0x1a0] sm:$0xff]  ;;  %v2749_v62 = vld [vmem:[%s3379_s1 + $0x50] sm:$0xff] }
  0x20   : > { %v2816_v35 = vld [vmem:[%s3379_s1 + $0x1e8] sm:$0xff]  ;;  %v2158_v38 = vld [vmem:[%s2960_s9 + $0x30] sm:$0xf]  ;;  %v691_v43 = vunpack.c.l.b16 %v614_v29  ;;  %v2732_v44 = vld [vmem:[%s2960_s9 + $0x14] sm:$0xf0] }
  0x21   : > { %2832 = vmatpush.bf16.msra.mxu1 %v2737_v31  ;;  %339 = vmatpush.bf16.msra.mxu0 %v2737_v31  ;;  %v619_v31 = vshll.u32 %v540_v24, 16  ;;  %v2150_v41 = vld [vmem:[%s2960_s9 + $0x10] sm:$0xf]  ;;  %v632_v47 = vrot.slane %v630_v32, 4  ;;  %v635_v48 = vrot.slane %v633_v33, 5  ;;  %v2748_v6 = vld [vmem:[%s3379_s1 + $0x48] sm:$0xff] }
  0x22   : > { %757 = vmatpush.bf16.msra.mxu2 %v2757_v34  ;;  %v2751_v34 = vld [vmem:[%s3379_s1 + $0x60] sm:$0xff]  ;;  %v543_v51 = vld [vmem:[%s2960_s9 + $0x2c] sm:$0x1]  ;;  %v2151_v54 = vor.u32 %v2732_v44, %v2150_v41  ;;  %v697_v55 = vpack.c.b16 %v691_v43, %v690_v42  ;;  %v2764_v57 = vld [vmem:[%s2960_s9 + $0xa4] sm:$0xf0] }
  0x23   : > { %910 = vmatpush.bf16.msra.mxu3 %v2769_v40  ;;  %v2734_v40 = vld [vmem:[%s2960_s9 + $0x34] sm:$0xf0]  ;;  %v541_v50 = vld [vmem:[%s2960_s9 + $0x24] sm:$0x1]  ;;  %v2342_v56 = vld [vmem:[%s2960_s9 + $0xa0] sm:$0xf]  ;;  %v636_v60 = vor.u32 %v635_v48, %v632_v47 }
  0x24   : > { %v2159_v53 = vor.u32 %v2734_v40, %v2158_v38  ;;  %v625_v59 = vshll.u32 %v541_v50, 16  ;;  %v639_v61 = vshll.u32 %v543_v51, 16  ;;  %v2780_v7 = vld [vmem:[%s3379_s1 + $0x108] sm:$0xff]  ;;  %v2815_v8 = vld [vmem:[%s3379_s1 + $0x1e0] sm:$0xff]  ;;  %v2801_v11 = vld [vmem:[%s3379_s1 + $0x190] sm:$0xff] }
  0x25   : > { %2833 = vmatpush.bf16.msra.mxu1 %v2736_v45  ;;  %340 = vmatpush.bf16.msra.mxu0 %v2736_v45  ;;  %v618_v45 = vrot.slane %v616_v30, 4  ;;  %v637_v4 = vrot.slane %v636_v60, 4  ;;  %v2794_v20 = vld [vmem:[%s3379_s1 + $0x178] sm:$0xff]  ;;  %v2779_v21 = vld [vmem:[%s3379_s1 + $0x100] sm:$0xff]  ;;  %v2743_v24 = vld [vmem:[%s2960_s9 + $0x4c] sm:$0xf0] }
  0x26   : > { %758 = vmatpush.bf16.msra.mxu2 %v2756_v46  ;;  %v621_v46 = vrot.slane %v619_v31, 5  ;;  %v2410_v25 = vld [vmem:[%s2960_s9 + $0xd8] sm:$0xf]  ;;  %v2793_v33 = vld [vmem:[%s3379_s1 + $0x170] sm:$0xff]  ;;  %v2792_v47 = vld [vmem:[%s3379_s1 + $0x168] sm:$0xff] }
  0x27   : > { %911 = vmatpush.bf16.msra.mxu3 %v2768_v52  ;;  %v2782_v52 = vld [vmem:[%s3379_s1 + $0x118] sm:$0xff]  ;;  %v2346_v40 = vld [vmem:[%s2960_s9 + $0xb0] sm:$0xf]  ;;  %v2800_v48 = vld [vmem:[%s3379_s1 + $0x188] sm:$0xff] }
  0x28   : > { %v622_v58 = vor.u32 %v621_v46, %v618_v45  ;;  %v2765_v41 = vld [vmem:[%s2960_s9 + $0xb4] sm:$0xf0]  ;;  %v2825_v42 = vld [vmem:[%s3379_s1 + $0x230] sm:$0xff]  ;;  %v2824_v50 = vld [vmem:[%s3379_s1 + $0x228] sm:$0xff] }
  0x29   : > { %2834 = vmatpush.bf16.msra.mxu1 %v2735_v49  ;;  %341 = vmatpush.bf16.msra.mxu0 %v2735_v49  ;;  %v2750_v49 = vld [vmem:[%s3379_s1 + $0x58] sm:$0xff] }
  0x2a   : > { %759 = vmatpush.bf16.msra.mxu2 %v2755_v0  ;;  %v2343_v0 = vor.u32 %v2764_v57, %v2342_v56  ;;  %v2813_v56 = vld [vmem:[%s3379_s1 + $0x1d0] sm:$0xff]  ;;  %v2791_v57 = vld [vmem:[%s3379_s1 + $0x160] sm:$0xff] }
  0x2b   : > { %912 = vmatpush.bf16.msra.mxu3 %v2767_v10  ;;  %v546_v10 = vld [vmem:[%s2960_s9 + $0x38] sm:$0xf] }
  0x2c   : > { %352 = vmatmul.bf16.vlgmr.msra.gmra.mxu1 %v2155_v1  ;;  %342 = vmatmul.bf16.vlgmr.msra.gmra.mxu0 %v2147_v5  ;;  %v2802_v1 = vld [vmem:[%s3379_s1 + $0x198] sm:$0xff]  ;;  %v641_v5 = vrot.slane %v639_v61, 5  ;;  %v661_v19 = vshll.u32 %v546_v10, 16 }
  0x2d   : > { %487 = vmatpush.bf16.msrb.mxu1 %v2754_v63  ;;  %1058 = vmatpush.bf16.msrb.mxu0 %v2786_v2  ;;  %v2781_v63 = vld [vmem:[%s3379_s1 + $0x110] sm:$0xff]  ;;  %v623_v2 = vrot.slane %v622_v58, 4  ;;  %v2823_v58 = vld [vmem:[%s3379_s1 + $0x220] sm:$0xff] }
  0x2e   : > { %1474 = vmatpush.bf16.msrb.mxu2 %v2806_v3  ;;  %913 = vmatmul.bf16.vlgmr.msra.gmra.mxu3 %v2339_v18  ;;  %v627_v3 = vrot.slane %v625_v59, 5  ;;  %v658_v18 = vshrl.u32 %v546_v10, 16  ;;  %v663_v32 = vrot.slane %v661_v19, 5  ;;  %v2812_v59 = vld [vmem:[%s3379_s1 + $0x1c8] sm:$0xff]  ;;  %v2745_v19 = vld [vmem:[%s2960_s9 + $0x6c] sm:$0xf0] }
  0x2f   : > { %760 = vmatmul.bf16.vlgmr.msra.gmra.mxu2 %v696_v9  ;;  %1627 = vmatpush.bf16.msrb.mxu3 %v2818_v14  ;;  %v544_v9 = vld [vmem:[%s2960_s9 + $0x30] sm:$0xf]  ;;  %v2814_v14 = vld [vmem:[%s3379_s1 + $0x1d8] sm:$0xff]  ;;  %v2766_v10 = vld [vmem:[%s2960_s9 + $0xc4] sm:$0xf0] }
  0x30   : > { %v628_v12 = vsel %vm2995_vm2, %v623_v2, %v627_v3  ;;  %v644_v16 = vshrl.u32 %v544_v9, 16  ;;  %v660_v31 = vrot.slane %v658_v18, 4  ;;  %v2776_v2 = vld [vmem:[%s2960_s9 + $0xec] sm:$0xf0]  ;;  %v2226_v18 = vld [vmem:[%s2960_s9 + $0x68] sm:$0xf] }
  0x31   : > { %488 = vmatpush.bf16.msrb.mxu1 %v2753_v13  ;;  %1059 = vmatpush.bf16.msrb.mxu0 %v2785_v15  ;;  %v642_v13 = vsel %vm2995_vm2, %v637_v4, %v641_v5  ;;  %v2747_v15 = vld [vmem:[%s3379_s1 + $0x40] sm:$0xff]  ;;  %v2789_v5 = vld [vmem:[%s3379_s1 + $0x150] sm:$0xff] }
  0x32   : > { %1475 = vmatpush.bf16.msrb.mxu2 %v2805_v17  ;;  %v647_v17 = vshll.u32 %v544_v9, 16  ;;  %v693_v28 = vunpack.c.l.b16 %v642_v13  ;;  %v646_v29 = vrot.slane %v644_v16, 4  ;;  %v664_v45 = vor.u32 %v663_v32, %v660_v31  ;;  %v2350_v9 = vld [vmem:[%s2960_s9 + $0xc0] sm:$0xf]  ;;  %v2822_v13 = vld [vmem:[%s3379_s1 + $0x218] sm:$0xff]  ;;  %v2821_v16 = vld [vmem:[%s3379_s1 + $0x210] sm:$0xff] }
  0x33   : > { %1628 = vmatpush.bf16.msrb.mxu3 %v2817_v23  ;;  %v2826_v23 = vld [vmem:[%s3379_s1 + $0x238] sm:$0xff]  ;;  %v2456_v31 = vld [vmem:[%s2960_s9 + $0x90] sm:$0xf] }
  0x34   : > { %v649_v30 = vrot.slane %v647_v17, 5  ;;  %v2820_v17 = vld [vmem:[%s3379_s1 + $0x208] sm:$0xff]  ;;  %v2458_v32 = vld [vmem:[%s2960_s9 + $0x98] sm:$0xf] }
  0x35   : > { %489 = vmatpush.bf16.msrb.mxu1 %v2752_v22  ;;  %1060 = vmatpush.bf16.msrb.mxu0 %v2784_v26  ;;  %v2218_v22 = vld [vmem:[%s2960_s9 + $0x48] sm:$0xf]  ;;  %v2775_v26 = vld [vmem:[%s2960_s9 + $0xdc] sm:$0xf0] }
  0x36   : > { %1476 = vmatpush.bf16.msrb.mxu2 %v2804_v27  ;;  %v692_v27 = vunpack.c.l.b16 %v628_v12  ;;  %v650_v43 = vor.u32 %v649_v30, %v646_v29  ;;  %v2788_v12 = vld [vmem:[%s3379_s1 + $0x148] sm:$0xff]  ;;  %v2819_v30 = vld [vmem:[%s3379_s1 + $0x200] sm:$0xff] }
  0x37   : > { %1629 = vmatpush.bf16.msrb.mxu3 %v2816_v35  ;;  %v547_v35 = vld [vmem:[%s2960_s9 + $0x3c] sm:$0x1] }
  0x38   : > { %v698_v38 = vpack.c.b16 %v693_v28, %v692_v27  ;;  %v667_v46 = vshll.u32 %v547_v35, 16  ;;  %v651_v51 = vrot.slane %v650_v43, 4  ;;  %v2618_v27 = vld [vmem:[%s2960_s9 + $0x50] sm:$0xf]  ;;  %v2807_v28 = vld [vmem:[%s2960_s9 + $0x54] sm:$0xf0] }
  0x39   : > { %490 = vmatpush.bf16.msrb.mxu1 %v2751_v34  ;;  %1061 = vmatpush.bf16.msrb.mxu0 %v2783_v36  ;;  %v545_v34 = vld [vmem:[%s2960_s9 + $0x34] sm:$0x1]  ;;  %v2219_v36 = vor.u32 %v2743_v24, %v2218_v22  ;;  %v2546_v22 = vld [vmem:[%s2960_s9 + $0x8] sm:$0xf]  ;;  %v2227_v24 = vor.u32 %v2745_v19, %v2226_v18  ;;  %v2619_v29 = vor.u32 %v2807_v28, %v2618_v27  ;;  %v1128_v35 = vshrl.u32 %v2456_v31, 16 }
  0x3a   : > { %1477 = vmatpush.bf16.msrb.mxu2 %v2803_v37  ;;  %v2411_v37 = vor.u32 %v2775_v26, %v2410_v25  ;;  %v653_v44 = vshll.u32 %v545_v34, 16  ;;  %v2666_v34 = vld [vmem:[%s2960_s9 + $0x10] sm:$0xf]  ;;  %v2668_v18 = vld [vmem:[%s2960_s9 + $0x18] sm:$0xf] }
  0x3b   : > { %1630 = vmatpush.bf16.msrb.mxu3 %v2815_v8  ;;  %v1714_v43 = vshll.u32 %v2666_v34, 16  ;;  %v2670_v19 = vld [vmem:[%s2960_s9 + $0x20] sm:$0xf]  ;;  %v1725_v28 = vshrl.u32 %v2668_v18, 16 }
  0x3c   : > { %357 = vmatmul.bf16.gmra.mxu1 %v2159_v53  ;;  %347 = vmatmul.bf16.gmra.mxu0 %v2151_v54  ;;  %v665_v53 = vrot.slane %v664_v45, 4  ;;  %v669_v54 = vrot.slane %v667_v46, 5  ;;  %v2746_v45 = vld [vmem:[%s2960_s9 + $0x7c] sm:$0xf0]  ;;  %v2422_v46 = vld [vmem:[%s2960_s9 + $0x108] sm:$0xf] }
  0x3d   : > { %491 = vmatpush.bf16.msrb.mxu1 %v2750_v49  ;;  %1062 = vmatpush.bf16.msrb.mxu0 %v2782_v52  ;;  %v2347_v49 = vor.u32 %v2765_v41, %v2346_v40  ;;  %v655_v52 = vrot.slane %v653_v44, 5  ;;  %v2230_v44 = vld [vmem:[%s2960_s9 + $0x78] sm:$0xf] }
  0x3e   : > { %1478 = vmatpush.bf16.msrb.mxu2 %v2802_v1  ;;  %918 = vmatmul.bf16.gmra.mxu3 %v2343_v0  ;;  %v670_v61 = vsel %vm2995_vm2, %v665_v53, %v669_v54  ;;  %v2744_v0 = vld [vmem:[%s2960_s9 + $0x5c] sm:$0xf0]  ;;  %v2414_v1 = vld [vmem:[%s2960_s9 + $0xe8] sm:$0xf] }
  0x3f   : > { %765 = vmatmul.bf16.gmra.mxu2 %v697_v55  ;;  %1631 = vmatpush.bf16.msrb.mxu3 %v2814_v14  ;;  %v2799_v55 = vld [vmem:[%s3379_s1 + $0x180] sm:$0xff]  ;;  %v656_v60 = vsel %vm2995_vm2, %v651_v51, %v655_v52  ;;  %v695_v4 = vunpack.c.l.b16 %v670_v61  ;;  %v1130_v51 = vrot.slane %v1128_v35, 4  ;;  %v2667_v61 = vld [vmem:[%s2960_s9 + $0x14] sm:$0x1] }
  0x40   : > { %v694_v3 = vunpack.c.l.b16 %v656_v60  ;;  %v2811_v14 = vld [vmem:[%s3379_s1 + $0x1c0] sm:$0xff]  ;;  %v2665_v60 = vld [vmem:[%s2960_s9 + $0xc] sm:$0x1] }
  0x41   : > { %492 = vmatpush.bf16.msrb.mxu1 %v2749_v62  ;;  %1063 = vmatpush.bf16.msrb.mxu0 %v2781_v63  ;;  %v2790_v62 = vld [vmem:[%s3379_s1 + $0x158] sm:$0xff] }
  0x42   : > { %1479 = vmatpush.bf16.msrb.mxu2 %v2801_v11  ;;  %v2222_v63 = vld [vmem:[%s2960_s9 + $0x58] sm:$0xf]  ;;  %v699_v8 = vpack.c.b16 %v695_v4, %v694_v3  ;;  %v2351_v11 = vor.u32 %v2766_v10, %v2350_v9  ;;  %v1720_v10 = vshll.u32 %v2667_v61, 16 }
  0x43   : > { %1632 = vmatpush.bf16.msrb.mxu3 %v2813_v56 }
  0x45   : > { %493 = vmatpush.bf16.msrb.mxu1 %v2748_v6  ;;  %1064 = vmatpush.bf16.msrb.mxu0 %v2780_v7  ;;  %v2223_v6 = vor.u32 %v2744_v0, %v2222_v63  ;;  %v2415_v7 = vor.u32 %v2776_v2, %v2414_v1 }
  0x46   : > { %1480 = vmatpush.bf16.msrb.mxu2 %v2800_v48  ;;  %v2550_v48 = vld [vmem:[%s2960_s9 + $0x18] sm:$0xf] }
  0x47   : > { %1633 = vmatpush.bf16.msrb.mxu3 %v2812_v59  ;;  %v1716_v59 = vrot.slane %v1714_v43, 5  ;;  %v1727_v43 = vrot.slane %v1725_v28, 4 }
  0x49   : > { %494 = vmatpush.bf16.msrb.mxu1 %v2747_v15  ;;  %1065 = vmatpush.bf16.msrb.mxu0 %v2779_v21  ;;  %v2787_v15 = vld [vmem:[%s3379_s1 + $0x140] sm:$0xff] }
  0x4a   : > { %1481 = vmatpush.bf16.msrb.mxu2 %v2799_v55  ;;  %v2777_v21 = vld [vmem:[%s2960_s9 + $0xfc] sm:$0xf0] }
  0x4b   : > { %1634 = vmatpush.bf16.msrb.mxu3 %v2811_v14  ;;  %v2796_v55 = vld [vmem:[%s2960_s9 + $0x1c] sm:$0xf0]  ;;  %v2462_v14 = vld [vmem:[%s2960_s9 + $0xa8] sm:$0xf] }
  0x4c   : > { %495 = vmatmul.bf16.vlgmr.msrb.gmra.mxu1 %v2219_v36  ;;  %1066 = vmatmul.bf16.vlgmr.msrb.gmra.mxu0 %v2411_v37  ;;  %v1131_v36 = vshll.u32 %v2456_v31, 16  ;;  %v1142_v37 = vshrl.u32 %v2458_v32, 16  ;;  %v2551_v2 = vor.u32 %v2796_v55, %v2550_v48  ;;  %v1173_v27 = vshll.u32 %v2462_v14, 16 }
  0x4d   : > { %1320 = vmatpush.bf16.msra.mxu1 %v2794_v20  ;;  %1889 = vmatpush.bf16.msra.mxu0 %v2826_v23  ;;  %v2418_v20 = vld [vmem:[%s2960_s9 + $0xf8] sm:$0xf]  ;;  %v1742_v31 = vshll.u32 %v2670_v19, 16 }
  0x4e   : > { %923 = vmatmul.bf16.gmra.mxu3 %v2347_v49  ;;  %2835 = vmatpush.bf16.msra.mxu2 %v2826_v23  ;;  %v2795_v23 = vld [vmem:[%s2960_s9 + $0xc] sm:$0xf0]  ;;  %v2419_v25 = vor.u32 %v2777_v21, %v2418_v20  ;;  %v2457_v49 = vld [vmem:[%s2960_s9 + $0x94] sm:$0x1]  ;;  %v1133_v52 = vrot.slane %v1131_v36, 5  ;;  %v1144_v53 = vrot.slane %v1142_v37, 4 }
  0x4f   : > { %770 = vmatmul.bf16.gmra.mxu2 %v698_v38  ;;  %v2547_v26 = vor.u32 %v2795_v23, %v2546_v22  ;;  %v1145_v38 = vshll.u32 %v2458_v32, 16  ;;  %v1137_v63 = vshll.u32 %v2457_v49, 16  ;;  %v1722_v23 = vrot.slane %v1720_v10, 5  ;;  %v2461_v36 = vld [vmem:[%s2960_s9 + $0xa4] sm:$0x1] }
  0x50   : > { %v1134_v3 = vor.u32 %v1133_v52, %v1130_v51  ;;  %v2669_v51 = vld [vmem:[%s2960_s9 + $0x1c] sm:$0x1]  ;;  %v2671_v52 = vld [vmem:[%s2960_s9 + $0x24] sm:$0x1] }
  0x51   : > { %1321 = vmatpush.bf16.msra.mxu1 %v2793_v33  ;;  %1890 = vmatpush.bf16.msra.mxu0 %v2825_v42  ;;  %v2664_v33 = vld [vmem:[%s2960_s9 + $0x8] sm:$0xf]  ;;  %v1147_v54 = vrot.slane %v1145_v38, 5 }
  0x52   : > { %2836 = vmatpush.bf16.msra.mxu2 %v2825_v42  ;;  %v1697_v40 = vshrl.u32 %v2664_v33, 16  ;;  %v1700_v41 = vshll.u32 %v2664_v33, 16  ;;  %v1711_v42 = vshrl.u32 %v2666_v34, 16 }
  0x53   : > { %v1148_v4 = vor.u32 %v1147_v54, %v1144_v53  ;;  %v2554_v53 = vld [vmem:[%s2960_s9 + $0x28] sm:$0xf]  ;;  %v2797_v54 = vld [vmem:[%s2960_s9 + $0x2c] sm:$0xf0] }
  0x54   : > { %v1699_v56 = vrot.slane %v1697_v40, 4 }
  0x55   : > { %1322 = vmatpush.bf16.msra.mxu1 %v2792_v47  ;;  %1891 = vmatpush.bf16.msra.mxu0 %v2824_v50  ;;  %v2778_v47 = vld [vmem:[%s2960_s9 + $0x10c] sm:$0xf0] }
  0x56   : > { %2837 = vmatpush.bf16.msra.mxu2 %v2824_v50  ;;  %v2459_v50 = vld [vmem:[%s2960_s9 + $0x9c] sm:$0x1]  ;;  %v2423_v1 = vor.u32 %v2778_v47, %v2422_v46  ;;  %v1744_v46 = vrot.slane %v1742_v31, 5 }
  0x57   : > { %v1151_v0 = vshll.u32 %v2459_v50, 16 }
  0x59   : > { %1323 = vmatpush.bf16.msra.mxu1 %v2791_v57  ;;  %1892 = vmatpush.bf16.msra.mxu0 %v2823_v58  ;;  %v1702_v57 = vrot.slane %v1700_v41, 5  ;;  %v1175_v41 = vrot.slane %v1173_v27, 5 }
  0x5a   : > { %2838 = vmatpush.bf16.msra.mxu2 %v2823_v58  ;;  %v1713_v58 = vrot.slane %v1711_v42, 4  ;;  %v2463_v42 = vld [vmem:[%s2960_s9 + $0xac] sm:$0x1] }
  0x5c   : > { %500 = vmatmul.bf16.gmra.mxu1 %v2223_v6  ;;  %1071 = vmatmul.bf16.gmra.mxu0 %v2415_v7  ;;  %v2808_v6 = vld [vmem:[%s2960_s9 + $0x64] sm:$0xf0]  ;;  %v1703_v7 = vor.u32 %v1702_v57, %v1699_v56  ;;  %v1717_v9 = vor.u32 %v1716_v59, %v1713_v58  ;;  %v1165_v56 = vshll.u32 %v2461_v36, 16  ;;  %v1179_v58 = vshll.u32 %v2463_v42, 16  ;;  %v2465_v42 = vld [vmem:[%s2960_s9 + $0xb4] sm:$0x1] }
  0x5d   : > { %1324 = vmatpush.bf16.msra.mxu1 %v2790_v62  ;;  %1893 = vmatpush.bf16.msra.mxu0 %v2822_v13  ;;  %v2231_v62 = vor.u32 %v2746_v45, %v2230_v44 }
  0x5e   : > { %928 = vmatmul.bf16.gmra.mxu3 %v2351_v11  ;;  %2839 = vmatpush.bf16.msra.mxu2 %v2822_v13  ;;  %v1139_v11 = vrot.slane %v1137_v63, 5  ;;  %v2460_v13 = vld [vmem:[%s2960_s9 + $0xa0] sm:$0xf]  ;;  %v1704_v20 = vrot.slane %v1703_v7, 4  ;;  %v1718_v22 = vrot.slane %v1717_v9, 4  ;;  %v1181_v7 = vrot.slane %v1179_v58, 5 }
  0x5f   : > { %775 = vmatmul.bf16.gmra.mxu2 %v699_v8  ;;  %v1706_v8 = vshll.u32 %v2665_v60, 16  ;;  %v1734_v60 = vshll.u32 %v2669_v51, 16  ;;  %v2558_v51 = vld [vmem:[%s2960_s9 + $0x38] sm:$0xf]  ;;  %v2677_v58 = vld [vmem:[%s2960_s9 + $0x3c] sm:$0x1] }
  0x60   : > { %v1723_v35 = vsel %vm2995_vm2, %v1718_v22, %v1722_v23 }
  0x61   : > { %1325 = vmatpush.bf16.msra.mxu1 %v2789_v5  ;;  %1894 = vmatpush.bf16.msra.mxu0 %v2821_v16  ;;  %v2622_v5 = vld [vmem:[%s2960_s9 + $0x60] sm:$0xf]  ;;  %v1708_v21 = vrot.slane %v1706_v8, 5  ;;  %v1826_v50 = vunpack.c.l.b16 %v1723_v35  ;;  %v1736_v9 = vrot.slane %v1734_v60, 5 }
  0x62   : > { %2840 = vmatpush.bf16.msra.mxu2 %v2821_v16  ;;  %v1149_v16 = vrot.slane %v1148_v4, 4 }
  0x63   : > { %v1709_v34 = vsel %vm2995_vm2, %v1704_v20, %v1708_v21  ;;  %v2676_v21 = vld [vmem:[%s2960_s9 + $0x38] sm:$0xf] }
  0x64   : > { %v1825_v49 = vunpack.c.l.b16 %v1709_v34  ;;  %v1784_v34 = vshll.u32 %v2676_v21, 16 }
  0x65   : > { %1326 = vmatpush.bf16.msra.mxu1 %v2788_v12  ;;  %1895 = vmatpush.bf16.msra.mxu0 %v2820_v17  ;;  %v1153_v12 = vrot.slane %v1151_v0, 5 }
  0x66   : > { %2841 = vmatpush.bf16.msra.mxu2 %v2820_v17  ;;  %v2623_v17 = vor.u32 %v2808_v6, %v2622_v5  ;;  %v1833_v0 = vpack.c.b16 %v1826_v50, %v1825_v49  ;;  %v1167_v5 = vrot.slane %v1165_v56, 5  ;;  %v2798_v56 = vld [vmem:[%s2960_s9 + $0x3c] sm:$0xf0] }
  0x67   : > { %v1154_v33 = vsel %vm2995_vm2, %v1149_v16, %v1153_v12  ;;  %v2464_v12 = vld [vmem:[%s2960_s9 + $0xb0] sm:$0xf] }
  0x68   : > { %v1257_v48 = vunpack.c.l.b16 %v1154_v33  ;;  %v2674_v16 = vld [vmem:[%s2960_s9 + $0x30] sm:$0xf]  ;;  %v1187_v20 = vshll.u32 %v2464_v12, 16  ;;  %v1781_v33 = vshrl.u32 %v2676_v21, 16 }
  0x69   : > { %1327 = vmatpush.bf16.msra.mxu1 %v2787_v15  ;;  %1896 = vmatpush.bf16.msra.mxu0 %v2819_v30  ;;  %v1135_v15 = vrot.slane %v1134_v3, 4  ;;  %v2809_v3 = vld [vmem:[%s2960_s9 + $0x74] sm:$0xf0] }
  0x6a   : > { %2842 = vmatpush.bf16.msra.mxu2 %v2819_v30  ;;  %v1739_v30 = vshrl.u32 %v2670_v19, 16  ;;  %v1184_v19 = vshrl.u32 %v2464_v12, 16  ;;  %v1189_v36 = vrot.slane %v1187_v20, 5 }
  0x6b   : > { %v1140_v32 = vsel %vm2995_vm2, %v1135_v15, %v1139_v11  ;;  %v2672_v15 = vld [vmem:[%s2960_s9 + $0x28] sm:$0xf] }
  0x6c   : > { %505 = vmatmul.bf16.gmra.mxu1 %v2227_v24  ;;  %1076 = vmatmul.bf16.gmra.mxu0 %v2419_v25  ;;  %v1156_v24 = vshrl.u32 %v2460_v13, 16  ;;  %v1159_v25 = vshll.u32 %v2460_v13, 16  ;;  %v1741_v45 = vrot.slane %v1739_v30, 4  ;;  %v1256_v47 = vunpack.c.l.b16 %v1140_v32 }
  0x6d   : > { %v1753_v27 = vshrl.u32 %v2672_v15, 16  ;;  %v1756_v28 = vshll.u32 %v2672_v15, 16  ;;  %v1770_v30 = vshll.u32 %v2674_v16, 16  ;;  %v1186_v35 = vrot.slane %v1184_v19, 4 }
  0x6e   : > { %1635 = vmatmul.bf16.vlgmr.msrb.gmra.mxu3 %v2619_v29  ;;  %v1728_v29 = vshll.u32 %v2668_v18, 16  ;;  %v1158_v37 = vrot.slane %v1156_v24, 4  ;;  %v1161_v38 = vrot.slane %v1159_v25, 5  ;;  %v1745_v61 = vor.u32 %v1744_v46, %v1741_v45  ;;  %v2673_v46 = vld [vmem:[%s2960_s9 + $0x2c] sm:$0x1] }
  0x6f   : > { %1482 = vmatmul.bf16.vlgmr.msrb.gmra.mxu2 %v2547_v26  ;;  %v1170_v26 = vshrl.u32 %v2462_v14, 16  ;;  %v1264_v63 = vpack.c.b16 %v1257_v48, %v1256_v47  ;;  %v2466_v14 = vld [vmem:[%s2960_s9 + $0xb8] sm:$0xf]  ;;  %v1755_v47 = vrot.slane %v1753_v27, 4  ;;  %v1758_v48 = vrot.slane %v1756_v28, 5 }
  0x70   : > { %v1730_v44 = vrot.slane %v1728_v29, 5  ;;  %v1162_v55 = vor.u32 %v1161_v38, %v1158_v37  ;;  %v1746_v10 = vrot.slane %v1745_v61, 4  ;;  %v1198_v24 = vshrl.u32 %v2466_v14, 16  ;;  %v2470_v27 = vld [vmem:[%s2960_s9 + $0xc8] sm:$0xf] }
  0x71   : > { %v1172_v40 = vrot.slane %v1170_v26, 4  ;;  %v1201_v25 = vshll.u32 %v2466_v14, 16  ;;  %v2678_v26 = vld [vmem:[%s2960_s9 + $0x40] sm:$0xf]  ;;  %v1767_v29 = vshrl.u32 %v2674_v16, 16  ;;  %v1772_v50 = vrot.slane %v1770_v30, 5 }
  0x72   : > { %v1731_v59 = vor.u32 %v1730_v44, %v1727_v43  ;;  %v1163_v4 = vrot.slane %v1162_v55, 4  ;;  %v1795_v37 = vshrl.u32 %v2678_v26, 16  ;;  %v1798_v38 = vshll.u32 %v2678_v26, 16  ;;  %v2467_v43 = vld [vmem:[%s2960_s9 + $0xbc] sm:$0x1] }
  0x73   : > { %v1176_v57 = vor.u32 %v1175_v41, %v1172_v40  ;;  %v1200_v44 = vrot.slane %v1198_v24, 4  ;;  %v1203_v45 = vrot.slane %v1201_v25, 5  ;;  %v1769_v49 = vrot.slane %v1767_v29, 4  ;;  %v2468_v24 = vld [vmem:[%s2960_s9 + $0xc0] sm:$0xf] }
  0x74   : > { %v1732_v8 = vrot.slane %v1731_v59, 4  ;;  %v1797_v59 = vrot.slane %v1795_v37, 4  ;;  %v1800_v60 = vrot.slane %v1798_v38, 5  ;;  %v1193_v61 = vshll.u32 %v2465_v42, 16 }
  0x75   : > { %v1177_v6 = vrot.slane %v1176_v57, 4  ;;  %v1190_v57 = vor.u32 %v1189_v36, %v1186_v35  ;;  %v1226_v35 = vshrl.u32 %v2470_v27, 16  ;;  %v1229_v36 = vshll.u32 %v2470_v27, 16 }
  0x76   : > { %v1737_v22 = vsel %vm2995_vm2, %v1732_v8, %v1736_v9  ;;  %v2810_v8 = vld [vmem:[%s2960_s9 + $0x84] sm:$0xf0]  ;;  %v1801_v12 = vor.u32 %v1800_v60, %v1797_v59  ;;  %v1195_v14 = vrot.slane %v1193_v61, 5 }
  0x77   : > { %v1182_v18 = vsel %vm2995_vm2, %v1177_v6, %v1181_v7  ;;  %v1827_v40 = vunpack.c.l.b16 %v1737_v22  ;;  %v2559_v6 = vor.u32 %v2798_v56, %v2558_v51  ;;  %v2630_v7 = vld [vmem:[%s2960_s9 + $0x80] sm:$0xf] }
  0x78   : > { %v1259_v32 = vunpack.c.l.b16 %v1182_v18  ;;  %v2631_v18 = vor.u32 %v2810_v8, %v2630_v7  ;;  %v1802_v25 = vrot.slane %v1801_v12, 4 }
  0x7c   : > { %510 = vmatmul.bf16.gmra.mxu1 %v2231_v62  ;;  %1081 = vmatmul.bf16.gmra.mxu0 %v2423_v1  ;;  %v1748_v62 = vshll.u32 %v2671_v52, 16  ;;  %v2555_v1 = vor.u32 %v2797_v54, %v2554_v53  ;;  %v2675_v52 = vld [vmem:[%s2960_s9 + $0x34] sm:$0x1]  ;;  %v1783_v53 = vrot.slane %v1781_v33, 4  ;;  %v1786_v54 = vrot.slane %v1784_v34, 5 }
  0x7d   : > { %v1215_v34 = vshll.u32 %v2468_v24, 16 }
  0x7e   : > { %1640 = vmatmul.bf16.gmra.mxu3 %v2623_v17  ;;  %v1750_v11 = vrot.slane %v1748_v62, 5  ;;  %v1168_v17 = vsel %vm2995_vm2, %v1163_v4, %v1167_v5  ;;  %v1204_v62 = vor.u32 %v1203_v45, %v1200_v44  ;;  %v1773_v4 = vor.u32 %v1772_v50, %v1769_v49  ;;  %v2471_v50 = vld [vmem:[%s2960_s9 + $0xcc] sm:$0x1] }
  0x7f   : > { %1487 = vmatmul.bf16.gmra.mxu2 %v2551_v2  ;;  %v2626_v2 = vld [vmem:[%s2960_s9 + $0x70] sm:$0xf]  ;;  %v1258_v31 = vunpack.c.l.b16 %v1168_v17  ;;  %v1776_v5 = vshll.u32 %v2675_v52, 16  ;;  %v1787_v9 = vor.u32 %v1786_v54, %v1783_v53  ;;  %v1231_v49 = vrot.slane %v1229_v36, 5 }
  0x80   : > { %v2627_v13 = vor.u32 %v2809_v3, %v2626_v2  ;;  %v1751_v23 = vsel %vm2995_vm2, %v1746_v10, %v1750_v11  ;;  %v1759_v3 = vor.u32 %v1758_v48, %v1755_v47  ;;  %v1790_v10 = vshll.u32 %v2677_v58, 16 }
  0x81   : > { %v1828_v41 = vunpack.c.l.b16 %v1751_v23  ;;  %v1265_v55 = vpack.c.b16 %v1259_v32, %v1258_v31  ;;  %v1191_v11 = vrot.slane %v1190_v57, 4  ;;  %v1205_v15 = vrot.slane %v1204_v62, 4 }
  0x82   : > { %v1760_v19 = vrot.slane %v1759_v3, 4  ;;  %v1774_v20 = vrot.slane %v1773_v4, 4  ;;  %v1778_v21 = vrot.slane %v1776_v5, 5  ;;  %v1788_v22 = vrot.slane %v1787_v9, 4 }
  0x83   : > { %v1834_v2 = vpack.c.b16 %v1828_v41, %v1827_v40  ;;  %v1792_v23 = vrot.slane %v1790_v10, 5  ;;  %v1196_v28 = vsel %vm2995_vm2, %v1191_v11, %v1195_v14  ;;  %v1212_v32 = vshrl.u32 %v2468_v24, 16 }
  0x84   : > { %v1779_v31 = vsel %vm2995_vm2, %v1774_v20, %v1778_v21  ;;  %v1260_v38 = vunpack.c.l.b16 %v1196_v28  ;;  %v1217_v47 = vrot.slane %v1215_v34, 5  ;;  %v1228_v48 = vrot.slane %v1226_v35, 4 }
  0x85   : > { %v1793_v33 = vsel %vm2995_vm2, %v1788_v22, %v1792_v23  ;;  %v1830_v42 = vunpack.c.l.b16 %v1779_v31  ;;  %v1214_v44 = vrot.slane %v1212_v32, 4  ;;  %v1235_v59 = vshll.u32 %v2471_v50, 16 }
  0x86   : > { %v1232_v58 = vor.u32 %v1231_v49, %v1228_v48 }
  0x87   : > { %v1218_v57 = vor.u32 %v1217_v47, %v1214_v44 }
  0x88   : > { %v1233_v62 = vrot.slane %v1232_v58, 4 }
  0x89   : > { %v1219_v60 = vrot.slane %v1218_v57, 4 }
  0x8c   : > { %1328 = vmatmul.bf16.vlgmr.msra.gmra.mxu1 %v1264_v63  ;;  %1897 = vmatmul.bf16.vlgmr.msra.gmra.mxu0 %v1833_v0  ;;  %v1207_v63 = vshll.u32 %v2467_v43, 16  ;;  %v1762_v0 = vshll.u32 %v2673_v46, 16  ;;  %v1831_v43 = vunpack.c.l.b16 %v1793_v33  ;;  %v2469_v46 = vld [vmem:[%s2960_s9 + $0xc4] sm:$0x1] }
  0x8d   : > { %v1221_v53 = vshll.u32 %v2469_v46, 16 }
  0x8e   : > { %1645 = vmatmul.bf16.gmra.mxu3 %v2627_v13  ;;  %v1209_v16 = vrot.slane %v1207_v63, 5  ;;  %v1764_v17 = vrot.slane %v1762_v0, 5  ;;  %v1237_v63 = vrot.slane %v1235_v59, 5 }
  0x8f   : > { %1492 = vmatmul.bf16.gmra.mxu2 %v2555_v1  ;;  %v2679_v1 = vld [vmem:[%s2960_s9 + $0x44] sm:$0x1]  ;;  %v1223_v61 = vrot.slane %v1221_v53, 5  ;;  %s2730_s9 = sshll.u32 %s3391_s12, 6 }
  0x90   : > { %v1804_v13 = vshll.u32 %v2679_v1, 16  ;;  %v1210_v29 = vsel %vm2995_vm2, %v1205_v15, %v1209_v16  ;;  %v1765_v30 = vsel %vm2995_vm2, %v1760_v19, %v1764_v17  ;;  %v1238_v4 = vsel %vm2995_vm2, %v1233_v62, %v1237_v63  ;;  %s3340_s7 = scalar_lea.vmem %s3380_s2, %s2730_s9 }
  0x91   : > { %v1261_v40 = vunpack.c.l.b16 %v1210_v29  ;;  %v1829_v41 = vunpack.c.l.b16 %v1765_v30  ;;  %v1224_v3 = vsel %vm2995_vm2, %v1219_v60, %v1223_v61  ;;  %v1263_v7 = vunpack.c.l.b16 %v1238_v4 }
  0x92   : > { %v1806_v26 = vrot.slane %v1804_v13, 5 }
  0x93   : > { %v1266_v51 = vpack.c.b16 %v1261_v40, %v1260_v38  ;;  %v1835_v52 = vpack.c.b16 %v1830_v42, %v1829_v41 }
  0x94   : > { %v1807_v37 = vsel %vm2995_vm2, %v1802_v25, %v1806_v26 }
  0x95   : > { %v1832_v45 = vunpack.c.l.b16 %v1807_v37 }
  0x97   : > { %v1836_v56 = vpack.c.b16 %v1832_v45, %v1831_v43 }
  0x9c   : > { %1333 = vmatmul.bf16.gmra.mxu1 %v1265_v55  ;;  %1902 = vmatmul.bf16.gmra.mxu0 %v1834_v2 }
  0x9e   : > { %1650 = vmatmul.bf16.gmra.mxu3 %v2631_v18 }
  0x9f   : > { %1497 = vmatmul.bf16.gmra.mxu2 %v2559_v6  ;;  %v1262_v6 = vunpack.c.l.b16 %v1224_v3 }
  0xa1   : > { %v1267_v8 = vpack.c.b16 %v1263_v7, %v1262_v6 }
  0xa9   : > { %v353_v54 = vpop.f32.mrf.mxu1  ;;  %v343_v55 = vpop.f32.mrf.mxu0 }
  0xac   : > { %1338 = vmatmul.bf16.gmra.mxu1 %v1266_v51  ;;  %1907 = vmatmul.bf16.gmra.mxu0 %v1835_v52 }
  0xaf   : > { %1912 = vmatmul.bf16.vlgmr.msra.gmra.mxu2 %v1836_v56 }
  0xb1   : > { %v355_v1 = vpop.f32.mrf.mxu1  ;;  %v345_v2 = vpop.f32.mrf.mxu0 }
  0xb2   : > { %v761_v0 = vpop.f32.mrf.mxu2  ;;  %v914_v5 = vpop.f32.mrf.mxu3 }
  0xb9   : > { %v358_v10 = vpop.f32.mrf.mxu1  ;;  %v348_v11 = vpop.f32.mrf.mxu0 }
  0xba   : > { %v763_v9 = vpop.f32.mrf.mxu2  ;;  %v916_v12 = vpop.f32.mrf.mxu3 }
  0xbc   : > { %1343 = vmatmul.bf16.gmra.mxu1 %v1267_v8 }
  0xc1   : > { %v360_v14 = vpop.f32.mrf.mxu1  ;;  %v350_v15 = vpop.f32.mrf.mxu0 }
  0xc2   : > { %v766_v13 = vpop.f32.mrf.mxu2  ;;  %v3302_v16 = vpop.f32.mrf.mxu3 }
  0xc9   : > { %v496_v18 = vpop.f32.mrf.mxu1  ;;  %v1067_v19 = vpop.f32.mrf.mxu0 }
  0xca   : > { %v768_v17 = vpop.f32.mrf.mxu2  ;;  %v516_v20 = vadd.f32 %v496_v18, %v343_v55  ;;  %v3304_v21 = vpop.f32.mrf.mxu3 }
  0xcc   : > { %v781_v39 = vadd.f32 %v761_v0, %v516_v20 }
  0xce   : > { %v934_v62 = vadd.f32 %v914_v5, %v781_v39 }
  0xd0   : > { %v1087_v0 = vadd.f32 %v1067_v19, %v934_v62 }
  0xd1   : > { %v498_v23 = vpop.f32.mrf.mxu1  ;;  %v1069_v24 = vpop.f32.mrf.mxu0 }
  0xd2   : > { %v771_v22 = vpop.f32.mrf.mxu2  ;;  %v517_v25 = vadd.f32 %v498_v23, %v345_v2  ;;  %v3306_v27 = vpop.f32.mrf.mxu3 }
  0xd4   : > { %v782_v26 = vadd.f32 %v763_v9, %v517_v25 }
  0xd6   : > { %v935_v7 = vadd.f32 %v916_v12, %v782_v26 }
  0xd8   : > { %v1088_v5 = vadd.f32 %v1069_v24, %v935_v7 }
  0xd9   : > { %v501_v29 = vpop.f32.mrf.mxu1  ;;  %v1072_v30 = vpop.f32.mrf.mxu0 }
  0xda   : > { %v773_v28 = vpop.f32.mrf.mxu2  ;;  %v518_v31 = vadd.f32 %v501_v29, %v348_v11  ;;  %v3308_v34 = vpop.f32.mrf.mxu3 }
  0xdc   : > { %v783_v32 = vadd.f32 %v766_v13, %v518_v31 }
  0xe1   : > { %v503_v35 = vpop.f32.mrf.mxu1  ;;  %v3310_v36 = vpop.f32.mrf.mxu0 }
  0xe2   : > { %v776_v33 = vpop.f32.mrf.mxu2  ;;  %v519_v37 = vadd.f32 %v503_v35, %v350_v15  ;;  %v3314_v44 = vpop.f32.mrf.mxu3 }
  0xe4   : > { %v784_v38 = vadd.f32 %v768_v17, %v519_v37  ;;  %v936_v17 = vadd.f32 %v3302_v16, %v783_v32 }
  0xe6   : > { %v1089_v20 = vadd.f32 %v1072_v30, %v936_v17  ;;  %v937_v29 = vadd.f32 %v3304_v21, %v784_v38 }
  0xe8   : > { %v1090_v32 = vadd.f32 %v3310_v36, %v937_v29 }
  0xe9   : > { %v506_v41 = vpop.f32.mrf.mxu1  ;;  %v3312_v42 = vpop.f32.mrf.mxu0 }
  0xea   : > { %v778_v40 = vpop.f32.mrf.mxu2  ;;  %v520_v43 = vadd.f32 %v506_v41, %v353_v54  ;;  %v3322_v51 = vpop.f32.mrf.mxu3 }
  0xec   : > { %v3316_v45 = vadd.f32 %v771_v22, %v520_v43 }
  0xf1   : > { %v508_v47 = vpop.f32.mrf.mxu1  ;;  %v3318_v48 = vpop.f32.mrf.mxu0 }
  0xf2   : > { %v1483_v46 = vpop.f32.mrf.mxu2  ;;  %v521_v49 = vadd.f32 %v508_v47, %v355_v1  ;;  %v1636_v57 = vpop.f32.mrf.mxu3 }
  0xf4   : > { %v3320_v50 = vadd.f32 %v773_v28, %v521_v49  ;;  %v938_v49 = vadd.f32 %v3306_v27, %v3316_v45 }
  0xf9   : > { %v511_v53 = vpop.f32.mrf.mxu1  ;;  %v3324_v55 = vpop.f32.mrf.mxu0 }
  0xfa   : > { %v1485_v52 = vpop.f32.mrf.mxu2  ;;  %v522_v54 = vadd.f32 %v511_v53, %v358_v10  ;;  %v1638_v1 = vpop.f32.mrf.mxu3 }
  0xfc   : > { %v3326_v56 = vadd.f32 %v776_v33, %v522_v54  ;;  %v1091_v54 = vadd.f32 %v3312_v42, %v938_v49 }
 0x101   : > { %v513_v59 = vpop.f32.mrf.mxu1  ;;  %v3328_v60 = vpop.f32.mrf.mxu0 }
 0x102   : > { %v1488_v58 = vpop.f32.mrf.mxu2  ;;  %v523_v61 = vadd.f32 %v513_v59, %v360_v14  ;;  %v1641_v15 = vpop.f32.mrf.mxu3 }
 0x104   : > { %v3330_v63 = vadd.f32 %v778_v40, %v523_v61 }
 0x109   : > { %v1329_v2 = vpop.f32.mrf.mxu1  ;;  %v1898_v3 = vpop.f32.mrf.mxu0 }
 0x10a   : > { %v1349_v4 = vadd.f32 %v1329_v2, %v1087_v0  ;;  %v1490_v6 = vpop.f32.mrf.mxu2  ;;  %v1643_v35 = vpop.f32.mrf.mxu3 }
 0x10c   : > { %v1503_v8 = vadd.f32 %v1483_v46, %v1349_v4 }
 0x10e   : > { %v1656_v9 = vadd.f32 %v1636_v57, %v1503_v8 }
 0x110   : > { %v1918_v10 = vadd.f32 %v1898_v3, %v1656_v9 }
 0x111   : > { %v1331_v11 = vpop.f32.mrf.mxu1  ;;  %v1900_v13 = vpop.f32.mrf.mxu0 }
 0x112   : > { %1942 = vst [vmem:[%s3340_s7] sm:$0xff] %v1918_v10  ;;  %v1350_v14 = vadd.f32 %v1331_v11, %v1088_v5  ;;  %v1493_v18 = vpop.f32.mrf.mxu2  ;;  %v1963_v25 = vmul.f32 %v1918_v10, %v1918_v10  ;;  %v1646_v53 = vpop.f32.mrf.mxu3 }
 0x114   : > { %v1504_v12 = vadd.f32 %v1485_v52, %v1350_v14 }
 0x116   : > { %v1657_v19 = vadd.f32 %v1638_v1, %v1504_v12  ;;  %v939_v1 = vadd.f32 %v3308_v34, %v3320_v50 }
 0x118   : > { %v1919_v39 = vadd.f32 %v1900_v13, %v1657_v19  ;;  %v1092_v3 = vadd.f32 %v3318_v48, %v939_v1 }
 0x119   : > { %v1334_v22 = vpop.f32.mrf.mxu1  ;;  %v1903_v23 = vpop.f32.mrf.mxu0 }
 0x11a   : > { %1943 = vst [vmem:[%s3340_s7 + $0x8] sm:$0xff] %v1919_v39  ;;  %v1950_v24 = vadd.f32 %v1919_v39, %v1918_v10  ;;  %v1964_v26 = vmul.f32 %v1919_v39, %v1919_v39  ;;  %v1351_v28 = vadd.f32 %v1334_v22, %v1089_v20  ;;  %v1495_v16 = vpop.f32.mrf.mxu2  ;;  %v1648_v42 = vpop.f32.mrf.mxu3  ;;  %v940_v10 = vadd.f32 %v3314_v44, %v3326_v56 }
 0x11b   : > { %v941_v20 = vadd.f32 %v3322_v51, %v3330_v63 }
 0x11c   : > { %v1971_v31 = vadd.f32 %v1964_v26, %v1963_v25  ;;  %v1505_v33 = vadd.f32 %v1488_v58, %v1351_v28  ;;  %v1093_v14 = vadd.f32 %v3324_v55, %v940_v10 }
 0x11e   : > { %v1658_v37 = vadd.f32 %v1641_v15, %v1505_v33 }
 0x120   : > { %v1920_v40 = vadd.f32 %v1903_v23, %v1658_v37  ;;  %v1094_v23 = vadd.f32 %v3328_v60, %v941_v20 }
 0x121   : > { %v1336_v30 = vpop.f32.mrf.mxu1  ;;  %v1905_v41 = vpop.f32.mrf.mxu0 }
 0x122   : > { %1944 = vst [vmem:[%s3340_s7 + $0x10] sm:$0xff] %v1920_v40  ;;  %v1951_v43 = vadd.f32 %v1950_v24, %v1920_v40  ;;  %v1965_v46 = vmul.f32 %v1920_v40, %v1920_v40  ;;  %v1352_v47 = vadd.f32 %v1336_v30, %v1090_v32  ;;  %v1498_v36 = vpop.f32.mrf.mxu2  ;;  %v1651_v19 = vpop.f32.mrf.mxu3 }
 0x124   : > { %v1972_v52 = vadd.f32 %v1971_v31, %v1965_v46  ;;  %v1506_v21 = vadd.f32 %v1490_v6, %v1352_v47 }
 0x126   : > { %v1659_v38 = vadd.f32 %v1643_v35, %v1506_v21 }
 0x128   : > { %v1921_v57 = vadd.f32 %v1905_v41, %v1659_v38 }
 0x129   : > { %v1339_v58 = vpop.f32.mrf.mxu1  ;;  %v1908_v0 = vpop.f32.mrf.mxu0 }
 0x12a   : > { %1945 = vst [vmem:[%s3340_s7 + $0x18] sm:$0xff] %v1921_v57  ;;  %v1952_v59 = vadd.f32 %v1951_v43, %v1921_v57  ;;  %v1966_v61 = vmul.f32 %v1921_v57, %v1921_v57  ;;  %v1353_v62 = vadd.f32 %v1339_v58, %v1091_v54  ;;  %v1500_v5 = vpop.f32.mrf.mxu2  ;;  %v1653_v33 = vpop.f32.mrf.mxu3 }
 0x12c   : > { %v1973_v2 = vadd.f32 %v1972_v52, %v1966_v61  ;;  %v1507_v27 = vadd.f32 %v1493_v18, %v1353_v62 }
 0x12e   : > { %v1660_v45 = vadd.f32 %v1646_v53, %v1507_v27 }
 0x130   : > { %v1922_v4 = vadd.f32 %v1908_v0, %v1660_v45 }
 0x131   : > { %v1341_v6 = vpop.f32.mrf.mxu1  ;;  %v1910_v34 = vpop.f32.mrf.mxu0 }
 0x132   : > { %1946 = vst [vmem:[%s3340_s7 + $0x20] sm:$0xff] %v1922_v4  ;;  %v1953_v7 = vadd.f32 %v1952_v59, %v1922_v4  ;;  %v1967_v8 = vmul.f32 %v1922_v4, %v1922_v4  ;;  %v1354_v9 = vadd.f32 %v1341_v6, %v1092_v3  ;;  %v1913_v44 = vpop.f32.mrf.mxu2 }
 0x134   : > { %v1974_v11 = vadd.f32 %v1973_v2, %v1967_v8  ;;  %v1508_v13 = vadd.f32 %v1495_v16, %v1354_v9 }
 0x136   : > { %v1661_v50 = vadd.f32 %v1648_v42, %v1508_v13 }
 0x138   : > { %v1923_v48 = vadd.f32 %v1910_v34, %v1661_v50 }
 0x139   : > { %v1344_v15 = vpop.f32.mrf.mxu1 }
 0x13a   : > { %1947 = vst [vmem:[%s3340_s7 + $0x28] sm:$0xff] %v1923_v48  ;;  %v1954_v17 = vadd.f32 %v1953_v7, %v1923_v48  ;;  %v1968_v12 = vmul.f32 %v1923_v48, %v1923_v48  ;;  %v1355_v18 = vadd.f32 %v1344_v15, %v1093_v14  ;;  %v1915_v37 = vpop.f32.mrf.mxu2 }
 0x13c   : > { %v1975_v39 = vadd.f32 %v1974_v11, %v1968_v12  ;;  %v1509_v22 = vadd.f32 %v1498_v36, %v1355_v18 }
 0x13e   : > { %v1662_v56 = vadd.f32 %v1651_v19, %v1509_v22 }
 0x140   : > { %v1924_v25 = vadd.f32 %v1913_v44, %v1662_v56 }
 0x141   : > { %v1346_v55 = vpop.f32.mrf.mxu1 }
 0x142   : > { %1948 = vst [vmem:[%s3340_s7 + $0x30] sm:$0xff] %v1924_v25  ;;  %v1955_v24 = vadd.f32 %v1954_v17, %v1924_v25  ;;  %v1969_v26 = vmul.f32 %v1924_v25, %v1924_v25  ;;  %v1356_v28 = vadd.f32 %v1346_v55, %v1094_v23 }
 0x144   : > { %v1976_v29 = vadd.f32 %v1975_v39, %v1969_v26  ;;  %v1510_v31 = vadd.f32 %v1500_v5, %v1356_v28 }
 0x146   : > { %v1663_v35 = vadd.f32 %v1653_v33, %v1510_v31 }
 0x148   : > { %v1925_v51 = vadd.f32 %v1915_v37, %v1663_v35 }
 0x14a   : > { %1949 = vst [vmem:[%s3340_s7 + $0x38] sm:$0xff] %v1925_v51  ;;  %v1956_v63 = vadd.f32 %v1955_v24, %v1925_v51  ;;  %v1970_v16 = vmul.f32 %v1925_v51, %v1925_v51 }
 0x14c   : > { %v1957_v32 = vrot.slane %v1956_v63, 4  ;;  %v1977_v40 = vadd.f32 %v1976_v29, %v1970_v16 }
 0x14e   : > { %v1958_v30 = vadd.f32 %v1957_v32, %v1956_v63  ;;  %v1978_v60 = vrot.slane %v1977_v40, 4 }
 0x150   : > { %v1959_v41 = vrot.slane %v1958_v30, 2  ;;  %v1979_v43 = vadd.f32 %v1978_v60, %v1977_v40 }
 0x152   : > { %v1960_v46 = vadd.f32 %v1959_v41, %v1958_v30  ;;  %v1980_v47 = vrot.slane %v1979_v43, 2 }
 0x154   : > { %v1961_v49 = vrot.slane %v1960_v46, 1  ;;  %v1981_v52 = vadd.f32 %v1980_v47, %v1979_v43 }
 0x156   : > { %v1982_v21 = vrot.slane %v1981_v52, 1  ;;  %v1962_v38 = vadd.f32 %v1961_v49, %v1960_v46 }
 0x158   : > { %v1983_v53 = vadd.f32 %v1982_v21, %v1981_v52 }
 0x15a   : > { %v1985_v54 = vsel %vm1984_vm3, %v1962_v38, %v1983_v53 }
 0x15b   : > { %v1987_v57 = vsel %vm1986_vm4, %v1985_v54, 0.0 }
 0x15c   : > { %1988 = vst [vmem:[%s217_s16] sm:$0xff] %v1987_v57 }
 0x15d PF: > { %s14_s14 = sadd.s32 1, %s2890_s14   ;;  %s3384_s12 = smov %s2886_s13 }
 0x15e   : > { %p11_p6 = scmp.ge.s32.totalorder %s14_s14, 4   ;;  %s3385_s13 = smov %s3387_s15 }
 0x160   :  { %13 = sbr.rel (!%p11_p6) target bundleno = 2 (0x2), region = 84 }

// kernel: _lambda_.10
= control target key start
LH: loop header
LB: loop body
LE: loop exit
PB: predicated region body
PF: predicated region fallthrough
CT: control target
= control target key end

     0   :  { %s3004_s12 = smov 0   ;;  %s3006_s13 = smov 0   ;;  %s3622_s0 = inlined_call_operand.vmem [shape: bf16[2,10,10,128], index: 0, kind: input, shape index: {}]   ;;  %s3623_s1 = inlined_call_operand.vmem [shape: bf16[3,3,128,128], index: 1, kind: input, shape index: {}]   ;;  %s3624_s2 = inlined_call_operand.vmem [shape: f32[2,8,8,128], index: 2, kind: output, shape index: {0}]   ;;  %s3625_s3 = inlined_call_operand.vmem [shape: f32[2,1,8,128], index: 3, kind: output, shape index: {1}]  }
   0x1   :  { %s3008_s14 = smov 0  }
   0x2 LB: > { %s26_s15 = sadd.s32 1, %s2978_s13  ;;  %p2259_p0 = scmp.ge.s32.totalorder %s2982_s14, 1  ;;  %s2982_s14 = sphi %s3008_s14, %s14_s14   ;;  %s2978_s13 = sphi %s3006_s13, %s3631_s13   ;;  %s2974_s12 = sphi %s3004_s12, %s3630_s12  }
   0x3   : > { %p28_p1 = scmp.ge.s32.totalorder %s26_s15, 2  ;;  %p156_p2 = scmp.lt.s32.totalorder %s2982_s14, 3 }
   0x5   : > { %s3633_s15 = smov (%p28_p1, %s26_s15), 0  ;;  %p157_p3 = pnand %p2259_p0, %p156_p2 }
   0x6   : > { %p191_p4 = scmp.lt.s32.totalorder (!%p157_p3), %s2974_s12, 1 }
   0x7   : > { %160 = sbr.rel (%p157_p3) target bundleno = 349 (0x15d), region = 28 }
   0xc   : > { %v2846_v0 = vld [vmem:[%s3623_s1 + $0x38] sm:$0xff]  ;;  %v2845_v2 = vld [vmem:[%s3623_s1 + $0x30] sm:$0xff]  ;;  %v2844_v6 = vld [vmem:[%s3623_s1 + $0x28] sm:$0xff]  ;;  %s3635_s12 = smov (!%p191_p4, %s2974_s12), 1  ;;  %vm679_vm0 = vcmask 1042432   ;;  %vm680_vm1 = vcmask 1046532  }
   0xd   : > { %v2862_v1 = vld [vmem:[%s3623_s1 + $0xb8] sm:$0xff]  ;;  %2919 = vmatpush.bf16.msra.mxu1 %v2846_v0  ;;  %329 = vmatpush.bf16.msra.mxu0 %v2846_v0  ;;  %v2861_v3 = vld [vmem:[%s3623_s1 + $0xb0] sm:$0xff]  ;;  %v2860_v7 = vld [vmem:[%s3623_s1 + $0xa8] sm:$0xff]  ;;  %s2935_s9 = smul.u32 80, %s3635_s12  ;;  %vm398_vm3 = vsmask.f32 3328 }
   0xe   : > { %795 = vmatpush.bf16.msra.mxu2 %v2862_v1  ;;  %v2874_v4 = vld [vmem:[%s3623_s1 + $0xf8] sm:$0xff]  ;;  %v2873_v5 = vld [vmem:[%s3623_s1 + $0xf0] sm:$0xff]  ;;  %v2872_v8 = vld [vmem:[%s3623_s1 + $0xe8] sm:$0xff]  ;;  %vm399_vm4 = vsmask.f32 7440  ;;  %s2263_s7 = sshll.u32 %s3635_s12, 3 }
   0xf   : > { %949 = vmatpush.bf16.msra.mxu3 %v2874_v4  ;;  %v2843_v9 = vld [vmem:[%s3623_s1 + $0x20] sm:$0xff]  ;;  %v2842_v12 = vld [vmem:[%s3623_s1 + $0x18] sm:$0xff]  ;;  %s3067_s22 = scalar_lea.vmem %s3622_s0, %s2935_s9  ;;  %v2841_v19 = vld [vmem:[%s3623_s1 + $0x10] sm:$0xff]  ;;  %vm2118_vm6 = vcmask 1040384   ;;  %vm2120_vm7 = vcmask 1041408   ;;  %s212_s10 = scalar_lea.vmem %s3625_s3, %s2263_s7 }
  0x10   : > { %v2859_v10 = vld [vmem:[%s3623_s1 + $0xa0] sm:$0xff]  ;;  %v2858_v13 = vld [vmem:[%s3623_s1 + $0x98] sm:$0xff]  ;;  %v641_v16 = vld [vmem:[%s3067_s22 + $0x8] sm:$0xe] }
  0x11   : > { %2920 = vmatpush.bf16.msra.mxu1 %v2845_v2  ;;  %330 = vmatpush.bf16.msra.mxu0 %v2845_v2  ;;  %v2871_v11 = vld [vmem:[%s3623_s1 + $0xe0] sm:$0xff]  ;;  %v642_v17 = vld [vmem:[%s3067_s22 + $0xc] sm:$0x1]  ;;  %v2870_v18 = vld [vmem:[%s3623_s1 + $0xd8] sm:$0xff]  ;;  %v2361_v23 = vrot.slane %v641_v16, 9 }
  0x12   : > { %796 = vmatpush.bf16.msra.mxu2 %v2861_v3  ;;  %v639_v14 = vld [vmem:[%s3067_s22] sm:$0xe]  ;;  %v640_v15 = vld [vmem:[%s3067_s22 + $0x4] sm:$0x1]  ;;  %v2857_v20 = vld [vmem:[%s3623_s1 + $0x90] sm:$0xff]  ;;  %v688_v24 = vrot.slane %v642_v17, 5 }
  0x13   : > { %950 = vmatpush.bf16.msra.mxu3 %v2873_v5  ;;  %v2360_v21 = vrot.slane %v639_v14, 9  ;;  %v684_v22 = vrot.slane %v640_v15, 5  ;;  %vm3085_vm2 = vmor %vm679_vm0, %vm680_vm1  ;;  %v2869_v26 = vld [vmem:[%s3623_s1 + $0xd0] sm:$0xff]  ;;  %v2840_v27 = vld [vmem:[%s3623_s1 + $0x8] sm:$0xff] }
  0x14   : > { %v2856_v28 = vld [vmem:[%s3623_s1 + $0x88] sm:$0xff]  ;;  %v689_v30 = vsel %vm3085_vm2, %v2361_v23, %v688_v24  ;;  %v2839_v31 = vld [vmem:[%s3623_s1] sm:$0xff]  ;;  %v2854_v33 = vld [vmem:[%s3623_s1 + $0x78] sm:$0xff] }
  0x15   : > { %2921 = vmatpush.bf16.msra.mxu1 %v2844_v6  ;;  %331 = vmatpush.bf16.msra.mxu0 %v2844_v6  ;;  %v685_v29 = vsel %vm3085_vm2, %v2360_v21, %v684_v22  ;;  %v2274_v32 = vld [vmem:[%s3067_s22 + $0x20] sm:$0xf]  ;;  %v2868_v34 = vld [vmem:[%s3623_s1 + $0xc8] sm:$0xff]  ;;  %v732_v39 = vunpack.c.l.b16 %v689_v30  ;;  %v2882_v41 = vld [vmem:[%s3623_s1 + $0x138] sm:$0xff] }
  0x16   : > { %797 = vmatpush.bf16.msra.mxu2 %v2860_v7  ;;  %v2837_v35 = vld [vmem:[%s3067_s22 + $0x24] sm:$0xf0]  ;;  %v2266_v36 = vld [vmem:[%s3067_s22] sm:$0xf]  ;;  %v731_v38 = vunpack.c.l.b16 %v685_v29  ;;  %v2902_v42 = vld [vmem:[%s3623_s1 + $0x1b8] sm:$0xff] }
  0x17   : > { %951 = vmatpush.bf16.msra.mxu3 %v2872_v8  ;;  %v2835_v37 = vld [vmem:[%s3067_s22 + $0x4] sm:$0xf0]  ;;  %v2855_v40 = vld [vmem:[%s3623_s1 + $0x80] sm:$0xff]  ;;  %v2275_v46 = vor.u32 %v2837_v35, %v2274_v32  ;;  %v643_v49 = vld [vmem:[%s3067_s22 + $0x10] sm:$0xe] }
  0x18   : > { %v2867_v43 = vld [vmem:[%s3623_s1 + $0xc0] sm:$0xff]  ;;  %v376_v45 = vld [vmem:[%s3067_s22 + $0x8] sm:$0xf]  ;;  %v2267_v47 = vor.u32 %v2835_v37, %v2266_v36  ;;  %v644_v50 = vld [vmem:[%s3067_s22 + $0x14] sm:$0x1]  ;;  %v739_v51 = vpack.c.b16 %v732_v39, %v731_v38  ;;  %v2362_v62 = vrot.slane %v643_v49, 9 }
  0x19   : > { %2922 = vmatpush.bf16.msra.mxu1 %v2843_v9  ;;  %332 = vmatpush.bf16.msra.mxu0 %v2843_v9  ;;  %v374_v44 = vld [vmem:[%s3067_s22] sm:$0xf]  ;;  %v2442_v48 = vld [vmem:[%s3067_s22 + $0x8] sm:$0xf]  ;;  %v2863_v52 = vld [vmem:[%s3067_s22 + $0xc] sm:$0xf0] }
  0x1a   : > { %798 = vmatpush.bf16.msra.mxu2 %v2859_v10  ;;  %v645_v53 = vld [vmem:[%s3067_s22 + $0x18] sm:$0xe]  ;;  %v646_v54 = vld [vmem:[%s3067_s22 + $0x1c] sm:$0x1]  ;;  %v2853_v55 = vld [vmem:[%s3623_s1 + $0x70] sm:$0xff]  ;;  %v402_v57 = vshrl.u32 %v374_v44, 16  ;;  %v2443_v0 = vor.u32 %v2863_v52, %v2442_v48 }
  0x1b   : > { %952 = vmatpush.bf16.msra.mxu3 %v2871_v11  ;;  %v2910_v56 = vld [vmem:[%s3623_s1 + $0x1f8] sm:$0xff]  ;;  %v405_v58 = vshll.u32 %v374_v44, 16  ;;  %v416_v59 = vshrl.u32 %v376_v45, 16  ;;  %v419_v60 = vshll.u32 %v376_v45, 16  ;;  %v2881_v61 = vld [vmem:[%s3623_s1 + $0x130] sm:$0xff]  ;;  %v692_v1 = vrot.slane %v644_v50, 5  ;;  %vm3222_vm5 = vmor %vm398_vm3, %vm399_vm4 }
  0x1c   : > { %v2901_v63 = vld [vmem:[%s3623_s1 + $0x1b0] sm:$0xff]  ;;  %v2363_v2 = vrot.slane %v645_v53, 9  ;;  %v696_v3 = vrot.slane %v646_v54, 5  ;;  %v2488_v4 = vld [vmem:[%s3067_s22 + $0x8] sm:$0xf]  ;;  %v404_v9 = vrot.slane %v402_v57, 4 }
  0x1d   : > { %2923 = vmatpush.bf16.msra.mxu1 %v2842_v12  ;;  %333 = vmatpush.bf16.msra.mxu0 %v2842_v12  ;;  %v375_v5 = vld [vmem:[%s3067_s22 + $0x4] sm:$0x1]  ;;  %v377_v6 = vld [vmem:[%s3067_s22 + $0xc] sm:$0x1]  ;;  %v2490_v7 = vld [vmem:[%s3067_s22 + $0x10] sm:$0xf]  ;;  %v693_v21 = vsel %vm3085_vm2, %v2362_v62, %v692_v1 }
  0x1e   : > { %799 = vmatpush.bf16.msra.mxu2 %v2858_v13  ;;  %v2852_v8 = vld [vmem:[%s3623_s1 + $0x68] sm:$0xff]  ;;  %v407_v10 = vrot.slane %v405_v58, 5  ;;  %v418_v11 = vrot.slane %v416_v59, 4  ;;  %v421_v12 = vrot.slane %v419_v60, 5  ;;  %v2909_v13 = vld [vmem:[%s3623_s1 + $0x1f0] sm:$0xff]  ;;  %v1019_v17 = vshrl.u32 %v2488_v4, 16 }
  0x1f   : > { %953 = vmatpush.bf16.msra.mxu3 %v2870_v18  ;;  %v2880_v14 = vld [vmem:[%s3623_s1 + $0x128] sm:$0xff]  ;;  %v1022_v18 = vshll.u32 %v2488_v4, 16  ;;  %v697_v22 = vsel %vm3085_vm2, %v2363_v2, %v696_v3  ;;  %v411_v23 = vshll.u32 %v375_v5, 16  ;;  %v425_v24 = vshll.u32 %v377_v6, 16  ;;  %v2838_v32 = vld [vmem:[%s3067_s22 + $0x34] sm:$0xf0] }
  0x20   : > { %v2900_v15 = vld [vmem:[%s3623_s1 + $0x1a8] sm:$0xff]  ;;  %v1021_v35 = vrot.slane %v1019_v17, 4  ;;  %v2899_v37 = vld [vmem:[%s3623_s1 + $0x1a0] sm:$0xff]  ;;  %v2270_v38 = vld [vmem:[%s3067_s22 + $0x10] sm:$0xf] }
  0x21   : > { %2924 = vmatpush.bf16.msra.mxu1 %v2841_v19  ;;  %334 = vmatpush.bf16.msra.mxu0 %v2841_v19  ;;  %v2489_v16 = vld [vmem:[%s3067_s22 + $0xc] sm:$0x1]  ;;  %v1033_v19 = vshrl.u32 %v2490_v7, 16  ;;  %v1024_v36 = vrot.slane %v1022_v18, 5  ;;  %v2836_v39 = vld [vmem:[%s3067_s22 + $0x14] sm:$0xf0] }
  0x22   : > { %800 = vmatpush.bf16.msra.mxu2 %v2857_v20  ;;  %v1036_v20 = vshll.u32 %v2490_v7, 16  ;;  %v1028_v29 = vshll.u32 %v2489_v16, 16  ;;  %v2908_v30 = vld [vmem:[%s3623_s1 + $0x1e8] sm:$0xff]  ;;  %v3185_v44 = vrot.slane %v411_v23, 5  ;;  %v3187_v45 = vrot.slane %v425_v24, 5  ;;  %v2849_v57 = vld [vmem:[%s3623_s1 + $0x50] sm:$0xff] }
  0x23   : > { %954 = vmatpush.bf16.msra.mxu3 %v2869_v26  ;;  %v2851_v26 = vld [vmem:[%s3623_s1 + $0x60] sm:$0xff]  ;;  %v2446_v52 = vld [vmem:[%s3067_s22 + $0x18] sm:$0xf]  ;;  %v1025_v53 = vor.u32 %v1024_v36, %v1021_v35  ;;  %v378_v54 = vld [vmem:[%s3067_s22 + $0x10] sm:$0xf]  ;;  %v2271_v58 = vor.u32 %v2836_v39, %v2270_v38 }
  0x24   : > { %v3199_v50 = vrot.slane %v1028_v29, 5  ;;  %v2864_v59 = vld [vmem:[%s3067_s22 + $0x1c] sm:$0xf0]  ;;  %v2492_v62 = vld [vmem:[%s3067_s22 + $0x18] sm:$0xf]  ;;  %v430_v3 = vshrl.u32 %v378_v54, 16 }
  0x25   : > { %2925 = vmatpush.bf16.msra.mxu1 %v2840_v27  ;;  %335 = vmatpush.bf16.msra.mxu0 %v2840_v27  ;;  %v408_v27 = vor.u32 %v407_v10, %v404_v9  ;;  %v649_v1 = vld [vmem:[%s3067_s22 + $0x28] sm:$0xe]  ;;  %v650_v2 = vld [vmem:[%s3067_s22 + $0x2c] sm:$0x1]  ;;  %v433_v4 = vshll.u32 %v378_v54, 16  ;;  %v1026_v9 = vrot.slane %v1025_v53, 4 }
  0x26   : > { %801 = vmatpush.bf16.msra.mxu2 %v2856_v28  ;;  %v422_v28 = vor.u32 %v421_v12, %v418_v11  ;;  %v2494_v7 = vld [vmem:[%s3067_s22 + $0x20] sm:$0xf]  ;;  %v1047_v11 = vshrl.u32 %v2492_v62, 16  ;;  %v1050_v12 = vshll.u32 %v2492_v62, 16  ;;  %v2890_v53 = vld [vmem:[%s3623_s1 + $0x178] sm:$0xff] }
  0x27   : > { %955 = vmatpush.bf16.msra.mxu3 %v2868_v34  ;;  %v2491_v34 = vld [vmem:[%s3067_s22 + $0x14] sm:$0x1]  ;;  %v3195_v48 = vrot.slane %v408_v27, 4  ;;  %v1061_v23 = vshrl.u32 %v2494_v7, 16  ;;  %v1064_v24 = vshll.u32 %v2494_v7, 16  ;;  %v435_v29 = vrot.slane %v433_v4, 5 }
  0x28   : > { %v3197_v49 = vrot.slane %v422_v28, 4  ;;  %v379_v27 = vld [vmem:[%s3067_s22 + $0x14] sm:$0x1]  ;;  %v432_v28 = vrot.slane %v430_v3, 4  ;;  %v1049_v35 = vrot.slane %v1047_v11, 4  ;;  %v1052_v36 = vrot.slane %v1050_v12, 5 }
  0x29   : > { %2926 = vmatpush.bf16.msra.mxu1 %v2839_v31  ;;  %336 = vmatpush.bf16.msra.mxu0 %v2839_v31  ;;  %v2278_v31 = vld [vmem:[%s3067_s22 + $0x30] sm:$0xf]  ;;  %v1031_v38 = vsel %vm3222_vm5, %v1026_v9, %v3199_v50  ;;  %v2875_v54 = vld [vmem:[%s3623_s1 + $0x100] sm:$0xff]  ;;  %v384_v4 = vld [vmem:[%s3067_s22 + $0x28] sm:$0xf] }
  0x2a   : > { %802 = vmatpush.bf16.msra.mxu2 %v2855_v40  ;;  %v733_v40 = vunpack.c.l.b16 %v693_v21  ;;  %v2365_v21 = vrot.slane %v649_v1, 9  ;;  %v382_v62 = vld [vmem:[%s3067_s22 + $0x20] sm:$0xf]  ;;  %v2889_v1 = vld [vmem:[%s3623_s1 + $0x170] sm:$0xff] }
  0x2b   : > { %956 = vmatpush.bf16.msra.mxu3 %v2867_v43  ;;  %v1038_v43 = vrot.slane %v1036_v20, 5  ;;  %v2876_v20 = vld [vmem:[%s3623_s1 + $0x108] sm:$0xff] }
  0x2c   : > { %347 = vmatmul.bf16.vlgmr.msra.gmra.mxu1 %v2275_v46  ;;  %337 = vmatmul.bf16.vlgmr.msra.gmra.mxu0 %v2267_v47  ;;  %v2850_v46 = vld [vmem:[%s3623_s1 + $0x58] sm:$0xff] }
  0x2d   : > { %594 = vmatpush.bf16.msrb.mxu1 %v2854_v33  ;;  %1211 = vmatpush.bf16.msrb.mxu0 %v2882_v41  ;;  %v2879_v33 = vld [vmem:[%s3623_s1 + $0x120] sm:$0xff]  ;;  %v734_v41 = vunpack.c.l.b16 %v697_v22  ;;  %v2878_v47 = vld [vmem:[%s3623_s1 + $0x118] sm:$0xff]  ;;  %v704_v22 = vrot.slane %v650_v2, 5 }
  0x2e   : > { %1563 = vmatpush.bf16.msrb.mxu2 %v2902_v42  ;;  %957 = vmatmul.bf16.vlgmr.msra.gmra.mxu3 %v2443_v0  ;;  %v1035_v42 = vrot.slane %v1033_v19, 4  ;;  %v648_v0 = vld [vmem:[%s3067_s22 + $0x24] sm:$0x1]  ;;  %v2898_v19 = vld [vmem:[%s3623_s1 + $0x198] sm:$0xff] }
  0x2f   : > { %803 = vmatmul.bf16.vlgmr.msra.gmra.mxu2 %v739_v51  ;;  %1825 = vmatpush.bf16.msrb.mxu3 %v2910_v56  ;;  %v1042_v51 = vshll.u32 %v2491_v34, 16  ;;  %v2279_v56 = vor.u32 %v2838_v32, %v2278_v31  ;;  %v700_v18 = vrot.slane %v648_v0, 5  ;;  %v414_v32 = vsel %vm3222_vm5, %v3195_v48, %v3185_v44  ;;  %v2493_v34 = vld [vmem:[%s3067_s22 + $0x1c] sm:$0x1]  ;;  %v2847_v48 = vld [vmem:[%s3623_s1 + $0x40] sm:$0xff] }
  0x30   : > { %v1039_v60 = vor.u32 %v1038_v43, %v1035_v42  ;;  %v2897_v42 = vld [vmem:[%s3623_s1 + $0x190] sm:$0xff]  ;;  %v2906_v43 = vld [vmem:[%s3623_s1 + $0x1d8] sm:$0xff]  ;;  %v705_v44 = vsel %vm3085_vm2, %v2365_v21, %v704_v22  ;;  %v2496_v21 = vld [vmem:[%s3067_s22 + $0x28] sm:$0xf] }
  0x31   : > { %595 = vmatpush.bf16.msrb.mxu1 %v2853_v55  ;;  %1212 = vmatpush.bf16.msrb.mxu0 %v2881_v61  ;;  %v380_v55 = vld [vmem:[%s3067_s22 + $0x18] sm:$0xf]  ;;  %v647_v61 = vld [vmem:[%s3067_s22 + $0x20] sm:$0xe]  ;;  %v1044_v10 = vrot.slane %v1042_v51, 5  ;;  %v736_v0 = vunpack.c.l.b16 %v705_v44 }
  0x32   : > { %1564 = vmatpush.bf16.msrb.mxu2 %v2901_v63  ;;  %v740_v63 = vpack.c.b16 %v734_v41, %v733_v40  ;;  %v444_v5 = vshrl.u32 %v380_v55, 16  ;;  %v447_v6 = vshll.u32 %v380_v55, 16  ;;  %v1040_v16 = vrot.slane %v1039_v60, 4  ;;  %v2495_v41 = vld [vmem:[%s3067_s22 + $0x24] sm:$0x1] }
  0x33   : > { %1826 = vmatpush.bf16.msrb.mxu3 %v2909_v13  ;;  %v2848_v13 = vld [vmem:[%s3623_s1 + $0x48] sm:$0xff]  ;;  %v2364_v17 = vrot.slane %v647_v61, 9  ;;  %v1053_v55 = vor.u32 %v1052_v36, %v1049_v35  ;;  %v3274_v61 = vld [vmem:[%s3623_s1 + $0x238] sm:$0xff]  ;;  %v1075_v36 = vshrl.u32 %v2496_v21, 16 }
  0x34   : > { %v449_v31 = vrot.slane %v447_v6, 5  ;;  %v1045_v39 = vsel %vm3222_vm5, %v1040_v16, %v1044_v10  ;;  %v2865_v10 = vld [vmem:[%s3067_s22 + $0x2c] sm:$0xf0]  ;;  %v2896_v35 = vld [vmem:[%s3623_s1 + $0x188] sm:$0xff] }
  0x35   : > { %596 = vmatpush.bf16.msrb.mxu1 %v2852_v8  ;;  %1213 = vmatpush.bf16.msrb.mxu0 %v2880_v14  ;;  %v2877_v8 = vld [vmem:[%s3623_s1 + $0x110] sm:$0xff]  ;;  %v701_v40 = vsel %vm3085_vm2, %v2364_v17, %v700_v18  ;;  %v1148_v60 = vunpack.c.l.b16 %v1045_v39  ;;  %v3293_v11 = vrot.slane %v1053_v55, 4 }
  0x36   : > { %1565 = vmatpush.bf16.msrb.mxu2 %v2900_v15  ;;  %v2447_v15 = vor.u32 %v2864_v59, %v2446_v52  ;;  %v1056_v52 = vshll.u32 %v2493_v34, 16  ;;  %v1147_v59 = vunpack.c.l.b16 %v1031_v38  ;;  %v3299_v18 = vld [vmem:[%s3067_s22 + $0x30] sm:$0xe]  ;;  %v385_v38 = vld [vmem:[%s3067_s22 + $0x2c] sm:$0x1] }
  0x37   : > { %1827 = vmatpush.bf16.msrb.mxu3 %v2908_v30  ;;  %v446_v30 = vrot.slane %v444_v5, 4  ;;  %v2768_v14 = vld [vmem:[%s3067_s22 + $0x30] sm:$0xe] }
  0x38   : > { %v3290_v9 = vrot.slane %v1056_v52, 5  ;;  %v1155_v17 = vpack.c.b16 %v1148_v60, %v1147_v59  ;;  %v2904_v59 = vld [vmem:[%s3623_s1 + $0x1c8] sm:$0xff] }
  0x39   : > { %597 = vmatpush.bf16.msrb.mxu1 %v2851_v26  ;;  %1214 = vmatpush.bf16.msrb.mxu0 %v2879_v33  ;;  %v2907_v26 = vld [vmem:[%s3623_s1 + $0x1e0] sm:$0xff]  ;;  %v381_v33 = vld [vmem:[%s3067_s22 + $0x1c] sm:$0x1]  ;;  %v450_v50 = vor.u32 %v449_v31, %v446_v30 }
  0x3a   : > { %1566 = vmatpush.bf16.msrb.mxu2 %v2899_v37  ;;  %v428_v37 = vsel %vm3222_vm5, %v3197_v49, %v3187_v45  ;;  %v439_v45 = vshll.u32 %v379_v27, 16  ;;  %v436_v49 = vor.u32 %v435_v29, %v432_v28  ;;  %v453_v51 = vshll.u32 %v381_v33, 16  ;;  %v2498_v27 = vld [vmem:[%s3067_s22 + $0x30] sm:$0xf]  ;;  %v653_v29 = vld [vmem:[%s3067_s22 + $0x38] sm:$0xe] }
  0x3b   : > { %1828 = vmatpush.bf16.msrb.mxu3 %v2907_v26  ;;  %v3285_v6 = vrot.slane %v450_v50, 4  ;;  %v3306_v26 = vld [vmem:[%s3623_s1 + $0x230] sm:$0xff]  ;;  %v654_v30 = vld [vmem:[%s3067_s22 + $0x3c] sm:$0x1]  ;;  %v383_v31 = vld [vmem:[%s3067_s22 + $0x24] sm:$0x1] }
  0x3c   : > { %352 = vmatmul.bf16.gmra.mxu1 %v2279_v56  ;;  %342 = vmatmul.bf16.gmra.mxu0 %v2271_v58  ;;  %v1070_v56 = vshll.u32 %v2495_v41, 16  ;;  %v531_v58 = vunpack.c.l.b16 %v428_v37  ;;  %v3280_v2 = vrot.slane %v439_v45, 5  ;;  %v3283_v5 = vrot.slane %v436_v49, 4 }
  0x3d   : > { %598 = vmatpush.bf16.msrb.mxu1 %v2850_v46  ;;  %1215 = vmatpush.bf16.msrb.mxu0 %v2878_v47  ;;  %v1063_v46 = vrot.slane %v1061_v23, 4  ;;  %v1066_v47 = vrot.slane %v1064_v24, 5  ;;  %v3287_v7 = vrot.slane %v453_v51, 5  ;;  %v652_v24 = vld [vmem:[%s3067_s22 + $0x34] sm:$0x1]  ;;  %v1078_v37 = vshll.u32 %v2496_v21, 16 }
  0x3e   : > { %1567 = vmatpush.bf16.msrb.mxu2 %v2898_v19  ;;  %962 = vmatmul.bf16.gmra.mxu3 %v2447_v15  ;;  %v3295_v12 = vrot.slane %v1070_v56, 5  ;;  %v461_v15 = vshll.u32 %v382_v62, 16  ;;  %v472_v19 = vshrl.u32 %v384_v4, 16  ;;  %v1089_v41 = vshrl.u32 %v2498_v27, 16 }
  0x3f   : > { %808 = vmatmul.bf16.gmra.mxu2 %v740_v63  ;;  %1829 = vmatpush.bf16.msrb.mxu3 %v2906_v43  ;;  %v735_v63 = vunpack.c.l.b16 %v701_v40  ;;  %v1067_v3 = vor.u32 %v1066_v47, %v1063_v46  ;;  %v442_v43 = vsel %vm3222_vm5, %v3283_v5, %v3280_v2  ;;  %v456_v44 = vsel %vm3222_vm5, %v3285_v6, %v3287_v7  ;;  %v3336_v47 = vld [vmem:[%s3623_s1 + $0x228] sm:$0xff]  ;;  %v3359_v5 = vld [vmem:[%s3623_s1 + $0x220] sm:$0xff] }
  0x40   : > { %v463_v34 = vrot.slane %v461_v15, 5  ;;  %v474_v39 = vrot.slane %v472_v19, 4  ;;  %v1059_v45 = vsel %vm3222_vm5, %v3293_v11, %v3290_v9  ;;  %v2366_v46 = vrot.slane %v3299_v18, 9  ;;  %v2886_v11 = vld [vmem:[%s3623_s1 + $0x158] sm:$0xff] }
  0x41   : > { %599 = vmatpush.bf16.msrb.mxu1 %v2849_v57  ;;  %1216 = vmatpush.bf16.msrb.mxu0 %v2877_v8  ;;  %v530_v57 = vunpack.c.l.b16 %v414_v32  ;;  %v2450_v8 = vld [vmem:[%s3067_s22 + $0x28] sm:$0xf]  ;;  %v741_v22 = vpack.c.b16 %v736_v0, %v735_v63  ;;  %v1068_v23 = vrot.slane %v1067_v3, 4  ;;  %v708_v50 = vrot.slane %v652_v24, 5  ;;  %v2497_v63 = vld [vmem:[%s3067_s22 + $0x2c] sm:$0x1] }
  0x42   : > { %1568 = vmatpush.bf16.msrb.mxu2 %v2897_v42  ;;  %v2451_v28 = vor.u32 %v2865_v10, %v2450_v8  ;;  %v2888_v32 = vld [vmem:[%s3623_s1 + $0x168] sm:$0xff]  ;;  %v1092_v42 = vshll.u32 %v2498_v27, 16  ;;  %v2367_v51 = vrot.slane %v653_v29, 9  ;;  %v712_v52 = vrot.slane %v654_v30, 5  ;;  %v2499_v0 = vld [vmem:[%s3067_s22 + $0x34] sm:$0x1] }
  0x43   : > { %v538_v16 = vpack.c.b16 %v531_v58, %v530_v57  ;;  %v1073_v49 = vsel %vm3222_vm5, %v1068_v23, %v3295_v12  ;;  %v467_v55 = vshll.u32 %v383_v31, 16  ;;  %v481_v56 = vshll.u32 %v385_v38, 16  ;;  %v386_v38 = vld [vmem:[%s3067_s22 + $0x30] sm:$0xf] }
  0x44   : > { %v1077_v57 = vrot.slane %v1075_v36, 4  ;;  %v1080_v58 = vrot.slane %v1078_v37, 5  ;;  %v1094_v2 = vrot.slane %v1092_v42, 5  ;;  %v532_v3 = vunpack.c.l.b16 %v442_v43 }
  0x45   : > { %600 = vmatpush.bf16.msrb.mxu1 %v2848_v13  ;;  %1217 = vmatpush.bf16.msrb.mxu0 %v2876_v20  ;;  %v458_v13 = vshrl.u32 %v382_v62, 16  ;;  %v475_v20 = vshll.u32 %v384_v4, 16  ;;  %v533_v4 = vunpack.c.l.b16 %v456_v44  ;;  %v1149_v6 = vunpack.c.l.b16 %v1059_v45  ;;  %v388_v45 = vld [vmem:[%s3067_s22 + $0x38] sm:$0xf] }
  0x46   : > { %1569 = vmatpush.bf16.msrb.mxu2 %v2896_v35  ;;  %v1150_v7 = vunpack.c.l.b16 %v1073_v49  ;;  %v709_v8 = vsel %vm3085_vm2, %v2366_v46, %v708_v50  ;;  %v713_v9 = vsel %vm3085_vm2, %v2367_v51, %v712_v52  ;;  %v469_v10 = vrot.slane %v467_v55, 5  ;;  %v2500_v46 = vld [vmem:[%s3067_s22 + $0x38] sm:$0xf]  ;;  %v2884_v51 = vld [vmem:[%s3623_s1 + $0x148] sm:$0xff] }
  0x47   : > { %v460_v33 = vrot.slane %v458_v13, 4  ;;  %v477_v40 = vrot.slane %v475_v20, 5  ;;  %v1081_v12 = vor.u32 %v1080_v58, %v1077_v57  ;;  %v1084_v13 = vshll.u32 %v2497_v63, 16  ;;  %v3401_v52 = vld [vmem:[%s3623_s1 + $0x218] sm:$0xff] }
  0x48   : > { %v1098_v15 = vshll.u32 %v2499_v0, 16  ;;  %v483_v18 = vrot.slane %v481_v56, 5  ;;  %v737_v20 = vunpack.c.l.b16 %v709_v8  ;;  %v738_v21 = vunpack.c.l.b16 %v713_v9  ;;  %v2502_v56 = vld [vmem:[%s3067_s22 + $0x40] sm:$0xf] }
  0x49   : > { %601 = vmatpush.bf16.msrb.mxu1 %v2847_v48  ;;  %1218 = vmatpush.bf16.msrb.mxu0 %v2875_v54  ;;  %v2905_v48 = vld [vmem:[%s3623_s1 + $0x1d0] sm:$0xff]  ;;  %v2887_v54 = vld [vmem:[%s3623_s1 + $0x160] sm:$0xff]  ;;  %v464_v60 = vor.u32 %v463_v34, %v460_v33  ;;  %v478_v62 = vor.u32 %v477_v40, %v474_v39  ;;  %v539_v23 = vpack.c.b16 %v533_v4, %v532_v3  ;;  %v1086_v29 = vrot.slane %v1084_v13, 5  ;;  %v2454_v33 = vld [vmem:[%s3067_s22 + $0x38] sm:$0xf] }
  0x4a   : > { %1830 = vmatpush.bf16.msrb.mxu3 %v2905_v48  ;;  %v1156_v27 = vpack.c.b16 %v1150_v7, %v1149_v6  ;;  %v1100_v30 = vrot.slane %v1098_v15, 5  ;;  %v2866_v34 = vld [vmem:[%s3067_s22 + $0x3c] sm:$0xf0]  ;;  %v742_v37 = vpack.c.b16 %v738_v21, %v737_v20  ;;  %v2697_v39 = vld [vmem:[%s3067_s22 + $0x14] sm:$0x1]  ;;  %v486_v50 = vshrl.u32 %v386_v38, 16 }
  0x4b   : > { %v2698_v40 = vld [vmem:[%s3067_s22 + $0x18] sm:$0xf]  ;;  %v2455_v44 = vor.u32 %v2866_v34, %v2454_v33  ;;  %v2699_v48 = vld [vmem:[%s3067_s22 + $0x1c] sm:$0x1]  ;;  %v489_v55 = vshll.u32 %v386_v38, 16  ;;  %v1642_v57 = vshll.u32 %v2697_v39, 16 }
  0x4c   : > { %602 = vmatmul.bf16.vlgmr.msrb.gmra.mxu1 %v538_v16  ;;  %1219 = vmatmul.bf16.vlgmr.msrb.gmra.mxu0 %v1155_v17  ;;  %v465_v16 = vrot.slane %v464_v60, 4  ;;  %v479_v17 = vrot.slane %v478_v62, 4  ;;  %v1647_v58 = vshrl.u32 %v2698_v40, 16  ;;  %v3408_v60 = vld [vmem:[%s3067_s22 + $0x34] sm:$0x1]  ;;  %v500_v62 = vshrl.u32 %v388_v45, 16 }
  0x4d   : > { %1409 = vmatpush.bf16.msra.mxu1 %v2890_v53  ;;  %2023 = vmatpush.bf16.msra.mxu0 %v3274_v61  ;;  %v2895_v53 = vld [vmem:[%s3623_s1 + $0x180] sm:$0xff]  ;;  %v503_v63 = vshll.u32 %v388_v45, 16  ;;  %v1103_v0 = vshrl.u32 %v2500_v46, 16  ;;  %v1106_v3 = vshll.u32 %v2500_v46, 16  ;;  %v1656_v7 = vshll.u32 %v2699_v48, 16 }
  0x4e   : > { %967 = vmatmul.bf16.gmra.mxu3 %v2451_v28  ;;  %1570 = vmatpush.bf16.msrb.mxu2 %v2895_v53  ;;  %v1082_v28 = vrot.slane %v1081_v12, 4  ;;  %v470_v31 = vsel %vm3222_vm5, %v465_v16, %v469_v10  ;;  %v2903_v53 = vld [vmem:[%s3623_s1 + $0x1c0] sm:$0xff]  ;;  %v1649_v4 = vrot.slane %v1647_v58, 4  ;;  %v3424_v12 = vld [vmem:[%s3067_s22 + $0x14] sm:$0xf0]  ;;  %v1117_v13 = vshrl.u32 %v2502_v56, 16 }
  0x4f   : > { %813 = vmatmul.bf16.gmra.mxu2 %v741_v22  ;;  %1831 = vmatpush.bf16.msrb.mxu3 %v2904_v59  ;;  %v2696_v22 = vld [vmem:[%s3067_s22 + $0x10] sm:$0xf]  ;;  %v3384_v42 = vunpack.c.l.b16 %v470_v31  ;;  %v1650_v59 = vshll.u32 %v2698_v40, 16  ;;  %v2883_v8 = vld [vmem:[%s3623_s1 + $0x140] sm:$0xff]  ;;  %v1120_v15 = vshll.u32 %v2502_v56, 16  ;;  %v1658_v20 = vrot.slane %v1656_v7, 5 }
  0x50   : > { %v1633_v24 = vshrl.u32 %v2696_v22, 16  ;;  %v1636_v36 = vshll.u32 %v2696_v22, 16  ;;  %v389_v16 = vld [vmem:[%s3067_s22 + $0x3c] sm:$0x1]  ;;  %v488_v21 = vrot.slane %v486_v50, 4  ;;  %v491_v22 = vrot.slane %v489_v55, 5 }
  0x51   : > { %1410 = vmatpush.bf16.msra.mxu1 %v2889_v1  ;;  %2024 = vmatpush.bf16.msra.mxu0 %v3306_v26  ;;  %v1091_v1 = vrot.slane %v1089_v41, 4  ;;  %v1652_v6 = vrot.slane %v1650_v59, 5  ;;  %v1119_v33 = vrot.slane %v1117_v13, 4  ;;  %v1122_v34 = vrot.slane %v1120_v15, 5  ;;  %v2701_v56 = vld [vmem:[%s3067_s22 + $0x24] sm:$0x1] }
  0x52   : > { %2927 = vmatpush.bf16.msra.mxu2 %v3274_v61  ;;  %v2885_v61 = vld [vmem:[%s3623_s1 + $0x150] sm:$0xff]  ;;  %v1635_v41 = vrot.slane %v1633_v24, 4  ;;  %v2912_v24 = vld [vmem:[%s3623_s1 + $0x208] sm:$0xff]  ;;  %v492_v45 = vor.u32 %v491_v22, %v488_v21  ;;  %v1670_v7 = vshll.u32 %v2701_v56, 16 }
  0x53   : > { %v1095_v19 = vor.u32 %v1094_v2, %v1091_v1  ;;  %1832 = vmatpush.bf16.msrb.mxu3 %v2903_v53  ;;  %v3414_v2 = vld [vmem:[%s3623_s1 + $0x210] sm:$0xff] }
  0x54   : > { %v1672_v15 = vrot.slane %v1670_v7, 5 }
  0x55   : > { %1411 = vmatpush.bf16.msra.mxu1 %v2888_v32  ;;  %2025 = vmatpush.bf16.msra.mxu0 %v3336_v47  ;;  %v484_v32 = vsel %vm3222_vm5, %v479_v17, %v483_v18  ;;  %v1096_v35 = vrot.slane %v1095_v19, 4  ;;  %v1644_v18 = vrot.slane %v1642_v57, 5  ;;  %v1653_v19 = vor.u32 %v1652_v6, %v1649_v4  ;;  %v2911_v4 = vld [vmem:[%s3623_s1 + $0x200] sm:$0xff] }
  0x56   : > { %2928 = vmatpush.bf16.msra.mxu2 %v3306_v26  ;;  %v3386_v43 = vunpack.c.l.b16 %v484_v32  ;;  %v1087_v26 = vsel %vm3222_vm5, %v1082_v28, %v1086_v29  ;;  %v2501_v28 = vld [vmem:[%s3067_s22 + $0x3c] sm:$0x1]  ;;  %v1105_v29 = vrot.slane %v1103_v0, 4 }
  0x57   : > { %v1101_v49 = vsel %vm3222_vm5, %v1096_v35, %v1100_v30  ;;  %v1151_v9 = vunpack.c.l.b16 %v1087_v26  ;;  %v1108_v30 = vrot.slane %v1106_v3, 5  ;;  %v2700_v35 = vld [vmem:[%s3067_s22 + $0x20] sm:$0xf]  ;;  %v1112_v26 = vshll.u32 %v2501_v28, 16  ;;  %v2706_v28 = vld [vmem:[%s3067_s22 + $0x38] sm:$0xf] }
  0x58   : > { %v1152_v10 = vunpack.c.l.b16 %v1101_v49  ;;  %v540_v31 = vpack.c.b16 %v3386_v43, %v3384_v42  ;;  %v1661_v39 = vshrl.u32 %v2700_v35, 16  ;;  %v1664_v40 = vshll.u32 %v2700_v35, 16 }
  0x59   : > { %1412 = vmatpush.bf16.msra.mxu1 %v2887_v54  ;;  %2026 = vmatpush.bf16.msra.mxu0 %v3359_v5  ;;  %v1638_v54 = vrot.slane %v1636_v36, 5  ;;  %v2702_v36 = vld [vmem:[%s3067_s22 + $0x28] sm:$0xf]  ;;  %v1109_v48 = vor.u32 %v1108_v30, %v1105_v29 }
  0x5a   : > { %2929 = vmatpush.bf16.msra.mxu2 %v3336_v47  ;;  %v495_v47 = vshll.u32 %v3408_v60, 16  ;;  %v1675_v42 = vshrl.u32 %v2702_v36, 16  ;;  %v1678_v43 = vshll.u32 %v2702_v36, 16  ;;  %v1666_v53 = vrot.slane %v1664_v40, 5  ;;  %v2703_v60 = vld [vmem:[%s3067_s22 + $0x2c] sm:$0x1] }
  0x5b   : > { %v1639_v1 = vor.u32 %v1638_v54, %v1635_v41  ;;  %v1157_v41 = vpack.c.b16 %v1152_v10, %v1151_v9  ;;  %v1123_v54 = vor.u32 %v1122_v34, %v1119_v33  ;;  %v2892_v29 = vld [vmem:[%s3067_s22 + $0x24] sm:$0xf0]  ;;  %v1706_v34 = vshll.u32 %v2706_v28, 16  ;;  %v2553_v36 = vld [vmem:[%s3067_s22 + $0xc] sm:$0x1] }
  0x5c   : > { %607 = vmatmul.bf16.gmra.mxu1 %v539_v23  ;;  %1224 = vmatmul.bf16.gmra.mxu0 %v1156_v27  ;;  %v502_v23 = vrot.slane %v500_v62, 4  ;;  %v505_v27 = vrot.slane %v503_v63, 5  ;;  %v1677_v57 = vrot.slane %v1675_v42, 4  ;;  %v1680_v58 = vrot.slane %v1678_v43, 5  ;;  %v2552_v33 = vld [vmem:[%s3067_s22 + $0x8] sm:$0xe] }
  0x5d   : > { %1413 = vmatpush.bf16.msra.mxu1 %v2886_v11  ;;  %2027 = vmatpush.bf16.msra.mxu0 %v3401_v52  ;;  %v3421_v11 = vld [vmem:[%s3067_s22 + $0x10] sm:$0xf]  ;;  %v1640_v17 = vrot.slane %v1639_v1, 4  ;;  %v497_v59 = vrot.slane %v495_v47, 5  ;;  %v493_v62 = vrot.slane %v492_v45, 4  ;;  %v1110_v1 = vrot.slane %v1109_v48, 4 }
  0x5e   : > { %972 = vmatmul.bf16.gmra.mxu3 %v2455_v44  ;;  %2930 = vmatpush.bf16.msra.mxu2 %v3359_v5  ;;  %v2651_v32 = vor.u32 %v3424_v12, %v3421_v11  ;;  %v509_v5 = vshll.u32 %v389_v16, 16  ;;  %v2503_v44 = vld [vmem:[%s3067_s22 + $0x44] sm:$0x1]  ;;  %v506_v46 = vor.u32 %v505_v27, %v502_v23  ;;  %v1681_v10 = vor.u32 %v1680_v58, %v1677_v57  ;;  %v2654_v23 = vld [vmem:[%s3067_s22 + $0x20] sm:$0xf] }
  0x5f   : > { %818 = vmatmul.bf16.gmra.mxu2 %v742_v37  ;;  %v1645_v37 = vsel %vm3222_vm5, %v1640_v17, %v1644_v18  ;;  %v1126_v55 = vshll.u32 %v2503_v44, 16  ;;  %v1684_v11 = vshll.u32 %v2703_v60, 16  ;;  %v2704_v27 = vld [vmem:[%s3067_s22 + $0x30] sm:$0xf]  ;;  %v2655_v40 = vor.u32 %v2892_v29, %v2654_v23  ;;  %v2761_v42 = vld [vmem:[%s3067_s22 + $0x14] sm:$0x1] }
  0x60   : > { %v1761_v49 = vunpack.c.l.b16 %v1645_v37  ;;  %v507_v63 = vrot.slane %v506_v46, 4  ;;  %v511_v0 = vrot.slane %v509_v5, 5  ;;  %v1682_v18 = vrot.slane %v1681_v10, 4  ;;  %v2554_v37 = vld [vmem:[%s3067_s22 + $0x10] sm:$0xe] }
  0x61   : > { %1414 = vmatpush.bf16.msra.mxu1 %v2885_v61  ;;  %2028 = vmatpush.bf16.msra.mxu0 %v3414_v2  ;;  %v1654_v61 = vrot.slane %v1653_v19, 4  ;;  %v1128_v9 = vrot.slane %v1126_v55, 5  ;;  %v1686_v19 = vrot.slane %v1684_v11, 5  ;;  %v2760_v44 = vld [vmem:[%s3067_s22 + $0x10] sm:$0xe]  ;;  %v2569_v55 = vrot.slane %v2554_v37, 9 }
  0x62   : > { %2931 = vmatpush.bf16.msra.mxu2 %v3401_v52  ;;  %v1114_v52 = vrot.slane %v1112_v26, 5  ;;  %v512_v12 = vsel %vm3222_vm5, %v507_v63, %v511_v0  ;;  %v2762_v43 = vld [vmem:[%s3067_s22 + $0x18] sm:$0xe]  ;;  %v2763_v45 = vld [vmem:[%s3067_s22 + $0x1c] sm:$0x1]  ;;  %v2776_v57 = vrot.slane %v2760_v44, 9 }
  0x63   : > { %v1659_v38 = vsel %vm3222_vm5, %v1654_v61, %v1658_v20  ;;  %v537_v21 = vunpack.c.l.b16 %v512_v12  ;;  %v1687_v30 = vsel %vm3222_vm5, %v1682_v18, %v1686_v19  ;;  %v1689_v61 = vshrl.u32 %v2704_v27, 16  ;;  %v2893_v18 = vld [vmem:[%s3067_s22 + $0x34] sm:$0xf0]  ;;  %v2708_v23 = vld [vmem:[%s3067_s22 + $0x40] sm:$0xf] }
  0x64   : > { %v1762_v50 = vunpack.c.l.b16 %v1659_v38  ;;  %v1115_v16 = vsel %vm3222_vm5, %v1110_v1, %v1114_v52  ;;  %v2555_v38 = vld [vmem:[%s3067_s22 + $0x14] sm:$0x1]  ;;  %v1764_v5 = vunpack.c.l.b16 %v1687_v30  ;;  %v2777_v60 = vrot.slane %v2762_v43, 9  ;;  %v2711_v44 = vld [vmem:[%s3067_s22 + $0x4c] sm:$0x1] }
  0x65   : > { %1415 = vmatpush.bf16.msra.mxu1 %v2884_v51  ;;  %2029 = vmatpush.bf16.msra.mxu0 %v2912_v24  ;;  %v1663_v51 = vrot.slane %v1661_v39, 4  ;;  %v1153_v22 = vunpack.c.l.b16 %v1115_v16  ;;  %v1691_v46 = vrot.slane %v1689_v61, 4  ;;  %v1302_v56 = vrot.slane %v2555_v38, 5  ;;  %v2556_v16 = vld [vmem:[%s3067_s22 + $0x18] sm:$0xe] }
  0x66   : > { %2932 = vmatpush.bf16.msra.mxu2 %v3414_v2  ;;  %v1769_v3 = vpack.c.b16 %v1762_v50, %v1761_v49  ;;  %v498_v2 = vsel %vm3222_vm5, %v493_v62, %v497_v59  ;;  %v1708_v49 = vrot.slane %v1706_v34, 5  ;;  %v2568_v50 = vrot.slane %v2552_v33, 9  ;;  %v2764_v34 = vld [vmem:[%s3067_s22 + $0x20] sm:$0xe]  ;;  %v2766_v38 = vld [vmem:[%s3067_s22 + $0x28] sm:$0xe] }
  0x67   : > { %v1667_v6 = vor.u32 %v1666_v53, %v1663_v51  ;;  %v536_v20 = vunpack.c.l.b16 %v498_v2  ;;  %v2705_v51 = vld [vmem:[%s3067_s22 + $0x34] sm:$0x1]  ;;  %v2707_v53 = vld [vmem:[%s3067_s22 + $0x3c] sm:$0x1]  ;;  %v1912_v59 = vrot.slane %v2761_v42, 5  ;;  %v1916_v62 = vrot.slane %v2763_v45, 5 }
  0x68   : > { %v1698_v0 = vshll.u32 %v2705_v51, 16  ;;  %v1712_v52 = vshll.u32 %v2707_v53, 16  ;;  %v1717_v29 = vshrl.u32 %v2708_v23, 16  ;;  %v1720_v30 = vshll.u32 %v2708_v23, 16  ;;  %v2771_v23 = vld [vmem:[%s3067_s22 + $0x3c] sm:$0x1] }
  0x69   : > { %1416 = vmatpush.bf16.msra.mxu1 %v2883_v8  ;;  %v1124_v8 = vrot.slane %v1123_v54, 4  ;;  %2030 = vmatpush.bf16.msra.mxu0 %v2911_v4  ;;  %v1668_v13 = vrot.slane %v1667_v6, 4  ;;  %v541_v35 = vpack.c.b16 %v537_v21, %v536_v20  ;;  %v1298_v54 = vrot.slane %v2553_v36, 5 }
  0x6a   : > { %2933 = vmatpush.bf16.msra.mxu2 %v2912_v24  ;;  %v1913_v6 = vsel %vm3085_vm2, %v2776_v57, %v1912_v59  ;;  %v1917_v7 = vsel %vm3085_vm2, %v2777_v60, %v1916_v62  ;;  %v1714_v11 = vrot.slane %v1712_v52, 5  ;;  %v2779_v51 = vrot.slane %v2766_v38, 9 }
  0x6b   : > { %v1129_v17 = vsel %vm3222_vm5, %v1124_v8, %v1128_v9  ;;  %v1673_v24 = vsel %vm3222_vm5, %v1668_v13, %v1672_v15  ;;  %v1700_v9 = vrot.slane %v1698_v0, 5  ;;  %v1959_v13 = vunpack.c.l.b16 %v1913_v6 }
  0x6c   : > { %612 = vmatmul.bf16.gmra.mxu1 %v540_v31  ;;  %1229 = vmatmul.bf16.gmra.mxu0 %v1157_v41  ;;  %v1154_v47 = vunpack.c.l.b16 %v1129_v17  ;;  %v1692_v31 = vshll.u32 %v2704_v27, 16  ;;  %v1763_v41 = vunpack.c.l.b16 %v1673_v24  ;;  %v1960_v15 = vunpack.c.l.b16 %v1917_v7  ;;  %v2658_v17 = vld [vmem:[%s3067_s22 + $0x30] sm:$0xf]  ;;  %v2710_v24 = vld [vmem:[%s3067_s22 + $0x48] sm:$0xf] }
  0x6d   : > { %v2559_v27 = vld [vmem:[%s3067_s22 + $0x24] sm:$0x1]  ;;  %v1731_v61 = vshrl.u32 %v2710_v24, 16  ;;  %v1734_v36 = vshll.u32 %v2710_v24, 16  ;;  %v2659_v37 = vor.u32 %v2893_v18, %v2658_v17  ;;  %v1740_v57 = vshll.u32 %v2711_v44, 16 }
  0x6e   : > { %1833 = vmatmul.bf16.vlgmr.msrb.gmra.mxu3 %v1769_v3  ;;  %2934 = vmatpush.bf16.msra.mxu2 %v2911_v4  ;;  %v1158_v39 = vpack.c.b16 %v1154_v47, %v1153_v22  ;;  %v1694_v48 = vrot.slane %v1692_v31, 5  ;;  %v1770_v58 = vpack.c.b16 %v1764_v5, %v1763_v41  ;;  %v1299_v3 = vsel %vm3085_vm2, %v2568_v50, %v1298_v54  ;;  %v2557_v22 = vld [vmem:[%s3067_s22 + $0x1c] sm:$0x1]  ;;  %v2558_v47 = vld [vmem:[%s3067_s22 + $0x20] sm:$0xe] }
  0x6f   : > { %1571 = vmatmul.bf16.vlgmr.msrb.gmra.mxu2 %v2651_v32  ;;  %v1703_v32 = vshrl.u32 %v2706_v28, 16  ;;  %v1303_v4 = vsel %vm3085_vm2, %v2569_v55, %v1302_v56  ;;  %v1345_v2 = vunpack.c.l.b16 %v1299_v3  ;;  %v2570_v28 = vrot.slane %v2556_v16, 9  ;;  %v2709_v5 = vld [vmem:[%s3067_s22 + $0x44] sm:$0x1]  ;;  %v2562_v16 = vld [vmem:[%s3067_s22 + $0x30] sm:$0xe] }
  0x70   : > { %v1695_v63 = vor.u32 %v1694_v48, %v1691_v46  ;;  %v1346_v12 = vunpack.c.l.b16 %v1303_v4  ;;  %v1967_v31 = vpack.c.b16 %v1960_v15, %v1959_v13  ;;  %v1722_v41 = vrot.slane %v1720_v30, 5  ;;  %v2561_v15 = vld [vmem:[%s3067_s22 + $0x2c] sm:$0x1]  ;;  %v2563_v17 = vld [vmem:[%s3067_s22 + $0x34] sm:$0x1] }
  0x71   : > { %v1705_v26 = vrot.slane %v1703_v32, 4  ;;  %v1733_v42 = vrot.slane %v1731_v61, 4  ;;  %v1736_v43 = vrot.slane %v1734_v36, 5  ;;  %v1306_v45 = vrot.slane %v2557_v22, 5  ;;  %v2769_v22 = vld [vmem:[%s3067_s22 + $0x34] sm:$0x1] }
  0x72   : > { %v1696_v8 = vrot.slane %v1695_v63, 4  ;;  %v1353_v21 = vpack.c.b16 %v1346_v12, %v1345_v2  ;;  %v2571_v46 = vrot.slane %v2558_v47, 9  ;;  %v1310_v48 = vrot.slane %v2559_v27, 5  ;;  %v2560_v2 = vld [vmem:[%s3067_s22 + $0x28] sm:$0xe] }
  0x73   : > { %v1709_v1 = vor.u32 %v1708_v49, %v1705_v26  ;;  %v2778_v26 = vrot.slane %v2764_v34, 9  ;;  %v1726_v55 = vshll.u32 %v2709_v5, 16  ;;  %v1737_v56 = vor.u32 %v1736_v43, %v1733_v42  ;;  %v2770_v47 = vld [vmem:[%s3067_s22 + $0x38] sm:$0xe]  ;;  %v2772_v24 = vld [vmem:[%s3067_s22 + $0x40] sm:$0xe] }
  0x74   : > { %v1701_v19 = vsel %vm3222_vm5, %v1696_v8, %v1700_v9  ;;  %v1311_v59 = vsel %vm3085_vm2, %v2571_v46, %v1310_v48  ;;  %v1742_v52 = vrot.slane %v1740_v57, 5  ;;  %v2773_v27 = vld [vmem:[%s3067_s22 + $0x44] sm:$0x1]  ;;  %v1314_v30 = vrot.slane %v2561_v15, 5 }
  0x75   : > { %v1710_v10 = vrot.slane %v1709_v1, 4  ;;  %v1765_v32 = vunpack.c.l.b16 %v1701_v19  ;;  %v1728_v0 = vrot.slane %v1726_v55, 5  ;;  %v1738_v1 = vrot.slane %v1737_v56, 4 }
  0x76   : > { %v1348_v4 = vunpack.c.l.b16 %v1311_v59  ;;  %v2573_v61 = vrot.slane %v2562_v16, 9  ;;  %v1928_v34 = vrot.slane %v2769_v22, 5  ;;  %v1932_v36 = vrot.slane %v2771_v23, 5  ;;  %v2565_v59 = vld [vmem:[%s3067_s22 + $0x3c] sm:$0x1] }
  0x77   : > { %v1715_v20 = vsel %vm3222_vm5, %v1710_v10, %v1714_v11  ;;  %v1743_v9 = vsel %vm3222_vm5, %v1738_v1, %v1742_v52  ;;  %v2662_v10 = vld [vmem:[%s3067_s22 + $0x40] sm:$0xf]  ;;  %v2894_v11 = vld [vmem:[%s3067_s22 + $0x44] sm:$0xf0]  ;;  %v1936_v38 = vrot.slane %v2773_v27, 5 }
  0x78   : > { %v1766_v33 = vunpack.c.l.b16 %v1715_v20  ;;  %v1768_v19 = vunpack.c.l.b16 %v1743_v9  ;;  %v2663_v20 = vor.u32 %v2894_v11, %v2662_v10 }
  0x7a   : > { %v1771_v49 = vpack.c.b16 %v1766_v33, %v1765_v32  ;;  %v2780_v33 = vrot.slane %v2768_v14, 9 }
  0x7c   : > { %617 = vmatmul.bf16.gmra.mxu1 %v541_v35  ;;  %1234 = vmatmul.bf16.gmra.mxu0 %v1158_v39  ;;  %v2765_v35 = vld [vmem:[%s3067_s22 + $0x24] sm:$0x1]  ;;  %v2767_v39 = vld [vmem:[%s3067_s22 + $0x2c] sm:$0x1]  ;;  %v1929_v44 = vsel %vm3085_vm2, %v2780_v33, %v1928_v34 }
  0x7d   : > { %v1920_v50 = vrot.slane %v2765_v35, 5  ;;  %v1924_v53 = vrot.slane %v2767_v39, 5  ;;  %v2781_v35 = vrot.slane %v2770_v47, 9 }
  0x7e   : > { %1838 = vmatmul.bf16.gmra.mxu3 %v1770_v58  ;;  %v1307_v58 = vsel %vm3085_vm2, %v2570_v28, %v1306_v45  ;;  %v2774_v28 = vld [vmem:[%s3067_s22 + $0x48] sm:$0xe] }
  0x7f   : > { %1576 = vmatmul.bf16.gmra.mxu2 %v2655_v40  ;;  %v1719_v40 = vrot.slane %v1717_v29, 4  ;;  %v1921_v60 = vsel %vm3085_vm2, %v2778_v26, %v1920_v50  ;;  %v1925_v62 = vsel %vm3085_vm2, %v2779_v51, %v1924_v53  ;;  %v1347_v3 = vunpack.c.l.b16 %v1307_v58  ;;  %v2775_v29 = vld [vmem:[%s3067_s22 + $0x4c] sm:$0x1]  ;;  %v2564_v58 = vld [vmem:[%s3067_s22 + $0x38] sm:$0xe] }
  0x80   : > { %v1961_v6 = vunpack.c.l.b16 %v1921_v60  ;;  %v1962_v7 = vunpack.c.l.b16 %v1925_v62  ;;  %v2783_v39 = vrot.slane %v2774_v28, 9  ;;  %v1933_v42 = vsel %vm3085_vm2, %v2781_v35, %v1932_v36  ;;  %v2566_v60 = vld [vmem:[%s3067_s22 + $0x40] sm:$0xe]  ;;  %v2567_v62 = vld [vmem:[%s3067_s22 + $0x44] sm:$0x1]  ;;  %s2834_s22 = sshll.u32 %s3635_s12, 6 }
  0x81   : > { %v1723_v54 = vor.u32 %v1722_v41, %v1719_v40  ;;  %v1354_v12 = vpack.c.b16 %v1348_v4, %v1347_v3  ;;  %v1940_v40 = vrot.slane %v2775_v29, 5  ;;  %v1963_v26 = vunpack.c.l.b16 %v1929_v44  ;;  %s3584_s6 = scalar_lea.vmem %s3624_s2, %s2834_s22 }
  0x82   : > { %v1968_v13 = vpack.c.b16 %v1962_v7, %v1961_v6  ;;  %v2575_v1 = vrot.slane %v2566_v60, 9  ;;  %v1326_v52 = vrot.slane %v2567_v62, 5 }
  0x83   : > { %v1724_v63 = vrot.slane %v1723_v54, 4  ;;  %v1941_v45 = vsel %vm3085_vm2, %v2783_v39, %v1940_v40 }
  0x84   : > { %v1966_v51 = vunpack.c.l.b16 %v1941_v45 }
  0x85   : > { %v1729_v8 = vsel %vm3222_vm5, %v1724_v63, %v1728_v0  ;;  %v2574_v63 = vrot.slane %v2564_v58, 9  ;;  %v1322_v0 = vrot.slane %v2565_v59, 5 }
  0x86   : > { %v1767_v18 = vunpack.c.l.b16 %v1729_v8  ;;  %v1327_v8 = vsel %vm3085_vm2, %v2575_v1, %v1326_v52 }
  0x87   : > { %v1323_v7 = vsel %vm3085_vm2, %v2574_v63, %v1322_v0  ;;  %v1352_v11 = vunpack.c.l.b16 %v1327_v8 }
  0x88   : > { %v1772_v32 = vpack.c.b16 %v1768_v19, %v1767_v18  ;;  %v1351_v10 = vunpack.c.l.b16 %v1323_v7 }
  0x8c   : > { %1417 = vmatmul.bf16.vlgmr.msra.gmra.mxu1 %v1353_v21  ;;  %2031 = vmatmul.bf16.vlgmr.msra.gmra.mxu0 %v1967_v31  ;;  %v2572_v21 = vrot.slane %v2560_v2, 9  ;;  %v1318_v31 = vrot.slane %v2563_v17, 5  ;;  %v1356_v2 = vpack.c.b16 %v1352_v11, %v1351_v10 }
  0x8e   : > { %1843 = vmatmul.bf16.gmra.mxu3 %v1771_v49  ;;  %v1315_v41 = vsel %vm3085_vm2, %v2572_v21, %v1314_v30  ;;  %v1319_v5 = vsel %vm3085_vm2, %v2573_v61, %v1318_v31  ;;  %v1964_v49 = vunpack.c.l.b16 %v1933_v42 }
  0x8f   : > { %1581 = vmatmul.bf16.gmra.mxu2 %v2659_v37  ;;  %v2782_v37 = vrot.slane %v2772_v24, 9  ;;  %v1349_v46 = vunpack.c.l.b16 %v1315_v41  ;;  %v1350_v48 = vunpack.c.l.b16 %v1319_v5 }
  0x90   : > { %v1969_v54 = vpack.c.b16 %v1964_v49, %v1963_v26 }
  0x91   : > { %v1937_v43 = vsel %vm3085_vm2, %v2782_v37, %v1936_v38  ;;  %v1355_v53 = vpack.c.b16 %v1350_v48, %v1349_v46 }
  0x92   : > { %v1965_v50 = vunpack.c.l.b16 %v1937_v43 }
  0x94   : > { %v1970_v57 = vpack.c.b16 %v1966_v51, %v1965_v50 }
  0x9c   : > { %1422 = vmatmul.bf16.gmra.mxu1 %v1354_v12  ;;  %2036 = vmatmul.bf16.gmra.mxu0 %v1968_v13 }
  0x9e   : > { %1848 = vmatmul.bf16.gmra.mxu3 %v1772_v32 }
  0x9f   : > { %1586 = vmatmul.bf16.gmra.mxu2 %v2663_v20 }
  0xa9   : > { %v348_v55 = vpop.f32.mrf.mxu1  ;;  %v338_v56 = vpop.f32.mrf.mxu0 }
  0xac   : > { %1427 = vmatmul.bf16.gmra.mxu1 %v1355_v53  ;;  %2041 = vmatmul.bf16.gmra.mxu0 %v1969_v54 }
  0xaf   : > { %2046 = vmatmul.bf16.vlgmr.msra.gmra.mxu2 %v1970_v57 }
  0xb1   : > { %v350_v4 = vpop.f32.mrf.mxu1  ;;  %v340_v6 = vpop.f32.mrf.mxu0 }
  0xb2   : > { %v804_v3 = vpop.f32.mrf.mxu2  ;;  %v958_v9 = vpop.f32.mrf.mxu3 }
  0xb9   : > { %v353_v13 = vpop.f32.mrf.mxu1  ;;  %v343_v15 = vpop.f32.mrf.mxu0 }
  0xba   : > { %v806_v12 = vpop.f32.mrf.mxu2  ;;  %v960_v16 = vpop.f32.mrf.mxu3 }
  0xbc   : > { %1432 = vmatmul.bf16.gmra.mxu1 %v1356_v2 }
  0xc1   : > { %v355_v18 = vpop.f32.mrf.mxu1  ;;  %v345_v19 = vpop.f32.mrf.mxu0 }
  0xc2   : > { %v809_v17 = vpop.f32.mrf.mxu2  ;;  %v3550_v20 = vpop.f32.mrf.mxu3 }
  0xc9   : > { %v603_v14 = vpop.f32.mrf.mxu1  ;;  %v1220_v22 = vpop.f32.mrf.mxu0 }
  0xca   : > { %v811_v21 = vpop.f32.mrf.mxu2  ;;  %v623_v47 = vadd.f32 %v603_v14, %v338_v56  ;;  %v3552_v23 = vpop.f32.mrf.mxu3 }
  0xcc   : > { %v824_v25 = vadd.f32 %v804_v3, %v623_v47 }
  0xce   : > { %v978_v1 = vadd.f32 %v958_v9, %v824_v25 }
  0xd0   : > { %v1240_v3 = vadd.f32 %v1220_v22, %v978_v1 }
  0xd1   : > { %v605_v27 = vpop.f32.mrf.mxu1  ;;  %v1222_v28 = vpop.f32.mrf.mxu0 }
  0xd2   : > { %v814_v24 = vpop.f32.mrf.mxu2  ;;  %v624_v29 = vadd.f32 %v605_v27, %v340_v6  ;;  %v3554_v61 = vpop.f32.mrf.mxu3 }
  0xd4   : > { %v825_v30 = vadd.f32 %v806_v12, %v624_v29 }
  0xd6   : > { %v979_v11 = vadd.f32 %v960_v16, %v825_v30 }
  0xd9   : > { %v608_v32 = vpop.f32.mrf.mxu1  ;;  %v1225_v33 = vpop.f32.mrf.mxu0 }
  0xda   : > { %v816_v31 = vpop.f32.mrf.mxu2  ;;  %v625_v34 = vadd.f32 %v608_v32, %v343_v15  ;;  %v3556_v37 = vpop.f32.mrf.mxu3 }
  0xdc   : > { %v826_v35 = vadd.f32 %v809_v17, %v625_v34 }
  0xe1   : > { %v610_v38 = vpop.f32.mrf.mxu1  ;;  %v3558_v39 = vpop.f32.mrf.mxu0 }
  0xe2   : > { %v819_v36 = vpop.f32.mrf.mxu2  ;;  %v626_v40 = vadd.f32 %v610_v38, %v345_v19  ;;  %v3562_v45 = vpop.f32.mrf.mxu3 }
  0xe4   : > { %v827_v41 = vadd.f32 %v811_v21, %v626_v40  ;;  %v980_v21 = vadd.f32 %v3550_v20, %v826_v35 }
  0xe6   : > { %v1242_v47 = vadd.f32 %v1225_v33, %v980_v21  ;;  %v981_v32 = vadd.f32 %v3552_v23, %v827_v41 }
  0xe8   : > { %v1243_v35 = vadd.f32 %v3558_v39, %v981_v32 }
  0xe9   : > { %v613_v44 = vpop.f32.mrf.mxu1  ;;  %v3560_v42 = vpop.f32.mrf.mxu0 }
  0xea   : > { %v821_v5 = vpop.f32.mrf.mxu2  ;;  %v627_v43 = vadd.f32 %v613_v44, %v348_v55  ;;  %v3570_v53 = vpop.f32.mrf.mxu3 }
  0xec   : > { %v3564_v46 = vadd.f32 %v814_v24, %v627_v43 }
  0xf1   : > { %v615_v26 = vpop.f32.mrf.mxu1  ;;  %v3566_v49 = vpop.f32.mrf.mxu0 }
  0xf2   : > { %v1572_v48 = vpop.f32.mrf.mxu2  ;;  %v628_v50 = vadd.f32 %v615_v26, %v350_v4  ;;  %v1834_v55 = vpop.f32.mrf.mxu3 }
  0xf4   : > { %v3568_v51 = vadd.f32 %v816_v31, %v628_v50  ;;  %v982_v50 = vadd.f32 %v3554_v61, %v3564_v46 }
  0xf9   : > { %v618_v56 = vpop.f32.mrf.mxu1  ;;  %v3572_v57 = vpop.f32.mrf.mxu0 }
  0xfa   : > { %v1574_v54 = vpop.f32.mrf.mxu2  ;;  %v629_v58 = vadd.f32 %v618_v56, %v353_v13  ;;  %v1836_v4 = vpop.f32.mrf.mxu3  ;;  %v1241_v13 = vadd.f32 %v1222_v28, %v979_v11 }
  0xfc   : > { %v3574_v59 = vadd.f32 %v819_v36, %v629_v58  ;;  %v1244_v58 = vadd.f32 %v3560_v42, %v982_v50 }
 0x101   : > { %v620_v62 = vpop.f32.mrf.mxu1  ;;  %v3576_v63 = vpop.f32.mrf.mxu0 }
 0x102   : > { %v1577_v60 = vpop.f32.mrf.mxu2  ;;  %v630_v0 = vadd.f32 %v620_v62, %v355_v18  ;;  %v1839_v19 = vpop.f32.mrf.mxu3 }
 0x104   : > { %v3578_v52 = vadd.f32 %v821_v5, %v630_v0 }
 0x109   : > { %v1418_v6 = vpop.f32.mrf.mxu1  ;;  %v2032_v7 = vpop.f32.mrf.mxu0 }
 0x10a   : > { %v1438_v8 = vadd.f32 %v1418_v6, %v1240_v3  ;;  %v1579_v10 = vpop.f32.mrf.mxu2  ;;  %v1841_v38 = vpop.f32.mrf.mxu3 }
 0x10c   : > { %v1592_v2 = vadd.f32 %v1572_v48, %v1438_v8 }
 0x10e   : > { %v1854_v12 = vadd.f32 %v1834_v55, %v1592_v2 }
 0x110   : > { %v2052_v9 = vadd.f32 %v2032_v7, %v1854_v12 }
 0x111   : > { %v1420_v15 = vpop.f32.mrf.mxu1  ;;  %v2034_v17 = vpop.f32.mrf.mxu0 }
 0x112   : > { %2076 = vst [vmem:[%s3584_s6] sm:$0xff] %v2052_v9  ;;  %v1439_v18 = vadd.f32 %v1420_v15, %v1241_v13  ;;  %v1582_v14 = vpop.f32.mrf.mxu2  ;;  %v2097_v29 = vmul.f32 %v2052_v9, %v2052_v9  ;;  %v1844_v56 = vpop.f32.mrf.mxu3 }
 0x114   : > { %v1593_v16 = vadd.f32 %v1574_v54, %v1439_v18 }
 0x116   : > { %v1855_v22 = vadd.f32 %v1836_v4, %v1593_v16  ;;  %v983_v4 = vadd.f32 %v3556_v37, %v3568_v51 }
 0x118   : > { %v2053_v25 = vadd.f32 %v2034_v17, %v1855_v22  ;;  %v1245_v7 = vadd.f32 %v3566_v49, %v983_v4 }
 0x119   : > { %v1423_v24 = vpop.f32.mrf.mxu1  ;;  %v2037_v27 = vpop.f32.mrf.mxu0 }
 0x11a   : > { %2077 = vst [vmem:[%s3584_s6 + $0x8] sm:$0xff] %v2053_v25  ;;  %v2084_v28 = vadd.f32 %v2053_v25, %v2052_v9  ;;  %v2098_v30 = vmul.f32 %v2053_v25, %v2053_v25  ;;  %v1440_v31 = vadd.f32 %v1423_v24, %v1242_v47  ;;  %v1584_v20 = vpop.f32.mrf.mxu2  ;;  %v1846_v42 = vpop.f32.mrf.mxu3  ;;  %v984_v9 = vadd.f32 %v3562_v45, %v3574_v59 }
 0x11b   : > { %v985_v47 = vadd.f32 %v3570_v53, %v3578_v52 }
 0x11c   : > { %v2105_v34 = vadd.f32 %v2098_v30, %v2097_v29  ;;  %v1594_v36 = vadd.f32 %v1577_v60, %v1440_v31  ;;  %v1246_v18 = vadd.f32 %v3572_v57, %v984_v9 }
 0x11e   : > { %v1856_v40 = vadd.f32 %v1839_v19, %v1594_v36 }
 0x120   : > { %v2054_v5 = vadd.f32 %v2037_v27, %v1856_v40  ;;  %v1247_v27 = vadd.f32 %v3576_v63, %v985_v47 }
 0x121   : > { %v1425_v33 = vpop.f32.mrf.mxu1  ;;  %v2039_v44 = vpop.f32.mrf.mxu0 }
 0x122   : > { %2078 = vst [vmem:[%s3584_s6 + $0x10] sm:$0xff] %v2054_v5  ;;  %v2085_v43 = vadd.f32 %v2084_v28, %v2054_v5  ;;  %v2099_v48 = vmul.f32 %v2054_v5, %v2054_v5  ;;  %v1441_v26 = vadd.f32 %v1425_v33, %v1243_v35  ;;  %v1587_v39 = vpop.f32.mrf.mxu2  ;;  %v1849_v22 = vpop.f32.mrf.mxu3 }
 0x124   : > { %v2106_v54 = vadd.f32 %v2105_v34, %v2099_v48  ;;  %v1595_v23 = vadd.f32 %v1579_v10, %v1441_v26 }
 0x126   : > { %v1857_v41 = vadd.f32 %v1841_v38, %v1595_v23 }
 0x128   : > { %v2055_v55 = vadd.f32 %v2039_v44, %v1857_v41 }
 0x129   : > { %v1428_v60 = vpop.f32.mrf.mxu1  ;;  %v2042_v3 = vpop.f32.mrf.mxu0 }
 0x12a   : > { %2079 = vst [vmem:[%s3584_s6 + $0x18] sm:$0xff] %v2055_v55  ;;  %v2086_v62 = vadd.f32 %v2085_v43, %v2055_v55  ;;  %v2100_v0 = vmul.f32 %v2055_v55, %v2055_v55  ;;  %v1442_v1 = vadd.f32 %v1428_v60, %v1244_v58  ;;  %v1589_v13 = vpop.f32.mrf.mxu2  ;;  %v1851_v36 = vpop.f32.mrf.mxu3 }
 0x12c   : > { %v2107_v6 = vadd.f32 %v2106_v54, %v2100_v0  ;;  %v1596_v61 = vadd.f32 %v1582_v14, %v1442_v1 }
 0x12e   : > { %v1858_v46 = vadd.f32 %v1844_v56, %v1596_v61 }
 0x130   : > { %v2056_v8 = vadd.f32 %v2042_v3, %v1858_v46 }
 0x131   : > { %v1430_v10 = vpop.f32.mrf.mxu1  ;;  %v2044_v37 = vpop.f32.mrf.mxu0 }
 0x132   : > { %2080 = vst [vmem:[%s3584_s6 + $0x20] sm:$0xff] %v2056_v8  ;;  %v2087_v11 = vadd.f32 %v2086_v62, %v2056_v8  ;;  %v2101_v2 = vmul.f32 %v2056_v8, %v2056_v8  ;;  %v1443_v12 = vadd.f32 %v1430_v10, %v1245_v7  ;;  %v2047_v45 = vpop.f32.mrf.mxu2 }
 0x134   : > { %v2108_v15 = vadd.f32 %v2107_v6, %v2101_v2  ;;  %v1597_v17 = vadd.f32 %v1584_v20, %v1443_v12 }
 0x136   : > { %v1859_v51 = vadd.f32 %v1846_v42, %v1597_v17 }
 0x138   : > { %v2057_v49 = vadd.f32 %v2044_v37, %v1859_v51 }
 0x139   : > { %v1433_v19 = vpop.f32.mrf.mxu1 }
 0x13a   : > { %2081 = vst [vmem:[%s3584_s6 + $0x28] sm:$0xff] %v2057_v49  ;;  %v2088_v21 = vadd.f32 %v2087_v11, %v2057_v49  ;;  %v2102_v16 = vmul.f32 %v2057_v49, %v2057_v49  ;;  %v1444_v14 = vadd.f32 %v1433_v19, %v1246_v18  ;;  %v2049_v40 = vpop.f32.mrf.mxu2 }
 0x13c   : > { %v2109_v25 = vadd.f32 %v2108_v15, %v2102_v16  ;;  %v1598_v24 = vadd.f32 %v1587_v39, %v1444_v14 }
 0x13e   : > { %v1860_v59 = vadd.f32 %v1849_v22, %v1598_v24 }
 0x140   : > { %v2058_v29 = vadd.f32 %v2047_v45, %v1860_v59 }
 0x141   : > { %v1435_v57 = vpop.f32.mrf.mxu1 }
 0x142   : > { %2082 = vst [vmem:[%s3584_s6 + $0x30] sm:$0xff] %v2058_v29  ;;  %v2089_v28 = vadd.f32 %v2088_v21, %v2058_v29  ;;  %v2103_v30 = vmul.f32 %v2058_v29, %v2058_v29  ;;  %v1445_v31 = vadd.f32 %v1435_v57, %v1247_v27 }
 0x144   : > { %v2110_v32 = vadd.f32 %v2109_v25, %v2103_v30  ;;  %v1599_v34 = vadd.f32 %v1589_v13, %v1445_v31 }
 0x146   : > { %v1861_v38 = vadd.f32 %v1851_v36, %v1599_v34 }
 0x148   : > { %v2059_v53 = vadd.f32 %v2049_v40, %v1861_v38 }
 0x14a   : > { %2083 = vst [vmem:[%s3584_s6 + $0x38] sm:$0xff] %v2059_v53  ;;  %v2090_v52 = vadd.f32 %v2089_v28, %v2059_v53  ;;  %v2104_v20 = vmul.f32 %v2059_v53, %v2059_v53 }
 0x14c   : > { %v2091_v35 = vrot.slane %v2090_v52, 4  ;;  %v2111_v5 = vadd.f32 %v2110_v32, %v2104_v20 }
 0x14e   : > { %v2092_v33 = vadd.f32 %v2091_v35, %v2090_v52  ;;  %v2112_v63 = vrot.slane %v2111_v5, 4 }
 0x150   : > { %v2093_v44 = vrot.slane %v2092_v33, 2  ;;  %v2113_v43 = vadd.f32 %v2112_v63, %v2111_v5 }
 0x152   : > { %v2094_v48 = vadd.f32 %v2093_v44, %v2092_v33  ;;  %v2114_v26 = vrot.slane %v2113_v43, 2 }
 0x154   : > { %v2095_v50 = vrot.slane %v2094_v48, 1  ;;  %v2115_v54 = vadd.f32 %v2114_v26, %v2113_v43 }
 0x156   : > { %v2116_v23 = vrot.slane %v2115_v54, 1  ;;  %v2096_v41 = vadd.f32 %v2095_v50, %v2094_v48 }
 0x158   : > { %v2117_v56 = vadd.f32 %v2116_v23, %v2115_v54 }
 0x15a   : > { %v2119_v58 = vsel %vm2118_vm6, %v2096_v41, %v2117_v56 }
 0x15b   : > { %v2121_v55 = vsel %vm2120_vm7, %v2119_v58, 0.0 }
 0x15c   : > { %2122 = vst [vmem:[%s212_s10] sm:$0xff] %v2121_v55 }
 0x15d PF: > { %s14_s14 = sadd.s32 1, %s2982_s14   ;;  %s3630_s12 = smov %s2978_s13 }
 0x15e   : > { %p11_p5 = scmp.ge.s32.totalorder %s14_s14, 4   ;;  %s3631_s13 = smov %s3633_s15 }
 0x160   :  { %13 = sbr.rel (!%p11_p5) target bundleno = 2 (0x2), region = 81 }

</bundles_post_ra>
